<compile_context>
chip_gen: v6e
topology: v6e:2x2x1
jax: 0.10.0
libtpu: 0.0.40
codegen_flags: <defaults>
</compile_context>

<pallas_src>
import functools

import jax
import jax.numpy as jnp
from jax import lax
from jax.experimental import pallas as pl
from jax.experimental.pallas import tpu as pltpu


# ------------------------------ Pallas kernel -------------------------------

def _bottleneck_kernel(xp_ref, mask_ref, res_ref, w1_ref, b1_ref, w2_ref, b2_ref,
                       w3_ref, b3_ref, o_ref, out1_ref, *,
                       TH, Wp, d, planes, C4, c4_chunk):
    """One (batch, row-tile) grid step: conv1+bn1+relu -> conv2(3x3,dil d)+bn2+relu ->
    conv3+bn3+residual+relu, all fused; the only HBM traffic is x, residual and output.

    xp_ref  : (1, Hp_pad*Wp, Cin)  zero-padded input, spatially flattened (bf16)
    mask_ref: (Hp_pad*Wp, 1)       {0,1} validity mask of the padded grid (f32)
    res_ref : (1, TH*Wp, C4)       f32 residual for this output tile (cols >= W unused)
    w*_ref  : BN-scale-folded conv weights (bf16); b*_ref folded biases (f32)
    o_ref   : (1, TH*Wp, C4)       output tile (bf16), cols >= W are don't-care
    out1_ref: (Hh*Wp + Wp, planes) VMEM scratch: conv1 halo slab + read slack (bf16)
    """
    Hh = TH + 2 * d
    n_halo = Hh * Wp
    n_out = TH * Wp
    rb = pl.program_id(1)
    r0 = pl.multiple_of(rb * n_out, n_out)         # flat start of this tile's halo slab

    # ---- stage 1: conv1 (1x1) + bn1 + relu, one matmul over the whole halo slab ----
    x2d = xp_ref[0, pl.ds(r0, n_halo), :]                              # (Hh*Wp, Cin)
    y1 = jnp.dot(x2d, w1_ref[...], preferred_element_type=jnp.float32)
    y1 = jnp.maximum(y1 + b1_ref[...], 0.0)
    m = mask_ref[pl.ds(r0, n_halo), :]                                 # (Hh*Wp, 1)
    # Padded positions must be exact zeros (they are conv2's zero padding).
    out1_ref[0:n_halo, :] = (y1 * m).astype(jnp.bfloat16)
    # Zero the read slack used by the wrap-around taps of the last garbage columns.
    out1_ref[n_halo:n_halo + Wp, :] = jnp.zeros((Wp, planes), jnp.bfloat16)

    # ---- stage 2: conv2 (3x3, dilation d) + bn2 + relu, batched over the tile ----
    # A (dy, dx) spatial shift on the flattened padded grid is a flat shift of
    # (dy*Wp + dx)*d, so each tap is one contiguous-slice matmul.  Columns >= W of the
    # "output" are wrap-around garbage and get sliced off in the wrapper.
    acc = jnp.zeros((n_out, planes), jnp.float32)
    for dy in range(3):
        for dx in range(3):
            off = (dy * Wp + dx) * d                                   # static
            acc = acc + jnp.dot(out1_ref[off:off + n_out, :], w2_ref[3 * dy + dx],
                                preferred_element_type=jnp.float32)
    out2 = jnp.maximum(acc + b2_ref[...], 0.0).astype(jnp.bfloat16)    # (TH*Wp, planes)

    # ---- stage 3: conv3 (1x1) + bn3 + residual + relu, chunked over C4 ----
    for c0 in range(0, C4, c4_chunk):
        ce = min(C4, c0 + c4_chunk)
        y = jnp.dot(out2, w3_ref[:, c0:ce], preferred_element_type=jnp.float32)
        y = y + b3_ref[:, c0:ce] + res_ref[0, :, c0:ce]
        o_ref[0, :, c0:ce] = jnp.maximum(y, 0.0).astype(o_ref.dtype)


# --------------------------------- Wrapper ----------------------------------

def _fold_bn(gamma, beta, mean, var, eps=1e-5):
    scale = gamma / jnp.sqrt(var + eps)
    bias = beta - mean * scale
    return scale, bias


def bottleneck_forward(x_nchw, params, dilation=1, tile_rows=32):
    """Bottleneck forward (stride=1, downsample=None, BN in eval mode with running
    statistics folded into scale/bias)."""
    w1, w2, w3 = params["w1"], params["w2"], params["w3"]
    s1, b1 = _fold_bn(params["gamma1"], params["beta1"], params["mean1"], params["var1"])
    s2, b2 = _fold_bn(params["gamma2"], params["beta2"], params["mean2"], params["var2"])
    s3, b3 = _fold_bn(params["gamma3"], params["beta3"], params["mean3"], params["var3"])

    x = jnp.transpose(x_nchw, (0, 2, 3, 1)).astype(jnp.float32)        # NHWC
    N, H, W, Cin = x.shape
    planes = w1.shape[1]
    C4 = w3.shape[1]
    assert Cin == C4 == 4 * planes, "identity residual requires inplanes == 4*planes"
    d = int(dilation)
    Wp = W + 2 * d

    # Row tiling: cdiv-based, TH rounded up to a multiple of 8, ragged H handled by
    # padding rows up to H_pad = nrb*TH (extra rows are masked/discarded).
    n_tiles = max(1, -(-H // int(tile_rows)))
    TH = -(-H // n_tiles)
    TH = -(-TH // 8) * 8
    nrb = -(-H // TH)
    H_pad = nrb * TH
    Hp_pad = H_pad + 2 * d
    Hh = TH + 2 * d

    # Fold BN scale into the conv weights; bf16 weights, f32 biases.
    cdt = jnp.bfloat16
    w1s = (w1 * s1[None, :]).astype(cdt)                                   # (Cin, planes)
    w2s = (w2 * s2[None, None, None, :]).reshape(9, planes, planes).astype(cdt)
    w3s = (w3 * s3[None, :]).astype(cdt)                                   # (planes, C4)
    b1r = b1.reshape(1, planes).astype(jnp.float32)
    b2r = b2.reshape(1, planes).astype(jnp.float32)
    b3r = b3.reshape(1, C4).astype(jnp.float32)

    # Padded input, spatially flattened so the kernel only ever does 2-D slices/matmuls.
    xp = jnp.pad(x, ((0, 0), (d, d + H_pad - H), (d, d), (0, 0))).astype(cdt)
    xp_flat = xp.reshape(N, Hp_pad * Wp, Cin)

    # {0,1} validity mask of the padded grid (zeros out conv1's output on the padding).
    rows = jnp.arange(Hp_pad)
    cols = jnp.arange(Wp)
    valid = ((rows[:, None] >= d) & (rows[:, None] < H + d) &
             (cols[None, :] >= d) & (cols[None, :] < W + d))
    mask_flat = valid.astype(jnp.float32).reshape(Hp_pad * Wp, 1)

    # f32 residual, laid out to match the kernel's flattened (row, padded-col) output.
    res = jnp.pad(x, ((0, 0), (0, H_pad - H), (0, 2 * d), (0, 0)))
    res_flat = res.reshape(N, H_pad * Wp, C4)

    c4_chunk = min(C4, 512)
    kernel = functools.partial(_bottleneck_kernel, TH=TH, Wp=Wp, d=d,
                               planes=planes, C4=C4, c4_chunk=c4_chunk)

    # VMEM budget: double-buffered inputs/output blocks + weights + halo scratch.
    xp_blk = Hp_pad * Wp * Cin * 2
    msk_blk = Hp_pad * Wp * 4
    res_blk = TH * Wp * C4 * 4
    out_blk = TH * Wp * C4 * 2
    wgt = (Cin * planes + 9 * planes * planes + planes * C4) * 2 + (2 * planes + C4) * 4
    scratch = (Hh * Wp + Wp) * planes * 2
    need = 2 * (xp_blk + msk_blk + res_blk + out_blk + wgt) + scratch
    vmem_limit = int(min(100 * 2 ** 20, max(32 * 2 ** 20, need + 8 * 2 ** 20)))

    M1 = N * Hp_pad * Wp
    M23 = N * H_pad * Wp
    flops = 2 * M1 * Cin * planes + 2 * M23 * (9 * planes * planes + planes * C4)
    bytes_accessed = int(xp_flat.size * 2 + mask_flat.size * 4 + res_flat.size * 4
                         + (w1s.size + w2s.size + w3s.size) * 2 + M23 * C4 * 2)

    out = pl.pallas_call(
        kernel,
        out_shape=jax.ShapeDtypeStruct((N, H_pad * Wp, C4), jnp.bfloat16),
        grid=(N, nrb),
        in_specs=[
            pl.BlockSpec((1, Hp_pad * Wp, Cin), lambda n, rb: (n, 0, 0)),   # padded x
            pl.BlockSpec((Hp_pad * Wp, 1), lambda n, rb: (0, 0)),           # pad mask
            pl.BlockSpec((1, TH * Wp, C4), lambda n, rb: (n, rb, 0)),       # f32 residual
            pl.BlockSpec((Cin, planes), lambda n, rb: (0, 0)),              # w1 * scale1
            pl.BlockSpec((1, planes), lambda n, rb: (0, 0)),                # bias1
            pl.BlockSpec((9, planes, planes), lambda n, rb: (0, 0, 0)),     # w2 * scale2
            pl.BlockSpec((1, planes), lambda n, rb: (0, 0)),                # bias2
            pl.BlockSpec((planes, C4), lambda n, rb: (0, 0)),               # w3 * scale3
            pl.BlockSpec((1, C4), lambda n, rb: (0, 0)),                    # bias3
        ],
        out_specs=pl.BlockSpec((1, TH * Wp, C4), lambda n, rb: (n, rb, 0)),
        scratch_shapes=[pltpu.VMEM((Hh * Wp + Wp, planes), jnp.bfloat16)],
        compiler_params=pltpu.CompilerParams(
            dimension_semantics=("parallel", "parallel"),
            vmem_limit_bytes=vmem_limit,
        ),
        cost_estimate=pl.CostEstimate(flops=int(flops), transcendentals=0,
                                      bytes_accessed=bytes_accessed),
    )(xp_flat, mask_flat, res_flat, w1s, b1r, w2s, b2r, w3s, b3r)

    out = out.reshape(N, H_pad, Wp, C4)[:, :H, :W, :]                  # drop pad rows/cols
    return jnp.transpose(out.astype(jnp.float32), (0, 3, 1, 2))        # NCHW, f32


# ---------------------------- Parameter setup -------------------------------

def init_params(key, inplanes, planes, dtype=jnp.float32):
    """Deterministic synthetic parameters matching the module's shapes
    (conv weights stored channels-last: (Cin, Cout) / (kh, kw, Cin, Cout))."""
    ks = jax.random.split(key, 15)
    p = dict(
        w1=0.1 * jax.random.normal(ks[0], (inplanes, planes), dtype),
        w2=0.1 * jax.random.normal(ks[1], (3, 3, planes, planes), dtype),
        w3=0.1 * jax.random.normal(ks[2], (planes, planes * 4), dtype),
    )
    for idx, c in ((1, planes), (2, planes), (3, planes * 4)):
        k0, k1, k2, k3 = ks[3 + 4 * (idx - 1):3 + 4 * idx]
        p[f"gamma{idx}"] = 1.0 + 0.1 * jax.random.normal(k0, (c,), dtype)
        p[f"beta{idx}"] = 0.1 * jax.random.normal(k1, (c,), dtype)
        p[f"mean{idx}"] = 0.1 * jax.random.normal(k2, (c,), dtype)
        p[f"var{idx}"] = jax.random.uniform(k3, (c,), dtype, 0.5, 1.5)
    return p


# ----------------------- Pure-JAX reference (check) --------------------------

def bottleneck_reference(x_nchw, params, dilation=1):
    x = jnp.transpose(x_nchw, (0, 2, 3, 1)).astype(jnp.float32)
    dn = ("NHWC", "HWIO", "NHWC")
    d = dilation
    s1, b1 = _fold_bn(params["gamma1"], params["beta1"], params["mean1"], params["var1"])
    s2, b2 = _fold_bn(params["gamma2"], params["beta2"], params["mean2"], params["var2"])
    s3, b3 = _fold_bn(params["gamma3"], params["beta3"], params["mean3"], params["var3"])
    y = lax.conv_general_dilated(x, params["w1"][None, None], (1, 1), "VALID",
                                 dimension_numbers=dn)
    y = jnp.maximum(y * s1 + b1, 0.0)
    y = lax.conv_general_dilated(y, params["w2"], (1, 1), [(d, d), (d, d)],
                                 rhs_dilation=(d, d), dimension_numbers=dn)
    y = jnp.maximum(y * s2 + b2, 0.0)
    y = lax.conv_general_dilated(y, params["w3"][None, None], (1, 1), "VALID",
                                 dimension_numbers=dn)
    y = jnp.maximum(y * s3 + b3 + x, 0.0)
    return jnp.transpose(y, (0, 3, 1, 2))


# ----------------------------------- Main ------------------------------------

if __name__ == "__main__":
    key = jax.random.PRNGKey(0)
    kx, kp = jax.random.split(key)

    N, planes, H, W = 2, 4, 16, 16
    inplanes = planes * 4      # identity residual requires inplanes == planes * expansion
    dilation = 2               # DeepLab-style dilated 3x3 conv

    x = jax.random.normal(kx, (N, inplanes, H, W), jnp.float32)   # NCHW, like PyTorch
    params = init_params(kp, inplanes, planes)

    out = jax.block_until_ready(bottleneck_forward(x, params, dilation))
    ref = bottleneck_reference(x, params, dilation)

    assert out.shape == ref.shape == (N, inplanes, H, W)
    max_err = float(jnp.max(jnp.abs(out - ref)))
    # bf16 activations/weights (f32 accumulation, f32 residual) vs pure-f32 reference.
    assert jnp.allclose(out, ref, atol=5e-2, rtol=5e-2), max_err

    print("KERNEL_OK")
</pallas_src>

<mosaic_0001>
module attributes {stable_mosaic.version = 11 : i64} {
  func.func @_bottleneck_kernel(%arg0: i32, %arg1: i32, %arg2: memref<1x400x16xbf16, #tpu.memory_space<vmem>>, %arg3: memref<400x1xf32, #tpu.memory_space<vmem>>, %arg4: memref<1x320x16xf32, #tpu.memory_space<vmem>>, %arg5: memref<16x4xbf16, #tpu.memory_space<vmem>>, %arg6: memref<1x4xf32, #tpu.memory_space<vmem>>, %arg7: memref<9x4x4xbf16, #tpu.memory_space<vmem>>, %arg8: memref<1x4xf32, #tpu.memory_space<vmem>>, %arg9: memref<4x16xbf16, #tpu.memory_space<vmem>>, %arg10: memref<1x16xf32, #tpu.memory_space<vmem>>, %arg11: memref<1x320x16xbf16, #tpu.memory_space<vmem>>, %arg12: memref<420x4xbf16, #tpu.memory_space<vmem>>) attributes {dimension_semantics = [#tpu.dimension_semantics<parallel>, #tpu.dimension_semantics<parallel>], iteration_bounds = array<i64: 2, 1>, scalar_prefetch = 0 : i64, scratch_operands = 1 : i64, tpu.core_type = #tpu.core_type<tc>, window_params = [{transform_indices = @transform_0, window_bounds = array<i64: 1, 400, 16>}, {pipeline_mode = #tpu.pipeline_mode<synchronous>, transform_indices = @transform_1, window_bounds = array<i64: 400, 1>}, {transform_indices = @transform_2, window_bounds = array<i64: 1, 320, 16>}, {pipeline_mode = #tpu.pipeline_mode<synchronous>, transform_indices = @transform_3, window_bounds = array<i64: 16, 4>}, {pipeline_mode = #tpu.pipeline_mode<synchronous>, transform_indices = @transform_4, window_bounds = array<i64: 1, 4>}, {pipeline_mode = #tpu.pipeline_mode<synchronous>, transform_indices = @transform_5, window_bounds = array<i64: 9, 4, 4>}, {pipeline_mode = #tpu.pipeline_mode<synchronous>, transform_indices = @transform_6, window_bounds = array<i64: 1, 4>}, {pipeline_mode = #tpu.pipeline_mode<synchronous>, transform_indices = @transform_7, window_bounds = array<i64: 4, 16>}, {pipeline_mode = #tpu.pipeline_mode<synchronous>, transform_indices = @transform_8, window_bounds = array<i64: 1, 16>}, {transform_indices = @transform_9, window_bounds = array<i64: 1, 320, 16>}]} {
    %c320_i32 = arith.constant 320 : i32
    %0 = arith.muli %arg1, %c320_i32 : i32
    %1 = tpu.assume_multiple %0, 320 : i32
    %c0 = arith.constant 0 : index
    %2 = arith.index_cast %1 : i32 to index
    %c0_0 = arith.constant 0 : index
    %3 = vector.load %arg2[%c0, %2, %c0_0] : memref<1x400x16xbf16, #tpu.memory_space<vmem>>, vector<1x400x16xbf16>
    %4 = vector.shape_cast %3 : vector<1x400x16xbf16> to vector<400x16xbf16>
    %c0_1 = arith.constant 0 : index
    %c0_2 = arith.constant 0 : index
    %5 = vector.load %arg5[%c0_1, %c0_2] : memref<16x4xbf16, #tpu.memory_space<vmem>>, vector<16x4xbf16>
    %cst = arith.constant dense<0.000000e+00> : vector<400x4xf32>
    %6 = tpu.matmul %4, %5, %cst {dimension_numbers = #tpu.dot_dimension_numbers<[1], [0], [0], [1], [0, 0, 1, 1], [], []>} : vector<400x16xbf16>, vector<16x4xbf16>, vector<400x4xf32> -> vector<400x4xf32>
    %c0_3 = arith.constant 0 : index
    %c0_4 = arith.constant 0 : index
    %7 = vector.load %arg6[%c0_3, %c0_4] : memref<1x4xf32, #tpu.memory_space<vmem>>, vector<1x4xf32>
    %8 = vector.broadcast %7 : vector<1x4xf32> to vector<400x4xf32>
    %9 = arith.addf %6, %8 : vector<400x4xf32>
    %cst_5 = arith.constant 0.000000e+00 : f32
    %10 = vector.broadcast %cst_5 : f32 to vector<400x4xf32>
    %11 = arith.maximumf %9, %10 : vector<400x4xf32>
    %12 = arith.index_cast %1 : i32 to index
    %c0_6 = arith.constant 0 : index
    %13 = vector.load %arg3[%12, %c0_6] : memref<400x1xf32, #tpu.memory_space<vmem>>, vector<400x1xf32>
    %14 = vector.broadcast %13 : vector<400x1xf32> to vector<400x4xf32>
    %15 = arith.mulf %11, %14 : vector<400x4xf32>
    %16 = arith.truncf %15 : vector<400x4xf32> to vector<400x4xbf16>
    %c0_7 = arith.constant 0 : index
    %c0_8 = arith.constant 0 : index
    %17 = vector.load %arg12[%c0_7, %c0_8] : memref<420x4xbf16, #tpu.memory_space<vmem>>, vector<400x4xbf16>
    tpu.vector_store %arg12[%c0_7, %c0_8], %16 {strides = array<i32>} : memref<420x4xbf16, #tpu.memory_space<vmem>>, vector<400x4xbf16>,
    %cst_9 = arith.constant 0.000000e+00 : bf16
    %18 = vector.broadcast %cst_9 : bf16 to vector<20x4xbf16>
    %c400 = arith.constant 400 : index
    %c0_10 = arith.constant 0 : index
    %19 = vector.load %arg12[%c400, %c0_10] : memref<420x4xbf16, #tpu.memory_space<vmem>>, vector<20x4xbf16>
    tpu.vector_store %arg12[%c400, %c0_10], %18 {strides = array<i32>} : memref<420x4xbf16, #tpu.memory_space<vmem>>, vector<20x4xbf16>,
    %cst_11 = arith.constant 0.000000e+00 : f32
    %20 = vector.broadcast %cst_11 : f32 to vector<320x4xf32>
    %c0_12 = arith.constant 0 : index
    %c0_13 = arith.constant 0 : index
    %21 = vector.load %arg12[%c0_12, %c0_13] : memref<420x4xbf16, #tpu.memory_space<vmem>>, vector<320x4xbf16>
    %c0_14 = arith.constant 0 : index
    %c0_15 = arith.constant 0 : index
    %c0_16 = arith.constant 0 : index
    %22 = vector.load %arg7[%c0_14, %c0_15, %c0_16] : memref<9x4x4xbf16, #tpu.memory_space<vmem>>, vector<1x4x4xbf16>
    %23 = vector.shape_cast %22 : vector<1x4x4xbf16> to vector<4x4xbf16>
    %cst_17 = arith.constant dense<0.000000e+00> : vector<320x4xf32>
    %24 = tpu.matmul %21, %23, %cst_17 {dimension_numbers = #tpu.dot_dimension_numbers<[1], [0], [0], [1], [0, 0, 1, 1], [], []>} : vector<320x4xbf16>, vector<4x4xbf16>, vector<320x4xf32> -> vector<320x4xf32>
    %25 = arith.addf %20, %24 : vector<320x4xf32>
    %c2 = arith.constant 2 : index
    %c0_18 = arith.constant 0 : index
    %26 = vector.load %arg12[%c2, %c0_18] : memref<420x4xbf16, #tpu.memory_space<vmem>>, vector<320x4xbf16>
    %c1 = arith.constant 1 : index
    %c0_19 = arith.constant 0 : index
    %c0_20 = arith.constant 0 : index
    %27 = vector.load %arg7[%c1, %c0_19, %c0_20] : memref<9x4x4xbf16, #tpu.memory_space<vmem>>, vector<1x4x4xbf16>
    %28 = vector.shape_cast %27 : vector<1x4x4xbf16> to vector<4x4xbf16>
    %cst_21 = arith.constant dense<0.000000e+00> : vector<320x4xf32>
    %29 = tpu.matmul %26, %28, %cst_21 {dimension_numbers = #tpu.dot_dimension_numbers<[1], [0], [0], [1], [0, 0, 1, 1], [], []>} : vector<320x4xbf16>, vector<4x4xbf16>, vector<320x4xf32> -> vector<320x4xf32>
    %30 = arith.addf %25, %29 : vector<320x4xf32>
    %c4 = arith.constant 4 : index
    %c0_22 = arith.constant 0 : index
    %31 = vector.load %arg12[%c4, %c0_22] : memref<420x4xbf16, #tpu.memory_space<vmem>>, vector<320x4xbf16>
    %c2_23 = arith.constant 2 : index
    %c0_24 = arith.constant 0 : index
    %c0_25 = arith.constant 0 : index
    %32 = vector.load %arg7[%c2_23, %c0_24, %c0_25] : memref<9x4x4xbf16, #tpu.memory_space<vmem>>, vector<1x4x4xbf16>
    %33 = vector.shape_cast %32 : vector<1x4x4xbf16> to vector<4x4xbf16>
    %cst_26 = arith.constant dense<0.000000e+00> : vector<320x4xf32>
    %34 = tpu.matmul %31, %33, %cst_26 {dimension_numbers = #tpu.dot_dimension_numbers<[1], [0], [0], [1], [0, 0, 1, 1], [], []>} : vector<320x4xbf16>, vector<4x4xbf16>, vector<320x4xf32> -> vector<320x4xf32>
    %35 = arith.addf %30, %34 : vector<320x4xf32>
    %c40 = arith.constant 40 : index
    %c0_27 = arith.constant 0 : index
    %36 = vector.load %arg12[%c40, %c0_27] : memref<420x4xbf16, #tpu.memory_space<vmem>>, vector<320x4xbf16>
    %c3 = arith.constant 3 : index
    %c0_28 = arith.constant 0 : index
    %c0_29 = arith.constant 0 : index
    %37 = vector.load %arg7[%c3, %c0_28, %c0_29] : memref<9x4x4xbf16, #tpu.memory_space<vmem>>, vector<1x4x4xbf16>
    %38 = vector.shape_cast %37 : vector<1x4x4xbf16> to vector<4x4xbf16>
    %cst_30 = arith.constant dense<0.000000e+00> : vector<320x4xf32>
    %39 = tpu.matmul %36, %38, %cst_30 {dimension_numbers = #tpu.dot_dimension_numbers<[1], [0], [0], [1], [0, 0, 1, 1], [], []>} : vector<320x4xbf16>, vector<4x4xbf16>, vector<320x4xf32> -> vector<320x4xf32>
    %40 = arith.addf %35, %39 : vector<320x4xf32>
    %c42 = arith.constant 42 : index
    %c0_31 = arith.constant 0 : index
    %41 = vector.load %arg12[%c42, %c0_31] : memref<420x4xbf16, #tpu.memory_space<vmem>>, vector<320x4xbf16>
    %c4_32 = arith.constant 4 : index
    %c0_33 = arith.constant 0 : index
    %c0_34 = arith.constant 0 : index
    %42 = vector.load %arg7[%c4_32, %c0_33, %c0_34] : memref<9x4x4xbf16, #tpu.memory_space<vmem>>, vector<1x4x4xbf16>
    %43 = vector.shape_cast %42 : vector<1x4x4xbf16> to vector<4x4xbf16>
    %cst_35 = arith.constant dense<0.000000e+00> : vector<320x4xf32>
    %44 = tpu.matmul %41, %43, %cst_35 {dimension_numbers = #tpu.dot_dimension_numbers<[1], [0], [0], [1], [0, 0, 1, 1], [], []>} : vector<320x4xbf16>, vector<4x4xbf16>, vector<320x4xf32> -> vector<320x4xf32>
    %45 = arith.addf %40, %44 : vector<320x4xf32>
    %c44 = arith.constant 44 : index
    %c0_36 = arith.constant 0 : index
    %46 = vector.load %arg12[%c44, %c0_36] : memref<420x4xbf16, #tpu.memory_space<vmem>>, vector<320x4xbf16>
    %c5 = arith.constant 5 : index
    %c0_37 = arith.constant 0 : index
    %c0_38 = arith.constant 0 : index
    %47 = vector.load %arg7[%c5, %c0_37, %c0_38] : memref<9x4x4xbf16, #tpu.memory_space<vmem>>, vector<1x4x4xbf16>
    %48 = vector.shape_cast %47 : vector<1x4x4xbf16> to vector<4x4xbf16>
    %cst_39 = arith.constant dense<0.000000e+00> : vector<320x4xf32>
    %49 = tpu.matmul %46, %48, %cst_39 {dimension_numbers = #tpu.dot_dimension_numbers<[1], [0], [0], [1], [0, 0, 1, 1], [], []>} : vector<320x4xbf16>, vector<4x4xbf16>, vector<320x4xf32> -> vector<320x4xf32>
    %50 = arith.addf %45, %49 : vector<320x4xf32>
    %c80 = arith.constant 80 : index
    %c0_40 = arith.constant 0 : index
    %51 = vector.load %arg12[%c80, %c0_40] : memref<420x4xbf16, #tpu.memory_space<vmem>>, vector<320x4xbf16>
    %c6 = arith.constant 6 : index
    %c0_41 = arith.constant 0 : index
    %c0_42 = arith.constant 0 : index
    %52 = vector.load %arg7[%c6, %c0_41, %c0_42] : memref<9x4x4xbf16, #tpu.memory_space<vmem>>, vector<1x4x4xbf16>
    %53 = vector.shape_cast %52 : vector<1x4x4xbf16> to vector<4x4xbf16>
    %cst_43 = arith.constant dense<0.000000e+00> : vector<320x4xf32>
    %54 = tpu.matmul %51, %53, %cst_43 {dimension_numbers = #tpu.dot_dimension_numbers<[1], [0], [0], [1], [0, 0, 1, 1], [], []>} : vector<320x4xbf16>, vector<4x4xbf16>, vector<320x4xf32> -> vector<320x4xf32>
    %55 = arith.addf %50, %54 : vector<320x4xf32>
    %c82 = arith.constant 82 : index
    %c0_44 = arith.constant 0 : index
    %56 = vector.load %arg12[%c82, %c0_44] : memref<420x4xbf16, #tpu.memory_space<vmem>>, vector<320x4xbf16>
    %c7 = arith.constant 7 : index
    %c0_45 = arith.constant 0 : index
    %c0_46 = arith.constant 0 : index
    %57 = vector.load %arg7[%c7, %c0_45, %c0_46] : memref<9x4x4xbf16, #tpu.memory_space<vmem>>, vector<1x4x4xbf16>
    %58 = vector.shape_cast %57 : vector<1x4x4xbf16> to vector<4x4xbf16>
    %cst_47 = arith.constant dense<0.000000e+00> : vector<320x4xf32>
    %59 = tpu.matmul %56, %58, %cst_47 {dimension_numbers = #tpu.dot_dimension_numbers<[1], [0], [0], [1], [0, 0, 1, 1], [], []>} : vector<320x4xbf16>, vector<4x4xbf16>, vector<320x4xf32> -> vector<320x4xf32>
    %60 = arith.addf %55, %59 : vector<320x4xf32>
    %c84 = arith.constant 84 : index
    %c0_48 = arith.constant 0 : index
    %61 = vector.load %arg12[%c84, %c0_48] : memref<420x4xbf16, #tpu.memory_space<vmem>>, vector<320x4xbf16>
    %c8 = arith.constant 8 : index
    %c0_49 = arith.constant 0 : index
    %c0_50 = arith.constant 0 : index
    %62 = vector.load %arg7[%c8, %c0_49, %c0_50] : memref<9x4x4xbf16, #tpu.memory_space<vmem>>, vector<1x4x4xbf16>
    %63 = vector.shape_cast %62 : vector<1x4x4xbf16> to vector<4x4xbf16>
    %cst_51 = arith.constant dense<0.000000e+00> : vector<320x4xf32>
    %64 = tpu.matmul %61, %63, %cst_51 {dimension_numbers = #tpu.dot_dimension_numbers<[1], [0], [0], [1], [0, 0, 1, 1], [], []>} : vector<320x4xbf16>, vector<4x4xbf16>, vector<320x4xf32> -> vector<320x4xf32>
    %65 = arith.addf %60, %64 : vector<320x4xf32>
    %c0_52 = arith.constant 0 : index
    %c0_53 = arith.constant 0 : index
    %66 = vector.load %arg8[%c0_52, %c0_53] : memref<1x4xf32, #tpu.memory_space<vmem>>, vector<1x4xf32>
    %67 = vector.broadcast %66 : vector<1x4xf32> to vector<320x4xf32>
    %68 = arith.addf %65, %67 : vector<320x4xf32>
    %cst_54 = arith.constant 0.000000e+00 : f32
    %69 = vector.broadcast %cst_54 : f32 to vector<320x4xf32>
    %70 = arith.maximumf %68, %69 : vector<320x4xf32>
    %71 = arith.truncf %70 : vector<320x4xf32> to vector<320x4xbf16>
    %c0_55 = arith.constant 0 : index
    %c0_56 = arith.constant 0 : index
    %72 = vector.load %arg9[%c0_55, %c0_56] : memref<4x16xbf16, #tpu.memory_space<vmem>>, vector<4x16xbf16>
    %cst_57 = arith.constant dense<0.000000e+00> : vector<320x16xf32>
    %73 = tpu.matmul %71, %72, %cst_57 {dimension_numbers = #tpu.dot_dimension_numbers<[1], [0], [0], [1], [0, 0, 1, 1], [], []>} : vector<320x4xbf16>, vector<4x16xbf16>, vector<320x16xf32> -> vector<320x16xf32>
    %c0_58 = arith.constant 0 : index
    %c0_59 = arith.constant 0 : index
    %74 = vector.load %arg10[%c0_58, %c0_59] : memref<1x16xf32, #tpu.memory_space<vmem>>, vector<1x16xf32>
    %75 = vector.broadcast %74 : vector<1x16xf32> to vector<320x16xf32>
    %76 = arith.addf %73, %75 : vector<320x16xf32>
    %c0_60 = arith.constant 0 : index
    %c0_61 = arith.constant 0 : index
    %c0_62 = arith.constant 0 : index
    %77 = vector.load %arg4[%c0_60, %c0_61, %c0_62] : memref<1x320x16xf32, #tpu.memory_space<vmem>>, vector<1x320x16xf32>
    %78 = vector.shape_cast %77 : vector<1x320x16xf32> to vector<320x16xf32>
    %79 = arith.addf %76, %78 : vector<320x16xf32>
    %cst_63 = arith.constant 0.000000e+00 : f32
    %80 = vector.broadcast %cst_63 : f32 to vector<320x16xf32>
    %81 = arith.maximumf %79, %80 : vector<320x16xf32>
    %82 = arith.truncf %81 : vector<320x16xf32> to vector<320x16xbf16>
    %c0_64 = arith.constant 0 : index
    %c0_65 = arith.constant 0 : index
    %c0_66 = arith.constant 0 : index
    %83 = vector.load %arg11[%c0_64, %c0_65, %c0_66] : memref<1x320x16xbf16, #tpu.memory_space<vmem>>, vector<1x320x16xbf16>
    %84 = vector.shape_cast %83 : vector<1x320x16xbf16> to vector<320x16xbf16>
    %85 = vector.shape_cast %82 : vector<320x16xbf16> to vector<1x320x16xbf16>
    tpu.vector_store %arg11[%c0_64, %c0_65, %c0_66], %85 {strides = array<i32>} : memref<1x320x16xbf16, #tpu.memory_space<vmem>>, vector<1x320x16xbf16>,
    return
  }
  func.func @transform_0(%arg0: i32, %arg1: i32) -> (i32, i32, i32) {
    %c0_i32 = arith.constant 0 : i32
    %c0_i32_0 = arith.constant 0 : i32
    %c0_i32_1 = arith.constant 0 : i32
    return %arg0, %c0_i32, %c0_i32_0 : i32, i32, i32
  }
  func.func @transform_1(%arg0: i32, %arg1: i32) -> (i32, i32) {
    %c0_i32 = arith.constant 0 : i32
    %c0_i32_0 = arith.constant 0 : i32
    %c0_i32_1 = arith.constant 0 : i32
    return %c0_i32, %c0_i32_0 : i32, i32
  }
  func.func @transform_2(%arg0: i32, %arg1: i32) -> (i32, i32, i32) {
    %c0_i32 = arith.constant 0 : i32
    %c0_i32_0 = arith.constant 0 : i32
    return %arg0, %arg1, %c0_i32 : i32, i32, i32
  }
  func.func @transform_3(%arg0: i32, %arg1: i32) -> (i32, i32) {
    %c0_i32 = arith.constant 0 : i32
    %c0_i32_0 = arith.constant 0 : i32
    %c0_i32_1 = arith.constant 0 : i32
    return %c0_i32, %c0_i32_0 : i32, i32
  }
  func.func @transform_4(%arg0: i32, %arg1: i32) -> (i32, i32) {
    %c0_i32 = arith.constant 0 : i32
    %c0_i32_0 = arith.constant 0 : i32
    %c0_i32_1 = arith.constant 0 : i32
    return %c0_i32, %c0_i32_0 : i32, i32
  }
  func.func @transform_5(%arg0: i32, %arg1: i32) -> (i32, i32, i32) {
    %c0_i32 = arith.constant 0 : i32
    %c0_i32_0 = arith.constant 0 : i32
    %c0_i32_1 = arith.constant 0 : i32
    %c0_i32_2 = arith.constant 0 : i32
    return %c0_i32, %c0_i32_0, %c0_i32_1 : i32, i32, i32
  }
  func.func @transform_6(%arg0: i32, %arg1: i32) -> (i32, i32) {
    %c0_i32 = arith.constant 0 : i32
    %c0_i32_0 = arith.constant 0 : i32
    %c0_i32_1 = arith.constant 0 : i32
    return %c0_i32, %c0_i32_0 : i32, i32
  }
  func.func @transform_7(%arg0: i32, %arg1: i32) -> (i32, i32) {
    %c0_i32 = arith.constant 0 : i32
    %c0_i32_0 = arith.constant 0 : i32
    %c0_i32_1 = arith.constant 0 : i32
    return %c0_i32, %c0_i32_0 : i32, i32
  }
  func.func @transform_8(%arg0: i32, %arg1: i32) -> (i32, i32) {
    %c0_i32 = arith.constant 0 : i32
    %c0_i32_0 = arith.constant 0 : i32
    %c0_i32_1 = arith.constant 0 : i32
    return %c0_i32, %c0_i32_0 : i32, i32
  }
  func.func @transform_9(%arg0: i32, %arg1: i32) -> (i32, i32, i32) {
    %c0_i32 = arith.constant 0 : i32
    %c0_i32_0 = arith.constant 0 : i32
    return %arg0, %arg1, %c0_i32 : i32, i32, i32
  }
}

</mosaic_0001>

<bundles_post_ra>
// kernel: tpu_custom_call.1
= control target key start
LH: loop header
LB: loop body
LE: loop exit
PB: predicated region body
PF: predicated region fallthrough
CT: control target
= control target key end

     0   :  { %s7544_s30 = smov 0   ;;  %s7546_s10 = smov 0   ;;  %s9947_s0 = inlined_call_operand.vmem [shape: bf16[2,400,16], index: 0, kind: input, shape index: {}]   ;;  %s9948_s1 = inlined_call_operand.vmem [shape: f32[400,1], index: 1, kind: input, shape index: {}]   ;;  %s9949_s2 = inlined_call_operand.vmem [shape: f32[2,320,16], index: 2, kind: input, shape index: {}]   ;;  %s9950_s3 = inlined_call_operand.vmem [shape: bf16[16,4], index: 3, kind: input, shape index: {}]   ;;  %s9951_s4 = inlined_call_operand.vmem [shape: f32[1,4], index: 4, kind: input, shape index: {}]   ;;  %s9952_s5 = inlined_call_operand.vmem [shape: bf16[9,4,4], index: 5, kind: input, shape index: {}]   ;;  %s9953_s6 = inlined_call_operand.vmem [shape: f32[1,4], index: 6, kind: input, shape index: {}]   ;;  %s9954_s7 = inlined_call_operand.vmem [shape: bf16[4,16], index: 7, kind: input, shape index: {}]   ;;  %s9955_s8 = inlined_call_operand.vmem [shape: f32[1,16], index: 8, kind: input, shape index: {}]   ;;  %s9956_s9 = inlined_call_operand.vmem [shape: bf16[2,320,16], index: 9, kind: output, shape index: {}]  }
   0x1   :  { %s7548_s11 = smov 0  }
   0x2 LB: > { %s31_s12 = sadd.s32 1, %s7485_s10  ;;  %p5943_p0 = scmp.ge.s32.totalorder %s7489_s11, 1  ;;  %s7489_s11 = sphi %s7548_s11, %s19_s11   ;;  %s7485_s10 = sphi %s7546_s10, %s10245_s10   ;;  %s7481_s30 = sphi %s7544_s30, %s10244_s30  }
   0x3   : > { %p33_p1 = scmp.ge.s32.totalorder %s31_s12, 2  ;;  %p318_p2 = scmp.lt.s32.totalorder %s7489_s11, 3 }
   0x5   : > { %s10247_s12 = smov (%p33_p1, %s31_s12), 0  ;;  %p319_p3 = pnand %p5943_p0, %p318_p2 }
   0x7   : > { %322 = sbr.rel (%p319_p3) target bundleno = 1209 (0x4b9), region = 56 }
   0xc   : > { %v7303_v0 = vld [vmem:[%s9950_s3] sm:$0xff]   ;;  %v7491_v1 = vmov 0.0   ;;  %p367_p4 = scmp.lt.s32.totalorder %s7481_s30, 1  ;;  %vm1498_vm0 = vcmask 27648   ;;  %v950_v2 = vld [vmem:[%s9948_s1 + $0x10] sm:$0xff]  ;;  %vm7492_vm1 = vmmov 0  }
   0xd   : > { %6737 = vmatprep.subr.bf16.mxu0 %v7491_v1  ;;  %7259 = vmatprep.subr.bf16.mxu1 %v7491_v1  ;;  %v7493_v3 = vmov 0   ;;  %v948_v4 = vld [vmem:[%s9948_s1] sm:$0xff]  ;;  %v951_v5 = vld [vmem:[%s9948_s1 + $0x18] sm:$0xff]  ;;  %v949_v6 = vld [vmem:[%s9948_s1 + $0x8] sm:$0xff]  ;;  %vm588_vm2 = vcmask 130048   ;;  %vm1804_vm3 = vcmask 1041408  }
   0xe   : > { %6738 = vmatpush3.bf16.msra.mxu0 %v7303_v0  ;;  %6739 = vmatprep.mubr.msk.bf16.mxu0 %vm7492_vm1, %v7491_v1  ;;  %1549 = vst.msk [vmem:[#allocation2 + $0xc8] sm:$0xf] %vm1498_vm0, %v7493_v3  ;;  %s10249_s30 = smov (!%p367_p4, %s7481_s30), 1  ;;  %v953_v7 = vld [vmem:[%s9948_s1 + $0x28] sm:$0xff]  ;;  %v952_v9 = vld [vmem:[%s9948_s1 + $0x20] sm:$0xff]  ;;  %v955_v10 = vld [vmem:[%s9948_s1 + $0x38] sm:$0xff] }
   0xf   : > { %7302 = vset.pattern.permute.xlu1 %v7493_v3  ;;  %7301 = vset.pattern.permute.xlu0 %v7493_v3  ;;  %s7271_s19 = smul.u32 200, %s10249_s30  ;;  %v954_v11 = vld [vmem:[%s9948_s1 + $0x30] sm:$0xff]  ;;  %v957_v13 = vld [vmem:[%s9948_s1 + $0x48] sm:$0xff]  ;;  %v956_v14 = vld [vmem:[%s9948_s1 + $0x40] sm:$0xff]  ;;  %vm1701_vm4 = vcmask 1046528   ;;  %vm1743_vm5 = vcmask 31744  }
  0x10   : > { %1010 = vperm.xlu1 %7302, %v950_v2   ;;  %1000 = vperm.xlu0 %7301, %v948_v4   ;;  %v959_v16 = vld [vmem:[%s9948_s1 + $0x58] sm:$0xff]  ;;  %v958_v17 = vld [vmem:[%s9948_s1 + $0x50] sm:$0xff]  ;;  %v961_v20 = vld [vmem:[%s9948_s1 + $0x68] sm:$0xff]  ;;  %vm2270_vm6 = vcmask 1045504   ;;  %s7272_s16 = smul.u32 320, %s10249_s30  ;;  %vm5795_vm7 = vcmask 125952  }
  0x11   : > { %7260 = vmatpush3.bf16.msra.mxu1 %v7303_v0  ;;  %6831 = vmatprep.mubr.msk.bf16.mxu1 %vm7492_vm1, %v7491_v1  ;;  %s7590_s26 = scalar_lea.vmem %s9947_s0, %s7271_s19  ;;  %v960_v21 = vld [vmem:[%s9948_s1 + $0x60] sm:$0xff]  ;;  %v963_v22 = vld [vmem:[%s9948_s1 + $0x78] sm:$0xff]  ;;  %v962_v23 = vld [vmem:[%s9948_s1 + $0x70] sm:$0xff]  ;;  %s7273_s22 = smul.u32 160, %s10249_s30 }
  0x12   : > { %v7304_v8 = vld [vmem:[%s7590_s26] sm:$0xff]   ;;  %v7305_v12 = vld [vmem:[%s7590_s26 + $0x8] sm:$0xff]   ;;  %v7313_v15 = vld [vmem:[%s7590_s26 + $0xb8] sm:$0xff]   ;;  %s9765_s19 = scalar_lea.vmem %s9949_s2, %s7272_s16 }
  0x13   : > { %6740 = vmatmul.mubr.msk.bf16.vlgmr.msra.gmra.mxu0 %vm588_vm2, %v7304_v8  ;;  %v7306_v18 = vld [vmem:[%s7590_s26 + $0x10] sm:$0xff]   ;;  %v7315_v19 = vld [vmem:[%s7590_s26 + $0xc0] sm:$0xff]   ;;  %v7307_v24 = vld [vmem:[%s7590_s26 + $0x18] sm:$0xff]   ;;  %s9782_s25 = scalar_lea.vmem %s9956_s9, %s7273_s22 }
  0x14   : > { %1015 = vperm.xlu1 %7302, %v951_v5   ;;  %1005 = vperm.xlu0 %7301, %v949_v6   ;;  %v965_v25 = vld [vmem:[%s9948_s1 + $0x88] sm:$0xff]  ;;  %v964_v26 = vld [vmem:[%s9948_s1 + $0x80] sm:$0xff]  ;;  %v967_v27 = vld [vmem:[%s9948_s1 + $0x98] sm:$0xff] }
  0x15   : > { %6743 = vmatprep.mubr.msk.bf16.mxu0 %vm7492_vm1, %v7491_v1  ;;  %6832 = vmatmul.mubr.msk.bf16.vlgmr.msra.gmra.mxu1 %vm588_vm2, %v7313_v15  ;;  %v966_v28 = vld [vmem:[%s9948_s1 + $0x90] sm:$0xff]  ;;  %v7308_v29 = vld [vmem:[%s7590_s26 + $0x20] sm:$0xff]   ;;  %v969_v30 = vld [vmem:[%s9948_s1 + $0xa8] sm:$0xff] }
  0x16   : > { %6835 = vmatprep.mubr.msk.bf16.mxu1 %vm7492_vm1, %v7491_v1  ;;  %v968_v31 = vld [vmem:[%s9948_s1 + $0xa0] sm:$0xff]  ;;  %v971_v32 = vld [vmem:[%s9948_s1 + $0xb8] sm:$0xff]  ;;  %v970_v33 = vld [vmem:[%s9948_s1 + $0xb0] sm:$0xff] }
  0x17   : > { %v7309_v34 = vld [vmem:[%s7590_s26 + $0x28] sm:$0xff]   ;;  %v972_v36 = vld [vmem:[%s9948_s1 + $0xc0] sm:$0xff]  ;;  %v975_v37 = vld [vmem:[%s9948_s1 + $0xd8] sm:$0xff] }
  0x18   : > { %1025 = vperm.xlu1 %7302, %v953_v7   ;;  %1020 = vperm.xlu0 %7301, %v952_v9   ;;  %v973_v35 = vld [vmem:[%s9948_s1 + $0xc8] sm:$0xff]  ;;  %v974_v38 = vld [vmem:[%s9948_s1 + $0xd0] sm:$0xff]  ;;  %v976_v41 = vld [vmem:[%s9948_s1 + $0xe0] sm:$0xff] }
  0x19   : > { %v7310_v39 = vld [vmem:[%s7590_s26 + $0x30] sm:$0xff]   ;;  %v977_v40 = vld [vmem:[%s9948_s1 + $0xe8] sm:$0xff]  ;;  %v979_v42 = vld [vmem:[%s9948_s1 + $0xf8] sm:$0xff] }
  0x1a   : > { %v978_v43 = vld [vmem:[%s9948_s1 + $0xf0] sm:$0xff]  ;;  %v7311_v44 = vld [vmem:[%s7590_s26 + $0x38] sm:$0xff]   ;;  %v981_v45 = vld [vmem:[%s9948_s1 + $0x108] sm:$0xff] }
  0x1b   : > { %6744 = vmatmul.mubr.msk.bf16.gmra.mxu0 %vm588_vm2, %v7305_v12  ;;  %v980_v46 = vld [vmem:[%s9948_s1 + $0x100] sm:$0xff]  ;;  %v983_v47 = vld [vmem:[%s9948_s1 + $0x118] sm:$0xff]  ;;  %v982_v48 = vld [vmem:[%s9948_s1 + $0x110] sm:$0xff] }
  0x1c   : > { %1035 = vperm.xlu1 %7302, %v955_v10   ;;  %1030 = vperm.xlu0 %7301, %v954_v11   ;;  %v7312_v49 = vld [vmem:[%s7590_s26 + $0x40] sm:$0xff]   ;;  %v985_v50 = vld [vmem:[%s9948_s1 + $0x128] sm:$0xff]  ;;  %v987_v52 = vld [vmem:[%s9948_s1 + $0x138] sm:$0xff] }
  0x1d   : > { %6747 = vmatprep.mubr.msk.bf16.mxu0 %vm7492_vm1, %v7491_v1  ;;  %6836 = vmatmul.mubr.msk.bf16.gmra.mxu1 %vm588_vm2, %v7315_v19  ;;  %v984_v51 = vld [vmem:[%s9948_s1 + $0x120] sm:$0xff]  ;;  %v986_v53 = vld [vmem:[%s9948_s1 + $0x130] sm:$0xff]  ;;  %v7314_v54 = vld [vmem:[%s7590_s26 + $0x48] sm:$0xff]  }
  0x1e   : > { %v989_v55 = vld [vmem:[%s9948_s1 + $0x148] sm:$0xff]  ;;  %v988_v56 = vld [vmem:[%s9948_s1 + $0x140] sm:$0xff]  ;;  %v991_v57 = vld [vmem:[%s9948_s1 + $0x158] sm:$0xff] }
  0x1f   : > { %v990_v58 = vld [vmem:[%s9948_s1 + $0x150] sm:$0xff]  ;;  %v993_v60 = vld [vmem:[%s9948_s1 + $0x168] sm:$0xff]  ;;  %v992_v61 = vld [vmem:[%s9948_s1 + $0x160] sm:$0xff] }
  0x20   : > { %1045 = vperm.xlu1 %7302, %v957_v13   ;;  %1040 = vperm.xlu0 %7301, %v956_v14   ;;  %v7316_v59 = vld [vmem:[%s7590_s26 + $0x50] sm:$0xff]   ;;  %v995_v62 = vld [vmem:[%s9948_s1 + $0x178] sm:$0xff]  ;;  %v997_v2 = vld [vmem:[%s9948_s1 + $0x188] sm:$0xff] }
  0x21   : > { %v994_v63 = vld [vmem:[%s9948_s1 + $0x170] sm:$0xff]  ;;  %v7317_v0 = vld [vmem:[%s7590_s26 + $0x58] sm:$0xff]   ;;  %v996_v3 = vld [vmem:[%s9948_s1 + $0x180] sm:$0xff] }
  0x22   : > { %v7318_v4 = vld [vmem:[%s7590_s26 + $0x60] sm:$0xff]   ;;  %v7319_v5 = vld [vmem:[%s7590_s26 + $0x68] sm:$0xff]   ;;  %v7320_v8 = vld [vmem:[%s7590_s26 + $0x70] sm:$0xff]  }
  0x23   : > { %6748 = vmatmul.mubr.msk.bf16.gmra.mxu0 %vm588_vm2, %v7306_v18  ;;  %v6049_v6 = vld [vmem:[%s9952_s5 + $0x2] sm:$0x3]  ;;  %v6135_v9 = vld [vmem:[%s9952_s5 + $0x6] sm:$0x3]  ;;  %v7321_v11 = vld [vmem:[%s7590_s26 + $0x78] sm:$0xff]  }
  0x24   : > { %1055 = vperm.xlu1 %7302, %v959_v16   ;;  %1050 = vperm.xlu0 %7301, %v958_v17   ;;  %v1806_v7 = vsel %vm1804_vm3, %v6049_v6, 0  ;;  %v2811_v10 = vsel %vm1804_vm3, %v6135_v9, 0  ;;  %v7322_v16 = vld [vmem:[%s7590_s26 + $0x80] sm:$0xff]  }
  0x25   : > { %6751 = vmatprep.mubr.msk.bf16.mxu0 %vm7492_vm1, %v7491_v1  ;;  %7261 = vmatprep.subr.msk.bf16.mxu1 %vm1804_vm3, %v6049_v6 }
  0x26   : > { %6840 = vmatpush3.bf16.msra.mxu1 %v1806_v7  ;;  %7264 = vmatprep.subr.msk.bf16.mxu0 %vm1804_vm3, %v6135_v9 }
  0x27   : > { %6966 = vmatpush3.bf16.msra.mxu0 %v2811_v10 }
  0x28   : > { %1065 = vperm.xlu1 %7302, %v961_v20   ;;  %1060 = vperm.xlu0 %7301, %v960_v21   ;;  %v7323_v21 = vld [vmem:[%s7590_s26 + $0x88] sm:$0xff]  }
  0x2b   : > { %6752 = vmatmul.mubr.msk.bf16.gmra.mxu0 %vm588_vm2, %v7307_v24 }
  0x2c   : > { %1075 = vperm.xlu1 %7302, %v963_v22   ;;  %1070 = vperm.xlu0 %7301, %v962_v23  }
  0x2d   : > { %6755 = vmatprep.mubr.msk.bf16.mxu0 %vm7492_vm1, %v7491_v1 }
  0x30   : > { %1085 = vperm.xlu1 %7302, %v965_v25   ;;  %1080 = vperm.xlu0 %7301, %v964_v26   ;;  %v7324_v26 = vld [vmem:[%s7590_s26 + $0x90] sm:$0xff]  }
  0x33   : > { %6756 = vmatmul.mubr.msk.bf16.gmra.mxu0 %vm588_vm2, %v7308_v29 }
  0x34   : > { %1095 = vperm.xlu1 %7302, %v967_v27   ;;  %1090 = vperm.xlu0 %7301, %v966_v28  }
  0x35   : > { %6759 = vmatprep.mubr.msk.bf16.mxu0 %vm7492_vm1, %v7491_v1 }
  0x38   : > { %1105 = vperm.xlu1 %7302, %v969_v30   ;;  %1100 = vperm.xlu0 %7301, %v968_v31   ;;  %v7325_v31 = vld [vmem:[%s7590_s26 + $0x98] sm:$0xff]  }
  0x3b   : > { %6760 = vmatmul.mubr.msk.bf16.gmra.mxu0 %vm588_vm2, %v7309_v34 }
  0x3c   : > { %1115 = vperm.xlu1 %7302, %v971_v32   ;;  %1110 = vperm.xlu0 %7301, %v970_v33  }
  0x3d   : > { %6763 = vmatprep.mubr.msk.bf16.mxu0 %vm7492_vm1, %v7491_v1 }
  0x40   : > { %1125 = vperm.xlu1 %7302, %v973_v35   ;;  %1120 = vperm.xlu0 %7301, %v972_v36   ;;  %v7326_v36 = vld [vmem:[%s7590_s26 + $0xa0] sm:$0xff]  }
  0x43   : > { %6764 = vmatmul.mubr.msk.bf16.gmra.mxu0 %vm588_vm2, %v7310_v39 }
  0x44   : > { %1135 = vperm.xlu1 %7302, %v975_v37   ;;  %1130 = vperm.xlu0 %7301, %v974_v38  }
  0x45   : > { %6767 = vmatprep.mubr.msk.bf16.mxu0 %vm7492_vm1, %v7491_v1 }
  0x48   : > { %1145 = vperm.xlu1 %7302, %v977_v40   ;;  %1140 = vperm.xlu0 %7301, %v976_v41   ;;  %v7327_v41 = vld [vmem:[%s7590_s26 + $0xa8] sm:$0xff]  }
  0x4b   : > { %6768 = vmatmul.mubr.msk.bf16.gmra.mxu0 %vm588_vm2, %v7311_v44 }
  0x4c   : > { %1155 = vperm.xlu1 %7302, %v979_v42   ;;  %1150 = vperm.xlu0 %7301, %v978_v43  }
  0x4d   : > { %6771 = vmatprep.mubr.msk.bf16.mxu0 %vm7492_vm1, %v7491_v1 }
  0x50   : > { %1165 = vperm.xlu1 %7302, %v981_v45   ;;  %1160 = vperm.xlu0 %7301, %v980_v46   ;;  %v7328_v46 = vld [vmem:[%s7590_s26 + $0xb0] sm:$0xff]  }
  0x53   : > { %6772 = vmatmul.mubr.msk.bf16.gmra.mxu0 %vm588_vm2, %v7312_v49 }
  0x54   : > { %1175 = vperm.xlu1 %7302, %v983_v47   ;;  %1170 = vperm.xlu0 %7301, %v982_v48  }
  0x55   : > { %6775 = vmatprep.mubr.msk.bf16.mxu0 %vm7492_vm1, %v7491_v1 }
  0x58   : > { %1185 = vperm.xlu1 %7302, %v985_v50   ;;  %1180 = vperm.xlu0 %7301, %v984_v51  }
  0x5b   : > { %6776 = vmatmul.mubr.msk.bf16.gmra.mxu0 %vm588_vm2, %v7314_v54 }
  0x5c   : > { %1195 = vperm.xlu1 %7302, %v987_v52   ;;  %1190 = vperm.xlu0 %7301, %v986_v53  }
  0x5d   : > { %6779 = vmatprep.mubr.msk.bf16.mxu0 %vm7492_vm1, %v7491_v1 }
  0x60   : > { %1205 = vperm.xlu1 %7302, %v989_v55   ;;  %1200 = vperm.xlu0 %7301, %v988_v56  }
  0x63   : > { %6780 = vmatmul.mubr.msk.bf16.gmra.mxu0 %vm588_vm2, %v7316_v59 }
  0x64   : > { %1215 = vperm.xlu1 %7302, %v991_v57   ;;  %1210 = vperm.xlu0 %7301, %v990_v58   ;;  %v7922_v57 = vld [vmem:[%s9951_s4] ss:$0 sm:$0xff] }
  0x65   : > { %6783 = vmatprep.mubr.msk.bf16.mxu0 %vm7492_vm1, %v7491_v1 }
  0x68   : > { %1225 = vperm.xlu1 %7302, %v993_v60   ;;  %1220 = vperm.xlu0 %7301, %v992_v61  }
  0x6b   : > { %6784 = vmatmul.mubr.msk.bf16.gmra.mxu0 %vm588_vm2, %v7317_v0 }
  0x6c   : > { %1235 = vperm.xlu1 %7302, %v995_v62   ;;  %1230 = vperm.xlu0 %7301, %v994_v63  }
  0x6d   : > { %6787 = vmatprep.mubr.msk.bf16.mxu0 %vm7492_vm1, %v7491_v1 }
  0x70   : > { %1245 = vperm.xlu1 %7302, %v997_v2   ;;  %1240 = vperm.xlu0 %7301, %v996_v3  }
  0x73   : > { %6788 = vmatmul.mubr.msk.bf16.gmra.mxu0 %vm588_vm2, %v7318_v4 }
  0x74   : > { %6791 = vmatprep.mubr.msk.bf16.mxu0 %vm7492_vm1, %v7491_v1 }
  0x7b   : > { %6792 = vmatmul.mubr.msk.bf16.gmra.mxu0 %vm588_vm2, %v7319_v5 }
  0x7c   : > { %6795 = vmatprep.mubr.msk.bf16.mxu0 %vm7492_vm1, %v7491_v1 }
  0x83   : > { %6796 = vmatmul.mubr.msk.bf16.gmra.mxu0 %vm588_vm2, %v7320_v8 }
  0x84   : > { %6799 = vmatprep.mubr.msk.bf16.mxu0 %vm7492_vm1, %v7491_v1 }
  0x8b   : > { %v7807_v12 = vpop.permute.xlu1 %1010  ;;  %v7809_v13 = vpop.permute.xlu0 %1000  ;;  %6800 = vmatmul.mubr.msk.bf16.gmra.mxu0 %vm588_vm2, %v7321_v11 }
  0x8c   : > { %6803 = vmatprep.mubr.msk.bf16.mxu0 %vm7492_vm1, %v7491_v1 }
  0x8f   : > { %v7814_v14 = vpop.permute.xlu1 %1015  ;;  %v7816_v15 = vpop.permute.xlu0 %1005 }
  0x93   : > { %v7819_v17 = vpop.permute.xlu1 %1025  ;;  %v7821_v18 = vpop.permute.xlu0 %1020  ;;  %6804 = vmatmul.mubr.msk.bf16.gmra.mxu0 %vm588_vm2, %v7322_v16 }
  0x94   : > { %6807 = vmatprep.mubr.msk.bf16.mxu0 %vm7492_vm1, %v7491_v1 }
  0x97   : > { %v7826_v19 = vpop.permute.xlu1 %1035  ;;  %v7828_v20 = vpop.permute.xlu0 %1030 }
  0x9b   : > { %v7831_v22 = vpop.permute.xlu1 %1045  ;;  %v7833_v23 = vpop.permute.xlu0 %1040  ;;  %6808 = vmatmul.mubr.msk.bf16.gmra.mxu0 %vm588_vm2, %v7323_v21 }
  0x9c   : > { %6811 = vmatprep.mubr.msk.bf16.mxu0 %vm7492_vm1, %v7491_v1 }
  0x9f   : > { %v7838_v24 = vpop.permute.xlu1 %1055  ;;  %v7840_v25 = vpop.permute.xlu0 %1050 }
  0xa3   : > { %v7843_v27 = vpop.permute.xlu1 %1065  ;;  %v7845_v28 = vpop.permute.xlu0 %1060  ;;  %6812 = vmatmul.mubr.msk.bf16.gmra.mxu0 %vm588_vm2, %v7324_v26 }
  0xa4   : > { %6815 = vmatprep.mubr.msk.bf16.mxu0 %vm7492_vm1, %v7491_v1 }
  0xa7   : > { %v7850_v29 = vpop.permute.xlu1 %1075  ;;  %v7852_v30 = vpop.permute.xlu0 %1070 }
  0xab   : > { %v7855_v32 = vpop.permute.xlu1 %1085  ;;  %v7857_v33 = vpop.permute.xlu0 %1080  ;;  %6816 = vmatmul.mubr.msk.bf16.gmra.mxu0 %vm588_vm2, %v7325_v31 }
  0xac   : > { %6819 = vmatprep.mubr.msk.bf16.mxu0 %vm7492_vm1, %v7491_v1 }
  0xaf   : > { %v7862_v34 = vpop.permute.xlu1 %1095  ;;  %v7864_v35 = vpop.permute.xlu0 %1090 }
  0xb3   : > { %v7867_v37 = vpop.permute.xlu1 %1105  ;;  %v7869_v38 = vpop.permute.xlu0 %1100  ;;  %6820 = vmatmul.mubr.msk.bf16.gmra.mxu0 %vm588_vm2, %v7326_v36 }
  0xb4   : > { %6823 = vmatprep.mubr.msk.bf16.mxu0 %vm7492_vm1, %v7491_v1 }
  0xb7   : > { %v7874_v39 = vpop.permute.xlu1 %1115  ;;  %v7876_v40 = vpop.permute.xlu0 %1110 }
  0xbb   : > { %v7879_v42 = vpop.permute.xlu1 %1125  ;;  %v7881_v43 = vpop.permute.xlu0 %1120  ;;  %6824 = vmatmul.mubr.msk.bf16.gmra.mxu0 %vm588_vm2, %v7327_v41 }
  0xbc   : > { %6827 = vmatprep.mubr.msk.bf16.mxu0 %vm7492_vm1, %v7491_v1  ;;  %v7907_v1 = vld [vmem:[%s9952_s5] sm:$0x3] }
  0xbd   : > { %7262 = vmatprep.subr.msk.bf16.mxu1 %vm1804_vm3, %v7907_v1 }
  0xbf   : > { %v7886_v44 = vpop.permute.xlu1 %1135  ;;  %v7888_v45 = vpop.permute.xlu0 %1130 }
  0xc3   : > { %v7891_v47 = vpop.permute.xlu1 %1145  ;;  %v7893_v48 = vpop.permute.xlu0 %1140  ;;  %6828 = vmatmul.mubr.msk.bf16.gmra.mxu0 %vm588_vm2, %v7328_v46 }
  0xc7   : > { %v7896_v49 = vpop.permute.xlu1 %1155  ;;  %v7898_v50 = vpop.permute.xlu0 %1150 }
  0xcb   : > { %v7900_v51 = vpop.permute.xlu1 %1165  ;;  %v7902_v52 = vpop.permute.xlu0 %1160 }
  0xcf   : > { %v7911_v53 = vpop.permute.xlu1 %1175  ;;  %v7913_v54 = vpop.permute.xlu0 %1170 }
  0xd3   : > { %v7915_v55 = vpop.permute.xlu1 %1185  ;;  %v7917_v56 = vpop.permute.xlu0 %1180 }
  0xd4   : > { %v698_v58 = vpop.f32.mrf.mxu0 }
  0xd5   : > { %v699_v59 = vadd.f32 %v7922_v57, %v698_v58  ;;  %v882_v16 = vpop.f32.mrf.mxu1 }
  0xd6   : > { %v6741_v62 = vpop.f32.mrf.mxu0  ;;  %v883_v41 = vadd.f32 %v7922_v57, %v882_v16 }
  0xd7   : > { %v7925_v60 = vpop.permute.xlu1 %1195  ;;  %v7927_v61 = vpop.permute.xlu0 %1190  ;;  %v897_v63 = vmax.f32 %v699_v59, 0.0 }
  0xd8   : > { %v701_v0 = vpop.f32.mrf.mxu0  ;;  %v6833_v46 = vpop.f32.mrf.mxu1 }
  0xd9   : > { %v1248_v2 = vmul.f32 %v7809_v13, %v897_v63  ;;  %v702_v3 = vadd.f32 %v7922_v57, %v701_v0 }
  0xda   : > { %v6742_v6 = vpop.f32.mrf.mxu0  ;;  %v885_v62 = vpop.f32.mrf.mxu1 }
  0xdb   : > { %v7931_v4 = vpop.permute.xlu1 %1205  ;;  %v7933_v5 = vpop.permute.xlu0 %1200  ;;  %v6411_v7 = vpack.c.bf16 %v1248_v2, %v1248_v2  ;;  %v898_v8 = vmax.f32 %v702_v3, 0.0  ;;  %v886_v2 = vadd.f32 %v7922_v57, %v885_v62 }
  0xdc   : > { %v706_v9 = vpop.f32.mrf.mxu0 }
  0xdd   : > { %1499 = vst.msk [vmem:[#allocation2] sm:$0xf] %vm1498_vm0, %v6411_v7  ;;  %v1249_v10 = vmul.f32 %v7816_v15, %v898_v8  ;;  %v707_v11 = vadd.f32 %v7922_v57, %v706_v9  ;;  %v943_v8 = vmax.f32 %v883_v41, 0.0  ;;  %v6834_v9 = vpop.f32.mrf.mxu1 }
  0xde   : > { %v6745_v13 = vpop.f32.mrf.mxu0 }
  0xdf   : > { %v7938_v21 = vpop.permute.xlu1 %1215  ;;  %v7940_v26 = vpop.permute.xlu0 %1210  ;;  %v6412_v31 = vpack.c.bf16 %v1249_v10, %v1249_v10  ;;  %v899_v36 = vmax.f32 %v707_v11, 0.0  ;;  %v944_v11 = vmax.f32 %v886_v2, 0.0 }
  0xe0   : > { %v709_v58 = vpop.f32.mrf.mxu0  ;;  %v890_v13 = vpop.f32.mrf.mxu1 }
  0xe1   : > { %1500 = vst.msk [vmem:[#allocation2 + $0x4] sm:$0xf] %vm1498_vm0, %v6412_v31  ;;  %v1250_v59 = vmul.f32 %v7807_v12, %v899_v36  ;;  %v710_v15 = vadd.f32 %v7922_v57, %v709_v58  ;;  %v891_v46 = vadd.f32 %v7922_v57, %v890_v13 }
  0xe2   : > { %v6746_v0 = vpop.f32.mrf.mxu0 }
  0xe3   : > { %v7946_v63 = vpop.permute.xlu1 %1225  ;;  %v7949_v3 = vpop.permute.xlu0 %1220  ;;  %v6413_v6 = vpack.c.bf16 %v1250_v59, %v1250_v59  ;;  %v900_v7 = vmax.f32 %v710_v15, 0.0 }
  0xe4   : > { %9961 = vst [vmem:[#allocation3_spill] sm:$0xff] %v7946_v63  ;;  %v714_v10 = vpop.f32.mrf.mxu0  ;;  %v6837_v15 = vpop.f32.mrf.mxu1  ;;  %v945_v63 = vmax.f32 %v891_v46, 0.0 }
  0xe5   : > { %1501 = vst.msk [vmem:[#allocation2 + $0x8] sm:$0xf] %vm1498_vm0, %v6413_v6  ;;  %v1251_v12 = vmul.f32 %v7814_v14, %v900_v7  ;;  %v715_v16 = vadd.f32 %v7922_v57, %v714_v10  ;;  %v1594_v15 = vld [vmem:[#allocation2] sm:$0xe] }
  0xe6   : > { %v6749_v36 = vpop.f32.mrf.mxu0  ;;  %v893_v10 = vpop.f32.mrf.mxu1 }
  0xe7   : > { %v1236_v31 = vpop.permute.xlu1 %1235  ;;  %v1231_v62 = vpop.permute.xlu0 %1230  ;;  %v6414_v0 = vpack.c.bf16 %v1251_v12, %v1251_v12  ;;  %v901_v59 = vmax.f32 %v715_v16, 0.0 }
  0xe8   : > { %v1295_v58 = vmul.f32 %v1236_v31, %v944_v11  ;;  %v1294_v41 = vmul.f32 %v1231_v62, %v943_v8  ;;  %v717_v9 = vpop.f32.mrf.mxu0  ;;  %v894_v11 = vadd.f32 %v7922_v57, %v893_v10  ;;  %v1554_v8 = vld [vmem:[#allocation2 + $0x4] sm:$0xf] }
  0xe9   : > { %1502 = vst.msk [vmem:[#allocation2 + $0xc] sm:$0xf] %vm1498_vm0, %v6414_v0  ;;  %v1252_v14 = vmul.f32 %v7821_v18, %v901_v59  ;;  %v718_v6 = vadd.f32 %v7922_v57, %v717_v9 }
  0xea   : > { %v6458_v2 = vpack.c.bf16 %v1295_v58, %v1295_v58  ;;  %v6457_v7 = vpack.c.bf16 %v1294_v41, %v1294_v41  ;;  %v6750_v36 = vpop.f32.mrf.mxu0  ;;  %v6838_v58 = vpop.f32.mrf.mxu1  ;;  %v946_v18 = vmax.f32 %v894_v11, 0.0 }
  0xeb   : > { %v1241_v12 = vpop.permute.xlu0 %1240  ;;  %v6415_v16 = vpack.c.bf16 %v1252_v14, %v1252_v14  ;;  %v902_v13 = vmax.f32 %v718_v6, 0.0  ;;  %v1246_v31 = vpop.permute.xlu1 %1245 }
  0xec   : > { %1546 = vst.msk [vmem:[#allocation2 + $0xbc] sm:$0xf] %vm1498_vm0, %v6458_v2  ;;  %1545 = vst.msk [vmem:[#allocation2 + $0xb8] sm:$0xf] %vm1498_vm0, %v6457_v7  ;;  %v1296_v46 = vmul.f32 %v1241_v12, %v945_v63  ;;  %v722_v62 = vpop.f32.mrf.mxu0  ;;  %v6050_v2 = vcombine.low %v1594_v15, %v1554_v8  ;;  %v1297_v14 = vmul.f32 %v1246_v31, %v946_v18 }
  0xed   : > { %1503 = vst.msk [vmem:[#allocation2 + $0x10] sm:$0xf] %vm1498_vm0, %v6415_v16  ;;  %v1253_v0 = vmul.f32 %v7819_v17, %v902_v13  ;;  %v723_v59 = vadd.f32 %v7922_v57, %v722_v62 }
  0xee   : > { %v6459_v41 = vpack.c.bf16 %v1296_v46, %v1296_v46  ;;  %v6753_v9 = vpop.f32.mrf.mxu0  ;;  %v6460_v36 = vpack.c.bf16 %v1297_v14, %v1297_v14  ;;  %v1702_v16 = vrot.slane %v6050_v2, 1 }
  0xef   : > { %v6416_v6 = vpack.c.bf16 %v1253_v0, %v1253_v0  ;;  %v903_v10 = vmax.f32 %v723_v59, 0.0 }
  0xf0   : > { %1547 = vst.msk [vmem:[#allocation2 + $0xc0] sm:$0xf] %vm1498_vm0, %v6459_v41  ;;  %v725_v7 = vpop.f32.mrf.mxu0  ;;  %v7330_v63 = vld [vmem:[#allocation2 + $0x8] sm:$0xff]   ;;  %1548 = vst.msk [vmem:[#allocation2 + $0xc4] sm:$0xf] %vm1498_vm0, %v6460_v36  ;;  %v2065_v36 = vsel %vm1804_vm3, %v7907_v1, 0 }
  0xf1   : > { %1504 = vst.msk [vmem:[#allocation2 + $0x14] sm:$0xf] %vm1498_vm0, %v6416_v6  ;;  %v1254_v11 = vmul.f32 %v7828_v20, %v903_v10  ;;  %v726_v17 = vadd.f32 %v7922_v57, %v725_v7  ;;  %v1703_v13 = vrot.slane %v7330_v63, 1 }
  0xf2   : > { %v6754_v12 = vpop.f32.mrf.mxu0 }
  0xf3   : > { %v6417_v8 = vpack.c.bf16 %v1254_v11, %v1254_v11  ;;  %v904_v31 = vmax.f32 %v726_v17, 0.0  ;;  %v1704_v58 = vsel %vm1701_vm4, %v1702_v16, %v1703_v13  ;;  %v7974_v15 = vld [vmem:[#allocation2 + $0xb8] sm:$0xff]  }
  0xf4   : > { %v730_v46 = vpop.f32.mrf.mxu0  ;;  %6841 = vmatprep.mubr.msk.bf16.mxu1 %vm1743_vm5, %v1704_v58  ;;  %v9958_v11 = vrot.slane %v7974_v15, 2 }
  0xf5   : > { %1505 = vst.msk [vmem:[#allocation2 + $0x18] sm:$0xf] %vm1498_vm0, %v6417_v8  ;;  %v1255_v62 = vmul.f32 %v7826_v19, %v904_v31  ;;  %v731_v20 = vadd.f32 %v7922_v57, %v730_v46 }
  0xf6   : > { %v6757_v18 = vpop.f32.mrf.mxu0 }
  0xf7   : > { %v6418_v0 = vpack.c.bf16 %v1255_v62, %v1255_v62  ;;  %v905_v59 = vmax.f32 %v731_v20, 0.0  ;;  %v7979_v19 = vld [vmem:[#allocation2 + $0xc0] sm:$0xff]  }
  0xf8   : > { %v733_v41 = vpop.f32.mrf.mxu0  ;;  %v7331_v9 = vld [vmem:[#allocation2 + $0x10] sm:$0xff]   ;;  %9962 = vst [vmem:[#allocation4_spill] sm:$0xff] %v7979_v19  ;;  %v9957_v31 = vrot.slane %v7979_v19, 2 }
  0xf9   : > { %1506 = vst.msk [vmem:[#allocation2 + $0x1c] sm:$0xf] %vm1498_vm0, %v6418_v0  ;;  %v1256_v2 = vmul.f32 %v7833_v23, %v905_v59  ;;  %v734_v14 = vadd.f32 %v7922_v57, %v733_v41  ;;  %v1705_v10 = vrot.slane %v7331_v9, 1  ;;  %v3046_v9 = vld [vmem:[#allocation2 + $0x14] sm:$0xe] }
  0xfa   : > { %v6758_v6 = vpop.f32.mrf.mxu0 }
  0xfb   : > { %v6419_v7 = vpack.c.bf16 %v1256_v2, %v1256_v2  ;;  %v906_v63 = vmax.f32 %v734_v14, 0.0  ;;  %v1706_v12 = vsel %vm1701_vm4, %v1703_v13, %v1705_v10 }
  0xfc   : > { %v738_v17 = vpop.f32.mrf.mxu0  ;;  %v7332_v16 = vld [vmem:[#allocation2 + $0x14] sm:$0xff]   ;;  %6842 = vmatmul.mubr.msk.bf16.vlgmr.msra.gmra.mxu1 %vm1743_vm5, %v1706_v12 }
  0xfd   : > { %1507 = vst.msk [vmem:[#allocation2 + $0x20] sm:$0xf] %vm1498_vm0, %v6419_v7  ;;  %v1257_v23 = vmul.f32 %v7831_v22, %v906_v63  ;;  %v739_v8 = vadd.f32 %v7922_v57, %v738_v17  ;;  %6967 = vmatprep.mubr.msk.bf16.mxu0 %vm1743_vm5, %v7332_v16  ;;  %6882 = vmatpush3.bf16.msra.mxu1 %v2065_v36  ;;  %v3047_v62 = vld [vmem:[#allocation2 + $0x18] sm:$0xf] }
  0xfe   : > { %v6761_v46 = vpop.f32.mrf.mxu0  ;;  %v7996_v22 = vsel %vm2270_vm6, %v9958_v11, %v9957_v31  ;;  %v6177_v6 = vcombine.low %v3046_v9, %v3047_v62 }
  0xff   : > { %v6420_v1 = vpack.c.bf16 %v1257_v23, %v1257_v23  ;;  %v907_v58 = vmax.f32 %v739_v8, 0.0  ;;  %9963 = vst [vmem:[#allocation5_spill] sm:$0xff] %v7996_v22 }
 0x100   : > { %v741_v13 = vpop.f32.mrf.mxu0  ;;  %v7333_v20 = vld [vmem:[#allocation2 + $0x18] sm:$0xff]   ;;  %v3192_v46 = vrot.slane %v6177_v6, 1 }
 0x101   : > { %1508 = vst.msk [vmem:[#allocation2 + $0x24] sm:$0xf] %vm1498_vm0, %v6420_v1  ;;  %v1258_v18 = vmul.f32 %v7840_v25, %v907_v58  ;;  %v742_v0 = vadd.f32 %v7922_v57, %v741_v13  ;;  %v1707_v41 = vrot.slane %v7333_v20, 1 }
 0x102   : > { %v6762_v59 = vpop.f32.mrf.mxu0 }
 0x103   : > { %v6421_v2 = vpack.c.bf16 %v1258_v18, %v1258_v18  ;;  %v908_v14 = vmax.f32 %v742_v0, 0.0  ;;  %v1708_v63 = vsel %vm1701_vm4, %v1705_v10, %v1707_v41 }
 0x104   : > { %v746_v7 = vpop.f32.mrf.mxu0  ;;  %v7334_v36 = vld [vmem:[#allocation2 + $0x1c] sm:$0xff]   ;;  %6845 = vmatprep.mubr.msk.bf16.mxu1 %vm1743_vm5, %v1708_v63 }
 0x105   : > { %1509 = vst.msk [vmem:[#allocation2 + $0x28] sm:$0xf] %vm1498_vm0, %v6421_v2  ;;  %v1259_v17 = vmul.f32 %v7838_v24, %v908_v14  ;;  %v747_v12 = vadd.f32 %v7922_v57, %v746_v7  ;;  %v7370_v25 = vld [vmem:[#allocation2 + $0x1c] sm:$0xff]   ;;  %6968 = vmatmul.mubr.msk.bf16.vlgmr.msra.gmra.mxu0 %vm1743_vm5, %v7334_v36 }
 0x106   : > { %v6765_v16 = vpop.f32.mrf.mxu0  ;;  %v3193_v1 = vrot.slane %v7370_v25, 1 }
 0x107   : > { %v6422_v23 = vpack.c.bf16 %v1259_v17, %v1259_v17  ;;  %v909_v8 = vmax.f32 %v747_v12, 0.0 }
 0x108   : > { %v749_v58 = vpop.f32.mrf.mxu0  ;;  %v7335_v62 = vld [vmem:[#allocation2 + $0x20] sm:$0xff]   ;;  %v8011_v13 = vsel %vm1701_vm4, %v3192_v46, %v3193_v1 }
 0x109   : > { %1510 = vst.msk [vmem:[#allocation2 + $0x2c] sm:$0xf] %vm1498_vm0, %v6422_v23  ;;  %v1260_v10 = vmul.f32 %v7845_v28, %v909_v8  ;;  %v750_v24 = vadd.f32 %v7922_v57, %v749_v58  ;;  %v1709_v18 = vrot.slane %v7335_v62, 1 }
 0x10a   : > { %v6766_v20 = vpop.f32.mrf.mxu0 }
 0x10b   : > { %v6423_v0 = vpack.c.bf16 %v1260_v10, %v1260_v10  ;;  %v910_v59 = vmax.f32 %v750_v24, 0.0  ;;  %v1710_v2 = vsel %vm1701_vm4, %v1707_v41, %v1709_v18 }
 0x10c   : > { %v754_v9 = vpop.f32.mrf.mxu0  ;;  %v7336_v14 = vld [vmem:[#allocation2 + $0x24] sm:$0xff]   ;;  %6846 = vmatmul.mubr.msk.bf16.gmra.mxu1 %vm1743_vm5, %v1710_v2 }
 0x10d   : > { %1511 = vst.msk [vmem:[#allocation2 + $0x30] sm:$0xf] %vm1498_vm0, %v6423_v0  ;;  %v1261_v6 = vmul.f32 %v7843_v27, %v910_v59  ;;  %v755_v7 = vadd.f32 %v7922_v57, %v754_v9  ;;  %v7372_v28 = vld [vmem:[#allocation2 + $0x24] sm:$0xff]   ;;  %6971 = vmatprep.mubr.msk.bf16.mxu0 %vm1743_vm5, %v7336_v14 }
 0x10e   : > { %v6769_v63 = vpop.f32.mrf.mxu0  ;;  %v3195_v12 = vrot.slane %v7372_v28, 1  ;;  %v6112_v27 = vld [vmem:[%s9952_s5 + $0x4] sm:$0x3]  ;;  %v4797_v14 = vld [vmem:[#allocation2 + $0x28] sm:$0xc] }
 0x10f   : > { %v6424_v36 = vpack.c.bf16 %v1261_v6, %v1261_v6  ;;  %v911_v17 = vmax.f32 %v755_v7, 0.0  ;;  %7263 = vmatprep.subr.msk.bf16.mxu1 %vm1804_vm3, %v6112_v27  ;;  %v6218_v27 = vld [vmem:[%s9952_s5 + $0xa] sm:$0x3] }
 0x110   : > { %v757_v25 = vpop.f32.mrf.mxu0  ;;  %v7337_v16 = vld [vmem:[#allocation2 + $0x28] sm:$0xff]   ;;  %v8026_v8 = vsel %vm1701_vm4, %v3193_v1, %v3195_v12  ;;  %7266 = vmatprep.subr.msk.bf16.mxu0 %vm1804_vm3, %v6218_v27 }
 0x111   : > { %1512 = vst.msk [vmem:[#allocation2 + $0x34] sm:$0xf] %vm1498_vm0, %v6424_v36  ;;  %v1262_v41 = vmul.f32 %v7852_v30, %v911_v17  ;;  %v758_v23 = vadd.f32 %v7922_v57, %v757_v25  ;;  %v1711_v58 = vrot.slane %v7337_v16, 1  ;;  %v4315_v24 = vld [vmem:[#allocation2 + $0x2c] sm:$0xf] }
 0x112   : > { %v6770_v46 = vpop.f32.mrf.mxu0  ;;  %v6325_v63 = vcombine.low %v4797_v14, %v4315_v24 }
 0x113   : > { %v6425_v62 = vpack.c.bf16 %v1262_v41, %v1262_v41  ;;  %v912_v10 = vmax.f32 %v758_v23, 0.0  ;;  %v1712_v0 = vsel %vm1701_vm4, %v1709_v18, %v1711_v58 }
 0x114   : > { %v762_v20 = vpop.f32.mrf.mxu0  ;;  %v7338_v30 = vld [vmem:[#allocation2 + $0x2c] sm:$0xff]   ;;  %6849 = vmatprep.mubr.msk.bf16.mxu1 %vm1743_vm5, %v1712_v0  ;;  %v4807_v24 = vrot.slane %v6325_v63, 2 }
 0x115   : > { %1513 = vst.msk [vmem:[#allocation2 + $0x38] sm:$0xf] %vm1498_vm0, %v6425_v62  ;;  %v1263_v59 = vmul.f32 %v7850_v29, %v912_v10  ;;  %v763_v9 = vadd.f32 %v7922_v57, %v762_v20  ;;  %v7373_v1 = vld [vmem:[#allocation2 + $0x2c] sm:$0xff]   ;;  %6972 = vmatmul.mubr.msk.bf16.gmra.mxu0 %vm1743_vm5, %v7338_v30  ;;  %v3641_v10 = vsel %vm1804_vm3, %v6218_v27, 0 }
 0x116   : > { %v6773_v2 = vpop.f32.mrf.mxu0  ;;  %v3197_v28 = vrot.slane %v7373_v1, 1  ;;  %7050 = vmatpush3.bf16.msra.mxu0 %v3641_v10 }
 0x117   : > { %v6426_v6 = vpack.c.bf16 %v1263_v59, %v1263_v59  ;;  %v913_v7 = vmax.f32 %v763_v9, 0.0 }
 0x118   : > { %v765_v36 = vpop.f32.mrf.mxu0  ;;  %v7339_v18 = vld [vmem:[#allocation2 + $0x30] sm:$0xff]   ;;  %v8039_v16 = vsel %vm1701_vm4, %v3195_v12, %v3197_v28 }
 0x119   : > { %1514 = vst.msk [vmem:[#allocation2 + $0x3c] sm:$0xf] %vm1498_vm0, %v6426_v6  ;;  %v1264_v17 = vmul.f32 %v7857_v33, %v913_v7  ;;  %v766_v29 = vadd.f32 %v7922_v57, %v765_v36  ;;  %v7392_v25 = vld [vmem:[#allocation2 + $0x30] sm:$0xff]   ;;  %v1713_v23 = vrot.slane %v7339_v18, 1 }
 0x11a   : > { %v6774_v41 = vpop.f32.mrf.mxu0  ;;  %v4808_v12 = vrot.slane %v7392_v25, 2 }
 0x11b   : > { %v6427_v46 = vpack.c.bf16 %v1264_v17, %v1264_v17  ;;  %v914_v62 = vmax.f32 %v766_v29, 0.0  ;;  %v1714_v20 = vsel %vm1701_vm4, %v1711_v58, %v1713_v23 }
 0x11c   : > { %v770_v33 = vpop.f32.mrf.mxu0  ;;  %v7340_v0 = vld [vmem:[#allocation2 + $0x34] sm:$0xff]   ;;  %6850 = vmatmul.mubr.msk.bf16.gmra.mxu1 %vm1743_vm5, %v1714_v20  ;;  %v8053_v2 = vsel %vm2270_vm6, %v4807_v24, %v4808_v12 }
 0x11d   : > { %1515 = vst.msk [vmem:[#allocation2 + $0x40] sm:$0xf] %vm1498_vm0, %v6427_v46  ;;  %v1265_v30 = vmul.f32 %v7855_v32, %v914_v62  ;;  %v771_v59 = vadd.f32 %v7922_v57, %v770_v33  ;;  %v7374_v9 = vld [vmem:[#allocation2 + $0x34] sm:$0xff]   ;;  %6975 = vmatprep.mubr.msk.bf16.mxu0 %vm1743_vm5, %v7340_v0  ;;  %9964 = vst [vmem:[#allocation6_spill] sm:$0xff] %v8053_v2 }
 0x11e   : > { %v6777_v1 = vpop.f32.mrf.mxu0  ;;  %v3199_v6 = vrot.slane %v7374_v9, 1 }
 0x11f   : > { %v6428_v14 = vpack.c.bf16 %v1265_v30, %v1265_v30  ;;  %v915_v58 = vmax.f32 %v771_v59, 0.0 }
 0x120   : > { %v773_v7 = vpop.f32.mrf.mxu0  ;;  %v7341_v63 = vld [vmem:[#allocation2 + $0x38] sm:$0xff]   ;;  %v8059_v17 = vsel %vm1701_vm4, %v3197_v28, %v3199_v6 }
 0x121   : > { %1516 = vst.msk [vmem:[#allocation2 + $0x44] sm:$0xf] %vm1498_vm0, %v6428_v14  ;;  %v1266_v32 = vmul.f32 %v7864_v35, %v915_v58  ;;  %v774_v36 = vadd.f32 %v7922_v57, %v773_v7  ;;  %v7393_v18 = vld [vmem:[#allocation2 + $0x38] sm:$0xff]   ;;  %v1715_v25 = vrot.slane %v7341_v63, 1 }
 0x122   : > { %v6778_v29 = vpop.f32.mrf.mxu0  ;;  %v4810_v46 = vrot.slane %v7393_v18, 2 }
 0x123   : > { %v6429_v41 = vpack.c.bf16 %v1266_v32, %v1266_v32  ;;  %v916_v27 = vmax.f32 %v774_v36, 0.0  ;;  %v1716_v10 = vsel %vm1701_vm4, %v1713_v23, %v1715_v25 }
 0x124   : > { %v778_v62 = vpop.f32.mrf.mxu0  ;;  %v7342_v24 = vld [vmem:[#allocation2 + $0x3c] sm:$0xff]   ;;  %6853 = vmatprep.mubr.msk.bf16.mxu1 %vm1743_vm5, %v1716_v10  ;;  %v8067_v28 = vsel %vm2270_vm6, %v4808_v12, %v4810_v46 }
 0x125   : > { %1517 = vst.msk [vmem:[#allocation2 + $0x48] sm:$0xf] %vm1498_vm0, %v6429_v41  ;;  %v1267_v33 = vmul.f32 %v7862_v34, %v916_v27  ;;  %v779_v35 = vadd.f32 %v7922_v57, %v778_v62  ;;  %v7375_v20 = vld [vmem:[#allocation2 + $0x3c] sm:$0xff]   ;;  %9965 = vst [vmem:[#allocation7_spill] sm:$0xff] %v8067_v28  ;;  %6976 = vmatmul.mubr.msk.bf16.gmra.mxu0 %vm1743_vm5, %v7342_v24 }
 0x126   : > { %v6781_v0 = vpop.f32.mrf.mxu0  ;;  %v3201_v9 = vrot.slane %v7375_v20, 1 }
 0x127   : > { %v6430_v30 = vpack.c.bf16 %v1267_v33, %v1267_v33  ;;  %v917_v59 = vmax.f32 %v779_v35, 0.0 }
 0x128   : > { %v781_v23 = vpop.f32.mrf.mxu0  ;;  %v7343_v1 = vld [vmem:[#allocation2 + $0x40] sm:$0xff]   ;;  %v8074_v7 = vsel %vm1701_vm4, %v3199_v6, %v3201_v9 }
 0x129   : > { %1518 = vst.msk [vmem:[#allocation2 + $0x4c] sm:$0xf] %vm1498_vm0, %v6430_v30  ;;  %v1268_v34 = vmul.f32 %v7869_v38, %v917_v59  ;;  %v782_v14 = vadd.f32 %v7922_v57, %v781_v23  ;;  %v7394_v58 = vld [vmem:[#allocation2 + $0x40] sm:$0xff]   ;;  %v1717_v63 = vrot.slane %v7343_v1, 1 }
 0x12a   : > { %v6782_v12 = vpop.f32.mrf.mxu0  ;;  %v4812_v18 = vrot.slane %v7394_v58, 2 }
 0x12b   : > { %v6431_v32 = vpack.c.bf16 %v1268_v34, %v1268_v34  ;;  %v918_v36 = vmax.f32 %v782_v14, 0.0  ;;  %v1718_v41 = vsel %vm1701_vm4, %v1715_v25, %v1717_v63 }
 0x12c   : > { %v786_v29 = vpop.f32.mrf.mxu0  ;;  %v7344_v27 = vld [vmem:[#allocation2 + $0x44] sm:$0xff]   ;;  %6854 = vmatmul.mubr.msk.bf16.gmra.mxu1 %vm1743_vm5, %v1718_v41  ;;  %v8084_v6 = vsel %vm2270_vm6, %v4810_v46, %v4812_v18 }
 0x12d   : > { %1519 = vst.msk [vmem:[#allocation2 + $0x50] sm:$0xf] %vm1498_vm0, %v6431_v32  ;;  %v1269_v62 = vmul.f32 %v7867_v37, %v918_v36  ;;  %v787_v38 = vadd.f32 %v7922_v57, %v786_v29  ;;  %v8081_v10 = vld [vmem:[#allocation2 + $0x44] sm:$0xff]   ;;  %9966 = vst [vmem:[#allocation8_spill] sm:$0xff] %v8084_v6  ;;  %6979 = vmatprep.mubr.msk.bf16.mxu0 %vm1743_vm5, %v7344_v27 }
 0x12e   : > { %v6785_v24 = vpop.f32.mrf.mxu0  ;;  %v3203_v25 = vrot.slane %v8081_v10, 1 }
 0x12f   : > { %v6432_v33 = vpack.c.bf16 %v1269_v62, %v1269_v62  ;;  %v919_v35 = vmax.f32 %v787_v38, 0.0 }
 0x130   : > { %v789_v20 = vpop.f32.mrf.mxu0  ;;  %v8088_v0 = vld [vmem:[#allocation2 + $0x48] sm:$0xff]   ;;  %v8094_v46 = vsel %vm1701_vm4, %v3201_v9, %v3203_v25 }
 0x131   : > { %1520 = vst.msk [vmem:[#allocation2 + $0x54] sm:$0xf] %vm1498_vm0, %v6432_v33  ;;  %v1270_v37 = vmul.f32 %v7876_v40, %v919_v35  ;;  %v790_v30 = vadd.f32 %v7922_v57, %v789_v20  ;;  %v7395_v59 = vld [vmem:[#allocation2 + $0x48] sm:$0xff]   ;;  %v1719_v1 = vrot.slane %v8088_v0, 1 }
 0x132   : > { %v6786_v23 = vpop.f32.mrf.mxu0  ;;  %v4814_v58 = vrot.slane %v7395_v59, 2 }
 0x133   : > { %v6433_v34 = vpack.c.bf16 %v1270_v37, %v1270_v37  ;;  %v920_v14 = vmax.f32 %v790_v30, 0.0  ;;  %v1720_v32 = vsel %vm1701_vm4, %v1717_v63, %v1719_v1 }
 0x134   : > { %v794_v12 = vpop.f32.mrf.mxu0  ;;  %v7346_v36 = vld [vmem:[#allocation2 + $0x4c] sm:$0xff]   ;;  %6857 = vmatprep.mubr.msk.bf16.mxu1 %vm1743_vm5, %v1720_v32  ;;  %v8105_v41 = vsel %vm2270_vm6, %v4812_v18, %v4814_v58 }
 0x135   : > { %1521 = vst.msk [vmem:[#allocation2 + $0x58] sm:$0xf] %vm1498_vm0, %v6433_v34  ;;  %v1271_v40 = vmul.f32 %v7874_v39, %v920_v14  ;;  %v795_v29 = vadd.f32 %v7922_v57, %v794_v12  ;;  %v8102_v9 = vld [vmem:[#allocation2 + $0x4c] sm:$0xff]   ;;  %9967 = vst [vmem:[#allocation9_spill] sm:$0xff] %v8105_v41  ;;  %6980 = vmatmul.mubr.msk.bf16.gmra.mxu0 %vm1743_vm5, %v7346_v36 }
 0x136   : > { %v6789_v27 = vpop.f32.mrf.mxu0  ;;  %v3205_v63 = vrot.slane %v8102_v9, 1 }
 0x137   : > { %v6434_v62 = vpack.c.bf16 %v1271_v40, %v1271_v40  ;;  %v921_v38 = vmax.f32 %v795_v29, 0.0 }
 0x138   : > { %v797_v24 = vpop.f32.mrf.mxu0  ;;  %v8109_v33 = vld [vmem:[#allocation2 + $0x50] sm:$0xff]   ;;  %v8115_v18 = vsel %vm1701_vm4, %v3203_v25, %v3205_v63 }
 0x139   : > { %1522 = vst.msk [vmem:[#allocation2 + $0x5c] sm:$0xf] %vm1498_vm0, %v6434_v62  ;;  %v1272_v39 = vmul.f32 %v7881_v43, %v921_v38  ;;  %v798_v35 = vadd.f32 %v7922_v57, %v797_v24  ;;  %v7396_v20 = vld [vmem:[#allocation2 + $0x50] sm:$0xff]   ;;  %v1721_v30 = vrot.slane %v8109_v33, 1 }
 0x13a   : > { %v6790_v37 = vpop.f32.mrf.mxu0  ;;  %v4816_v34 = vrot.slane %v7396_v20, 2 }
 0x13b   : > { %v6435_v59 = vpack.c.bf16 %v1272_v39, %v1272_v39  ;;  %v922_v23 = vmax.f32 %v798_v35, 0.0  ;;  %v1722_v12 = vsel %vm1701_vm4, %v1719_v1, %v1721_v30 }
 0x13c   : > { %v802_v14 = vpop.f32.mrf.mxu0  ;;  %v7348_v32 = vld [vmem:[#allocation2 + $0x54] sm:$0xff]   ;;  %6858 = vmatmul.mubr.msk.bf16.gmra.mxu1 %vm1743_vm5, %v1722_v12  ;;  %v8126_v40 = vsel %vm2270_vm6, %v4814_v58, %v4816_v34 }
 0x13d   : > { %1523 = vst.msk [vmem:[#allocation2 + $0x60] sm:$0xf] %vm1498_vm0, %v6435_v59  ;;  %v1273_v43 = vmul.f32 %v7879_v42, %v922_v23  ;;  %v803_v36 = vadd.f32 %v7922_v57, %v802_v14  ;;  %v8123_v25 = vld [vmem:[#allocation2 + $0x54] sm:$0xff]   ;;  %9968 = vst [vmem:[#allocation10_spill] sm:$0xff] %v8126_v40  ;;  %6983 = vmatprep.mubr.msk.bf16.mxu0 %vm1743_vm5, %v7348_v32 }
 0x13e   : > { %v6793_v29 = vpop.f32.mrf.mxu0  ;;  %v3207_v1 = vrot.slane %v8123_v25, 1 }
 0x13f   : > { %v6436_v27 = vpack.c.bf16 %v1273_v43, %v1273_v43  ;;  %v923_v62 = vmax.f32 %v803_v36, 0.0 }
 0x140   : > { %v805_v38 = vpop.f32.mrf.mxu0  ;;  %v8130_v24 = vld [vmem:[#allocation2 + $0x58] sm:$0xff]   ;;  %v8136_v58 = vsel %vm1701_vm4, %v3205_v63, %v3207_v1 }
 0x141   : > { %1524 = vst.msk [vmem:[#allocation2 + $0x64] sm:$0xf] %vm1498_vm0, %v6436_v27  ;;  %v1274_v42 = vmul.f32 %v7888_v45, %v923_v62  ;;  %v806_v39 = vadd.f32 %v7922_v57, %v805_v38  ;;  %v7397_v35 = vld [vmem:[#allocation2 + $0x58] sm:$0xff]   ;;  %9969 = vst [vmem:[#allocation11_spill] sm:$0xff] %v8136_v58  ;;  %v1723_v37 = vrot.slane %v8130_v24, 1 }
 0x142   : > { %v6794_v20 = vpop.f32.mrf.mxu0  ;;  %v4818_v14 = vrot.slane %v7397_v35, 2 }
 0x143   : > { %v6437_v59 = vpack.c.bf16 %v1274_v42, %v1274_v42  ;;  %v924_v23 = vmax.f32 %v806_v39, 0.0  ;;  %v1724_v32 = vsel %vm1701_vm4, %v1721_v30, %v1723_v37 }
 0x144   : > { %v810_v12 = vpop.f32.mrf.mxu0  ;;  %v7350_v43 = vld [vmem:[#allocation2 + $0x5c] sm:$0xff]   ;;  %6861 = vmatprep.mubr.msk.bf16.mxu1 %vm1743_vm5, %v1724_v32  ;;  %v8147_v29 = vsel %vm2270_vm6, %v4816_v34, %v4818_v14 }
 0x145   : > { %1525 = vst.msk [vmem:[#allocation2 + $0x68] sm:$0xf] %vm1498_vm0, %v6437_v59  ;;  %v1275_v45 = vmul.f32 %v7886_v44, %v924_v23  ;;  %v811_v36 = vadd.f32 %v7922_v57, %v810_v12  ;;  %v8144_v63 = vld [vmem:[#allocation2 + $0x5c] sm:$0xff]   ;;  %9970 = vst [vmem:[#allocation12_spill] sm:$0xff] %v8147_v29  ;;  %6984 = vmatmul.mubr.msk.bf16.gmra.mxu0 %vm1743_vm5, %v7350_v43 }
 0x146   : > { %v6797_v27 = vpop.f32.mrf.mxu0  ;;  %v3209_v30 = vrot.slane %v8144_v63, 1 }
 0x147   : > { %v6438_v62 = vpack.c.bf16 %v1275_v45, %v1275_v45  ;;  %v925_v38 = vmax.f32 %v811_v36, 0.0 }
 0x148   : > { %v813_v42 = vpop.f32.mrf.mxu0  ;;  %v8151_v39 = vld [vmem:[#allocation2 + $0x60] sm:$0xff]   ;;  %v8159_v34 = vsel %vm1701_vm4, %v3207_v1, %v3209_v30 }
 0x149   : > { %1526 = vst.msk [vmem:[#allocation2 + $0x6c] sm:$0xf] %vm1498_vm0, %v6438_v62  ;;  %v1276_v44 = vmul.f32 %v7893_v48, %v925_v38  ;;  %v814_v35 = vadd.f32 %v7922_v57, %v813_v42  ;;  %v8156_v20 = vld [vmem:[#allocation2 + $0x60] sm:$0xff]   ;;  %9971 = vst [vmem:[#allocation13_spill] sm:$0xff] %v8159_v34  ;;  %v1725_v23 = vrot.slane %v8151_v39, 1  ;;  %v7448_v34 = vld [vmem:[#allocation2 + $0x34] sm:$0xff]  }
 0x14a   : > { %v6798_v59 = vpop.f32.mrf.mxu0  ;;  %v4820_v43 = vrot.slane %v8156_v20, 2  ;;  %v3546_v58 = vrot.slane %v7448_v34, 2  ;;  %v3550_v34 = vrot.slane %v8081_v10, 2  ;;  %v3554_v10 = vrot.slane %v8123_v25, 2 }
 0x14b   : > { %v6439_v12 = vpack.c.bf16 %v1276_v44, %v1276_v44  ;;  %v926_v32 = vmax.f32 %v814_v35, 0.0  ;;  %v1726_v36 = vsel %vm1701_vm4, %v1723_v37, %v1725_v23 }
 0x14c   : > { %v818_v45 = vpop.f32.mrf.mxu0  ;;  %v7352_v27 = vld [vmem:[#allocation2 + $0x64] sm:$0xff]   ;;  %6862 = vmatmul.mubr.msk.bf16.gmra.mxu1 %vm1743_vm5, %v1726_v36  ;;  %v8171_v38 = vsel %vm2270_vm6, %v4818_v14, %v4820_v43 }
 0x14d   : > { %1527 = vst.msk [vmem:[#allocation2 + $0x70] sm:$0xf] %vm1498_vm0, %v6439_v12  ;;  %v1277_v48 = vmul.f32 %v7891_v47, %v926_v32  ;;  %v819_v62 = vadd.f32 %v7922_v57, %v818_v45  ;;  %v8168_v1 = vld [vmem:[#allocation2 + $0x64] sm:$0xff]   ;;  %9972 = vst [vmem:[#allocation14_spill] sm:$0xff] %v8171_v38  ;;  %6987 = vmatprep.mubr.msk.bf16.mxu0 %vm1743_vm5, %v7352_v27  ;;  %v8182_v57 = vld [vmem:[%s9951_s4] ss:$0 sm:$0xff] }
 0x14e   : > { %v6801_v42 = vpop.f32.mrf.mxu0  ;;  %v3211_v37 = vrot.slane %v8168_v1, 1 }
 0x14f   : > { %v6440_v44 = vpack.c.bf16 %v1277_v48, %v1277_v48  ;;  %v927_v35 = vmax.f32 %v819_v62, 0.0 }
 0x150   : > { %v821_v59 = vpop.f32.mrf.mxu0  ;;  %v8175_v12 = vld [vmem:[#allocation2 + $0x68] sm:$0xff]   ;;  %v8188_v45 = vsel %vm1701_vm4, %v3209_v30, %v3211_v37 }
 0x151   : > { %1528 = vst.msk [vmem:[#allocation2 + $0x74] sm:$0xf] %vm1498_vm0, %v6440_v44  ;;  %v1278_v47 = vmul.f32 %v7898_v50, %v927_v35  ;;  %v822_v14 = vadd.f32 %v8182_v57, %v821_v59  ;;  %v8185_v32 = vld [vmem:[#allocation2 + $0x68] sm:$0xff]   ;;  %9973 = vst [vmem:[#allocation15_spill] sm:$0xff] %v8188_v45  ;;  %v1727_v27 = vrot.slane %v8175_v12, 1  ;;  %v8421_v45 = vld [vmem:[#allocation2 + $0x18] sm:$0xff]  }
 0x152   : > { %v6802_v36 = vpop.f32.mrf.mxu0  ;;  %v4822_v42 = vrot.slane %v8185_v32, 2 }
 0x153   : > { %v6441_v48 = vpack.c.bf16 %v1278_v47, %v1278_v47  ;;  %v928_v62 = vmax.f32 %v822_v14, 0.0  ;;  %v1728_v44 = vsel %vm1701_vm4, %v1725_v23, %v1727_v27 }
 0x154   : > { %v826_v50 = vpop.f32.mrf.mxu0  ;;  %v7354_v35 = vld [vmem:[#allocation2 + $0x6c] sm:$0xff]   ;;  %6865 = vmatprep.mubr.msk.bf16.mxu1 %vm1743_vm5, %v1728_v44  ;;  %v8200_v36 = vsel %vm2270_vm6, %v4820_v43, %v4822_v42 }
 0x155   : > { %1529 = vst.msk [vmem:[#allocation2 + $0x78] sm:$0xf] %vm1498_vm0, %v6441_v48  ;;  %v1279_v59 = vmul.f32 %v7896_v49, %v928_v62  ;;  %v827_v31 = vadd.f32 %v8182_v57, %v826_v50  ;;  %v8197_v30 = vld [vmem:[#allocation2 + $0x6c] sm:$0xff]   ;;  %9974 = vst [vmem:[#allocation16_spill] sm:$0xff] %v8200_v36  ;;  %6988 = vmatmul.mubr.msk.bf16.gmra.mxu0 %vm1743_vm5, %v7354_v35 }
 0x156   : > { %v6805_v47 = vpop.f32.mrf.mxu0  ;;  %v3213_v23 = vrot.slane %v8197_v30, 1 }
 0x157   : > { %v6442_v14 = vpack.c.bf16 %v1279_v59, %v1279_v59  ;;  %v929_v11 = vmax.f32 %v827_v31, 0.0 }
 0x158   : > { %v829_v19 = vpop.f32.mrf.mxu0  ;;  %v8204_v48 = vld [vmem:[#allocation2 + $0x70] sm:$0xff]   ;;  %v8212_v43 = vsel %vm1701_vm4, %v3211_v37, %v3213_v23 }
 0x159   : > { %1530 = vst.msk [vmem:[#allocation2 + $0x7c] sm:$0xf] %vm1498_vm0, %v6442_v14  ;;  %v1280_v49 = vmul.f32 %v7902_v52, %v929_v11  ;;  %v830_v62 = vadd.f32 %v8182_v57, %v829_v19  ;;  %v8209_v50 = vld [vmem:[#allocation2 + $0x70] sm:$0xff]   ;;  %9975 = vst [vmem:[#allocation17_spill] sm:$0xff] %v8212_v43  ;;  %v1729_v35 = vrot.slane %v8204_v48, 1 }
 0x15a   : > { %v6806_v44 = vpop.f32.mrf.mxu0  ;;  %v4824_v47 = vrot.slane %v8209_v50, 2  ;;  %v1553_v43 = vld [vmem:[#allocation2] sm:$0xf] }
 0x15b   : > { %v6443_v31 = vpack.c.bf16 %v1280_v49, %v1280_v49  ;;  %v930_v59 = vmax.f32 %v830_v62, 0.0  ;;  %v1730_v36 = vsel %vm1701_vm4, %v1727_v27, %v1729_v35 }
 0x15c   : > { %v834_v22 = vpop.f32.mrf.mxu0  ;;  %v7356_v14 = vld [vmem:[#allocation2 + $0x74] sm:$0xff]   ;;  %6866 = vmatmul.mubr.msk.bf16.gmra.mxu1 %vm1743_vm5, %v1730_v36  ;;  %v8224_v37 = vsel %vm2270_vm6, %v4822_v42, %v4824_v47 }
 0x15d   : > { %1531 = vst.msk [vmem:[#allocation2 + $0x80] sm:$0xf] %vm1498_vm0, %v6443_v31  ;;  %v1281_v52 = vmul.f32 %v7900_v51, %v930_v59  ;;  %v835_v19 = vadd.f32 %v8182_v57, %v834_v22  ;;  %v8221_v11 = vld [vmem:[#allocation2 + $0x74] sm:$0xff]   ;;  %9976 = vst [vmem:[#allocation18_spill] sm:$0xff] %v8224_v37  ;;  %6991 = vmatprep.mubr.msk.bf16.mxu0 %vm1743_vm5, %v7356_v14 }
 0x15e   : > { %v6809_v49 = vpop.f32.mrf.mxu0  ;;  %v3215_v27 = vrot.slane %v8221_v11, 1 }
 0x15f   : > { %v6444_v62 = vpack.c.bf16 %v1281_v52, %v1281_v52  ;;  %v931_v44 = vmax.f32 %v835_v19, 0.0 }
 0x160   : > { %v837_v38 = vpop.f32.mrf.mxu0  ;;  %v8228_v31 = vld [vmem:[#allocation2 + $0x78] sm:$0xff]   ;;  %v8236_v42 = vsel %vm1701_vm4, %v3213_v23, %v3215_v27 }
 0x161   : > { %1532 = vst.msk [vmem:[#allocation2 + $0x84] sm:$0xf] %vm1498_vm0, %v6444_v62  ;;  %v1282_v51 = vmul.f32 %v7913_v54, %v931_v44  ;;  %v838_v22 = vadd.f32 %v8182_v57, %v837_v38  ;;  %v8233_v36 = vld [vmem:[#allocation2 + $0x78] sm:$0xff]   ;;  %9977 = vst [vmem:[#allocation19_spill] sm:$0xff] %v8236_v42  ;;  %v1731_v14 = vrot.slane %v8228_v31, 1 }
 0x162   : > { %v6810_v59 = vpop.f32.mrf.mxu0  ;;  %v4826_v49 = vrot.slane %v8233_v36, 2 }
 0x163   : > { %v6445_v52 = vpack.c.bf16 %v1282_v51, %v1282_v51  ;;  %v932_v19 = vmax.f32 %v838_v22, 0.0  ;;  %v1732_v29 = vsel %vm1701_vm4, %v1729_v35, %v1731_v14 }
 0x164   : > { %v842_v37 = vpop.f32.mrf.mxu0  ;;  %v7358_v62 = vld [vmem:[#allocation2 + $0x7c] sm:$0xff]   ;;  %6869 = vmatprep.mubr.msk.bf16.mxu1 %vm1743_vm5, %v1732_v29  ;;  %v8248_v44 = vsel %vm2270_vm6, %v4824_v47, %v4826_v49 }
 0x165   : > { %1533 = vst.msk [vmem:[#allocation2 + $0x88] sm:$0xf] %vm1498_vm0, %v6445_v52  ;;  %v1283_v54 = vmul.f32 %v7911_v53, %v932_v19  ;;  %v843_v38 = vadd.f32 %v8182_v57, %v842_v37  ;;  %v8245_v23 = vld [vmem:[#allocation2 + $0x7c] sm:$0xff]   ;;  %9978 = vst [vmem:[#allocation20_spill] sm:$0xff] %v8248_v44  ;;  %6992 = vmatmul.mubr.msk.bf16.gmra.mxu0 %vm1743_vm5, %v7358_v62 }
 0x166   : > { %v6813_v51 = vpop.f32.mrf.mxu0  ;;  %v3217_v35 = vrot.slane %v8245_v23, 1 }
 0x167   : > { %v6446_v22 = vpack.c.bf16 %v1283_v54, %v1283_v54  ;;  %v933_v59 = vmax.f32 %v843_v38, 0.0  ;;  %v8266_v54 = vld [vmem:[%s9952_s5 + $0xe] sm:$0x3] }
 0x168   : > { %v845_v40 = vpop.f32.mrf.mxu0  ;;  %v8252_v52 = vld [vmem:[#allocation2 + $0x80] sm:$0xff]   ;;  %v8260_v47 = vsel %vm1701_vm4, %v3215_v27, %v3217_v35  ;;  %7268 = vmatprep.subr.msk.bf16.mxu0 %vm1804_vm3, %v8266_v54 }
 0x169   : > { %1534 = vst.msk [vmem:[#allocation2 + $0x8c] sm:$0xf] %vm1498_vm0, %v6446_v22  ;;  %v1284_v53 = vmul.f32 %v7917_v56, %v933_v59  ;;  %v846_v29 = vadd.f32 %v8182_v57, %v845_v40  ;;  %v8257_v37 = vld [vmem:[#allocation2 + $0x80] sm:$0xff]   ;;  %9979 = vst [vmem:[#allocation21_spill] sm:$0xff] %v8260_v47  ;;  %v1733_v62 = vrot.slane %v8252_v52, 1 }
 0x16a   : > { %v6814_v19 = vpop.f32.mrf.mxu0  ;;  %v4828_v27 = vrot.slane %v8257_v37, 2 }
 0x16b   : > { %v6447_v38 = vpack.c.bf16 %v1284_v53, %v1284_v53  ;;  %v934_v51 = vmax.f32 %v846_v29, 0.0  ;;  %v1734_v40 = vsel %vm1701_vm4, %v1731_v14, %v1733_v62 }
 0x16c   : > { %v850_v56 = vpop.f32.mrf.mxu0  ;;  %v7360_v22 = vld [vmem:[#allocation2 + $0x84] sm:$0xff]   ;;  %6870 = vmatmul.mubr.msk.bf16.gmra.mxu1 %vm1743_vm5, %v1734_v40  ;;  %v8280_v29 = vsel %vm2270_vm6, %v4826_v49, %v4828_v27 }
 0x16d   : > { %1535 = vst.msk [vmem:[#allocation2 + $0x90] sm:$0xf] %vm1498_vm0, %v6447_v38  ;;  %v1285_v59 = vmul.f32 %v7915_v55, %v934_v51  ;;  %v851_v19 = vadd.f32 %v8182_v57, %v850_v56  ;;  %v8276_v44 = vld [vmem:[#allocation2 + $0x84] sm:$0xff]   ;;  %6995 = vmatprep.mubr.msk.bf16.mxu0 %vm1743_vm5, %v7360_v22  ;;  %9980 = vst [vmem:[#allocation22_spill] sm:$0xff] %v8280_v29 }
 0x16e   : > { %v6817_v53 = vpop.f32.mrf.mxu0  ;;  %v3219_v6 = vrot.slane %v8276_v44, 1 }
 0x16f   : > { %v6448_v14 = vpack.c.bf16 %v1285_v59, %v1285_v59  ;;  %v935_v41 = vmax.f32 %v851_v19, 0.0 }
 0x170   : > { %v853_v28 = vpop.f32.mrf.mxu0  ;;  %v8283_v38 = vld [vmem:[#allocation2 + $0x88] sm:$0xff]   ;;  %v8291_v40 = vsel %vm1701_vm4, %v3217_v35, %v3219_v6 }
 0x171   : > { %1536 = vst.msk [vmem:[#allocation2 + $0x94] sm:$0xf] %vm1498_vm0, %v6448_v14  ;;  %v1286_v55 = vmul.f32 %v7927_v61, %v935_v41  ;;  %v854_v51 = vadd.f32 %v8182_v57, %v853_v28  ;;  %v8288_v56 = vld [vmem:[#allocation2 + $0x88] sm:$0xff]   ;;  %9981 = vst [vmem:[#allocation23_spill] sm:$0xff] %v8291_v40  ;;  %v1735_v22 = vrot.slane %v8283_v38, 1 }
 0x172   : > { %v6818_v49 = vpop.f32.mrf.mxu0  ;;  %v4830_v53 = vrot.slane %v8288_v56, 2 }
 0x173   : > { %v6449_v59 = vpack.c.bf16 %v1286_v55, %v1286_v55  ;;  %v936_v19 = vmax.f32 %v854_v51, 0.0  ;;  %v1736_v2 = vsel %vm1701_vm4, %v1733_v62, %v1735_v22 }
 0x174   : > { %v858_v29 = vpop.f32.mrf.mxu0  ;;  %v7362_v14 = vld [vmem:[#allocation2 + $0x8c] sm:$0xff]   ;;  %6873 = vmatprep.mubr.msk.bf16.mxu1 %vm1743_vm5, %v1736_v2  ;;  %v8303_v35 = vsel %vm2270_vm6, %v4828_v27, %v4830_v53 }
 0x175   : > { %1537 = vst.msk [vmem:[#allocation2 + $0x98] sm:$0xf] %vm1498_vm0, %v6449_v59  ;;  %v1287_v61 = vmul.f32 %v7925_v60, %v936_v19  ;;  %v859_v28 = vadd.f32 %v8182_v57, %v858_v29  ;;  %v8300_v41 = vld [vmem:[#allocation2 + $0x8c] sm:$0xff]   ;;  %9982 = vst [vmem:[#allocation24_spill] sm:$0xff] %v8303_v35  ;;  %6996 = vmatmul.mubr.msk.bf16.gmra.mxu0 %vm1743_vm5, %v7362_v14 }
 0x176   : > { %v6821_v55 = vpop.f32.mrf.mxu0  ;;  %v3221_v62 = vrot.slane %v8300_v41, 1 }
 0x177   : > { %v6450_v51 = vpack.c.bf16 %v1287_v61, %v1287_v61  ;;  %v937_v49 = vmax.f32 %v859_v28, 0.0 }
 0x178   : > { %v861_v40 = vpop.f32.mrf.mxu0  ;;  %v8307_v59 = vld [vmem:[#allocation2 + $0x90] sm:$0xff]   ;;  %v8315_v27 = vsel %vm1701_vm4, %v3219_v6, %v3221_v62 }
 0x179   : > { %1538 = vst.msk [vmem:[#allocation2 + $0x9c] sm:$0xf] %vm1498_vm0, %v6450_v51  ;;  %v1288_v60 = vmul.f32 %v7933_v5, %v937_v49  ;;  %v862_v2 = vadd.f32 %v8182_v57, %v861_v40  ;;  %v8312_v29 = vld [vmem:[#allocation2 + $0x90] sm:$0xff]   ;;  %9983 = vst [vmem:[#allocation25_spill] sm:$0xff] %v8315_v27  ;;  %v1737_v14 = vrot.slane %v8307_v59, 1 }
 0x17a   : > { %v6822_v19 = vpop.f32.mrf.mxu0  ;;  %v4832_v55 = vrot.slane %v8312_v29, 2 }
 0x17b   : > { %v6451_v61 = vpack.c.bf16 %v1288_v60, %v1288_v60  ;;  %v938_v28 = vmax.f32 %v862_v2, 0.0  ;;  %v1738_v47 = vsel %vm1701_vm4, %v1735_v22, %v1737_v14 }
 0x17c   : > { %v866_v35 = vpop.f32.mrf.mxu0  ;;  %v7364_v51 = vld [vmem:[#allocation2 + $0x94] sm:$0xff]   ;;  %6874 = vmatmul.mubr.msk.bf16.gmra.mxu1 %vm1743_vm5, %v1738_v47  ;;  %v8327_v49 = vsel %vm2270_vm6, %v4830_v53, %v4832_v55 }
 0x17d   : > { %1539 = vst.msk [vmem:[#allocation2 + $0xa0] sm:$0xf] %vm1498_vm0, %v6451_v61  ;;  %v1289_v5 = vmul.f32 %v7931_v4, %v938_v28  ;;  %v867_v40 = vadd.f32 %v8182_v57, %v866_v35  ;;  %v8324_v6 = vld [vmem:[#allocation2 + $0x94] sm:$0xff]   ;;  %9984 = vst [vmem:[#allocation26_spill] sm:$0xff] %v8327_v49  ;;  %6999 = vmatprep.mubr.msk.bf16.mxu0 %vm1743_vm5, %v7364_v51 }
 0x17e   : > { %v6825_v60 = vpop.f32.mrf.mxu0  ;;  %v3223_v22 = vrot.slane %v8324_v6, 1 }
 0x17f   : > { %v6452_v2 = vpack.c.bf16 %v1289_v5, %v1289_v5  ;;  %v939_v19 = vmax.f32 %v867_v40, 0.0 }
 0x180   : > { %v869_v27 = vpop.f32.mrf.mxu0  ;;  %v8331_v61 = vld [vmem:[#allocation2 + $0x98] sm:$0xff]   ;;  %v8339_v53 = vsel %vm1701_vm4, %v3221_v62, %v3223_v22 }
 0x181   : > { %1540 = vst.msk [vmem:[#allocation2 + $0xa4] sm:$0xf] %vm1498_vm0, %v6452_v2  ;;  %v1290_v4 = vmul.f32 %v7940_v26, %v939_v19  ;;  %v870_v47 = vadd.f32 %v8182_v57, %v869_v27  ;;  %v8336_v35 = vld [vmem:[#allocation2 + $0x98] sm:$0xff]   ;;  %9985 = vst [vmem:[#allocation27_spill] sm:$0xff] %v8339_v53  ;;  %v1739_v51 = vrot.slane %v8331_v61, 1 }
 0x182   : > { %v6826_v28 = vpop.f32.mrf.mxu0  ;;  %v4834_v60 = vrot.slane %v8336_v35, 2 }
 0x183   : > { %v6453_v5 = vpack.c.bf16 %v1290_v4, %v1290_v4  ;;  %v940_v40 = vmax.f32 %v870_v47, 0.0  ;;  %v1740_v42 = vsel %vm1701_vm4, %v1737_v14, %v1739_v51 }
 0x184   : > { %v874_v49 = vpop.f32.mrf.mxu0  ;;  %v7366_v2 = vld [vmem:[#allocation2 + $0x9c] sm:$0xff]   ;;  %6877 = vmatprep.mubr.msk.bf16.mxu1 %vm1743_vm5, %v1740_v42  ;;  %v8351_v4 = vsel %vm2270_vm6, %v4832_v55, %v4834_v60 }
 0x185   : > { %1541 = vst.msk [vmem:[#allocation2 + $0xa8] sm:$0xf] %vm1498_vm0, %v6453_v5  ;;  %v1291_v26 = vmul.f32 %v7938_v21, %v940_v40  ;;  %v875_v27 = vadd.f32 %v8182_v57, %v874_v49  ;;  %v7367_v62 = vld [vmem:[#allocation2 + $0xa0] ss:$0 sps:$4 sm:$0x11]   ;;  %9986 = vst [vmem:[#allocation28_spill] sm:$0xff] %v8351_v4  ;;  %7000 = vmatmul.mubr.msk.bf16.gmra.mxu0 %vm1743_vm5, %v7366_v2 }
 0x186   : > { %v8348_v19 = vld [vmem:[#allocation2 + $0x9c] sm:$0xff]   ;;  %v6829_v47 = vpop.f32.mrf.mxu0  ;;  %v1741_v53 = vrot.slane %v7367_v62, 1  ;;  %v8358_v40 = vld [vmem:[#allocation2 + $0x4] sm:$0xf] }
 0x187   : > { %v6454_v28 = vpack.c.bf16 %v1291_v26, %v1291_v26  ;;  %v941_v14 = vmax.f32 %v875_v27, 0.0  ;;  %v6091_v55 = vcombine.low %v1553_v43, %v8358_v40  ;;  %v3225_v26 = vrot.slane %v8348_v19, 1  ;;  %v9988_v43 = vld [vmem:[#allocation3_spill] sm:$0xff]  ;;  %v7444_v4 = vld [vmem:[#allocation2 + $0x24] sm:$0xff]  }
 0x188   : > { %v877_v5 = vpop.f32.mrf.mxu0  ;;  %v1742_v49 = vsel %vm1701_vm4, %v1739_v51, %v1741_v53  ;;  %v8361_v47 = vld [vmem:[#allocation2 + $0xa0] sm:$0xff]  }
 0x189   : > { %1542 = vst.msk [vmem:[#allocation2 + $0xac] sm:$0xf] %vm1498_vm0, %v6454_v28  ;;  %v1292_v21 = vmul.f32 %v7949_v3, %v941_v14  ;;  %v878_v42 = vadd.f32 %v8182_v57, %v877_v5  ;;  %6878 = vmatmul.mubr.msk.bf16.gmra.mxu1 %vm1743_vm5, %v1742_v49  ;;  %v4836_v3 = vrot.slane %v8361_v47, 2  ;;  %v8368_v53 = vsel %vm1701_vm4, %v3223_v22, %v3225_v26  ;;  %v3529_v22 = vld [vmem:[#allocation2 + $0x14] sm:$0xc] }
 0x18a   : > { %v6830_v2 = vpop.f32.mrf.mxu0  ;;  %6883 = vmatprep.mubr.msk.bf16.mxu1 %vm1743_vm5, %v6091_v55  ;;  %9987 = vst [vmem:[#allocation29_spill] sm:$0xff] %v8368_v53  ;;  %v7440_v55 = vld [vmem:[#allocation2 + $0x18] sm:$0xf] }
 0x18b   : > { %v6455_v27 = vpack.c.bf16 %v1292_v21, %v1292_v21  ;;  %v942_v62 = vmax.f32 %v878_v42, 0.0  ;;  %v8375_v14 = vsel %vm2270_vm6, %v4834_v60, %v4836_v3  ;;  %v7439_v21 = vld [vmem:[%s9952_s5 + $0x4] sm:$0x3]  ;;  %v6219_v2 = vcombine.low %v3529_v22, %v7440_v55  ;;  %v8387_v60 = vld [vmem:[%s9952_s5 + $0x8] sm:$0x3] }
 0x18c   : > { %v7368_v57 = vld [vmem:[#allocation2 + $0xa4] sm:$0xff]   ;;  %9989 = vst [vmem:[#allocation3_spill] sm:$0xff] %v8375_v14  ;;  %v2373_v42 = vsel %vm1804_vm3, %v7439_v21, 0  ;;  %v8398_v21 = vld [vmem:[#allocation2 + $0x10] sm:$0xff]  }
 0x18d   : > { %1543 = vst.msk [vmem:[#allocation2 + $0xb0] sm:$0xf] %vm1498_vm0, %v6455_v27  ;;  %v1293_v51 = vmul.f32 %v9988_v43, %v942_v62  ;;  %v8372_v28 = vld [vmem:[#allocation2 + $0xa4] sm:$0xff]   ;;  %7003 = vmatprep.mubr.msk.bf16.mxu0 %vm1743_vm5, %v7368_v57  ;;  %v7442_v43 = vld [vmem:[#allocation2 + $0x1c] sm:$0xff]   ;;  %v3539_v55 = vrot.slane %v6219_v2, 2 }
 0x18e   : > { %v3227_v49 = vrot.slane %v8372_v28, 1  ;;  %v8394_v57 = vld [vmem:[#allocation2 + $0x8] sm:$0xff]  }
 0x18f   : > { %v6456_v5 = vpack.c.bf16 %v1293_v51, %v1293_v51  ;;  %v3540_v51 = vrot.slane %v7442_v43, 2 }
 0x190   : > { %v8389_v27 = vld [vmem:[#allocation2 + $0xa8] sm:$0xff]   ;;  %v8392_v62 = vsel %vm1701_vm4, %v3225_v26, %v3227_v49 }
 0x191   : > { %1544 = vst.msk [vmem:[#allocation2 + $0xb4] sm:$0xf] %vm1498_vm0, %v6456_v5  ;;  %9990 = vst [vmem:[#allocation30_spill] sm:$0xff] %v8392_v62  ;;  %6884 = vmatmul.mubr.msk.bf16.vlgmr.msra.gmra.mxu1 %vm1743_vm5, %v8394_v57  ;;  %v4838_v5 = vrot.slane %v8389_v27, 2  ;;  %v3542_v62 = vrot.slane %v7444_v4, 2 }
 0x192   : > { %6924 = vmatpush3.bf16.msra.mxu1 %v2373_v42  ;;  %6887 = vmatprep.mubr.msk.bf16.mxu1 %vm1743_vm5, %v8398_v21  ;;  %v3541_v42 = vsel %vm2270_vm6, %v3539_v55, %v3540_v51  ;;  %v8425_v55 = vld [vmem:[#allocation2 + $0x20] sm:$0xff]  }
 0x193   : > { %7265 = vmatprep.subr.msk.bf16.mxu1 %vm1804_vm3, %v8387_v60  ;;  %v8408_v14 = vsel %vm2270_vm6, %v4836_v3, %v4838_v5  ;;  %v7446_v3 = vld [vmem:[#allocation2 + $0x2c] sm:$0xff]  }
 0x194   : > { %v7369_v22 = vld [vmem:[#allocation2 + $0xac] sm:$0xff]   ;;  %9991 = vst [vmem:[#allocation31_spill] sm:$0xff] %v8408_v14  ;;  %v9994_v14 = vrot.slane %v7974_v15, 2 }
 0x195   : > { %v8405_v26 = vld [vmem:[#allocation2 + $0xac] sm:$0xff]   ;;  %7004 = vmatmul.mubr.msk.bf16.gmra.mxu0 %vm1743_vm5, %v7369_v22  ;;  %v3544_v22 = vrot.slane %v7446_v3, 2 }
 0x196   : > { %7051 = vmatprep.mubr.msk.bf16.mxu0 %vm1743_vm5, %v3541_v42  ;;  %v9960_v43 = vrot.slane %v8405_v26, 1  ;;  %v4562_v42 = vsel %vm1804_vm3, %v8266_v54, 0  ;;  %v8444_v54 = vld [vmem:[#allocation2 + $0x28] sm:$0xff]   ;;  %v8448_v15 = vld [vmem:[#allocation2 + $0x30] sm:$0xff]  }
 0x197   : > { %v3545_v3 = vsel %vm2270_vm6, %v3542_v62, %v3544_v22 }
 0x198   : > { %v8414_v53 = vld [vmem:[#allocation2 + $0xb0] sm:$0xff]   ;;  %v8419_v2 = vsel %vm1701_vm4, %v3227_v49, %v9960_v43  ;;  %v3543_v49 = vsel %vm2270_vm6, %v3540_v51, %v3542_v62  ;;  %v7450_v51 = vld [vmem:[#allocation2 + $0x3c] sm:$0xff]  }
 0x199   : > { %9992 = vst [vmem:[#allocation32_spill] sm:$0xff] %v8419_v2  ;;  %6888 = vmatmul.mubr.msk.bf16.gmra.mxu1 %vm1743_vm5, %v8421_v45  ;;  %v4840_v4 = vrot.slane %v8414_v53, 2 }
 0x19a   : > { %6891 = vmatprep.mubr.msk.bf16.mxu1 %vm1743_vm5, %v8425_v55 }
 0x19b   : > { %v8434_v43 = vsel %vm2270_vm6, %v4838_v5, %v4840_v4  ;;  %v8439_v2 = vsel %vm2270_vm6, %v4840_v4, %v9994_v14  ;;  %v3548_v5 = vrot.slane %v7450_v51, 2  ;;  %v3547_v14 = vsel %vm2270_vm6, %v3544_v22, %v3546_v58  ;;  %v8457_v4 = vld [vmem:[#allocation2 + $0x38] sm:$0xff]  }
 0x19c   : > { %9993 = vst [vmem:[#allocation33_spill] sm:$0xff] %v8434_v43  ;;  %9995 = vst [vmem:[#allocation34_spill] sm:$0xff] %v8439_v2 }
 0x19d   : > { %7052 = vmatmul.mubr.msk.bf16.vlgmr.msra.gmra.mxu0 %vm1743_vm5, %v3543_v49  ;;  %v3549_v62 = vsel %vm2270_vm6, %v3546_v58, %v3548_v5  ;;  %v8462_v49 = vld [vmem:[#allocation2 + $0x40] sm:$0xff]   ;;  %v3551_v22 = vsel %vm2270_vm6, %v3548_v5, %v3550_v34  ;;  %v3558_v5 = vrot.slane %v8168_v1, 2 }
 0x19e   : > { %7055 = vmatprep.mubr.msk.bf16.mxu0 %vm1743_vm5, %v3545_v3  ;;  %7134 = vmatpush3.bf16.msra.mxu0 %v4562_v42  ;;  %v3552_v42 = vrot.slane %v8102_v9, 2  ;;  %v3556_v9 = vrot.slane %v8144_v63, 2  ;;  %v3562_v63 = vrot.slane %v8221_v11, 2  ;;  %v3568_v11 = vrot.slane %v8300_v41, 2 }
 0x19f   : > { %v3572_v41 = vrot.slane %v8348_v19, 2 }
 0x1a0   : > { %v3553_v58 = vsel %vm2270_vm6, %v3550_v34, %v3552_v42  ;;  %v3555_v3 = vsel %vm2270_vm6, %v3552_v42, %v3554_v10  ;;  %v3557_v51 = vsel %vm2270_vm6, %v3554_v10, %v3556_v9  ;;  %v2260_v42 = vld [vmem:[#allocation2] sm:$0xc] }
 0x1a1   : > { %6892 = vmatmul.mubr.msk.bf16.gmra.mxu1 %vm1743_vm5, %v8444_v54 }
 0x1a2   : > { %6895 = vmatprep.mubr.msk.bf16.mxu1 %vm1743_vm5, %v8448_v15 }
 0x1a5   : > { %7056 = vmatmul.mubr.msk.bf16.gmra.mxu0 %vm1743_vm5, %v3547_v14 }
 0x1a6   : > { %7059 = vmatprep.mubr.msk.bf16.mxu0 %vm1743_vm5, %v3549_v62 }
 0x1a9   : > { %6896 = vmatmul.mubr.msk.bf16.gmra.mxu1 %vm1743_vm5, %v8457_v4 }
 0x1aa   : > { %6899 = vmatprep.mubr.msk.bf16.mxu1 %vm1743_vm5, %v8462_v49 }
 0x1ad   : > { %7060 = vmatmul.mubr.msk.bf16.gmra.mxu0 %vm1743_vm5, %v3551_v22  ;;  %v6113_v22 = vcombine.low %v2260_v42, %v8358_v40 }
 0x1ae   : > { %7063 = vmatprep.mubr.msk.bf16.mxu0 %vm1743_vm5, %v3553_v58 }
 0x1b1   : > { %6900 = vmatmul.mubr.msk.bf16.gmra.mxu1 %vm1743_vm5, %v8088_v0  ;;  %v3560_v0 = vrot.slane %v8197_v30, 2  ;;  %v3566_v30 = vrot.slane %v8276_v44, 2  ;;  %v3570_v44 = vrot.slane %v8324_v6, 2  ;;  %v2272_v6 = vrot.slane %v8394_v57, 2 }
 0x1b2   : > { %6903 = vmatprep.mubr.msk.bf16.mxu1 %vm1743_vm5, %v8109_v33  ;;  %v3559_v33 = vsel %vm2270_vm6, %v3556_v9, %v3558_v5 }
 0x1b3   : > { %v3561_v25 = vsel %vm2270_vm6, %v3558_v5, %v3560_v0  ;;  %v3569_v62 = vsel %vm2270_vm6, %v3566_v30, %v3568_v11  ;;  %v3571_v10 = vsel %vm2270_vm6, %v3568_v11, %v3570_v44  ;;  %v3573_v9 = vsel %vm2270_vm6, %v3570_v44, %v3572_v41  ;;  %v7455_v44 = vld [vmem:[#allocation2 + $0x30] sm:$0xff]  }
 0x1b4   : > { %v3576_v5 = vrot.slane %v8405_v26, 2 }
 0x1b5   : > { %7064 = vmatmul.mubr.msk.bf16.gmra.mxu0 %vm1743_vm5, %v3555_v3  ;;  %v2271_v3 = vrot.slane %v6113_v22, 2 }
 0x1b6   : > { %7067 = vmatprep.mubr.msk.bf16.mxu0 %vm1743_vm5, %v3557_v51  ;;  %v3574_v51 = vrot.slane %v8372_v28, 2 }
 0x1b7   : > { %v2273_v40 = vsel %vm2270_vm6, %v2271_v3, %v2272_v6 }
 0x1b8   : > { %v3575_v57 = vsel %vm2270_vm6, %v3572_v41, %v3574_v51  ;;  %v3577_v28 = vsel %vm2270_vm6, %v3574_v51, %v3576_v5  ;;  %v4461_v41 = vrot.slane %v7455_v44, 1  ;;  %v7459_v44 = vld [vmem:[#allocation2 + $0x50] sm:$0xff]  }
 0x1b9   : > { %6904 = vmatmul.mubr.msk.bf16.gmra.mxu1 %vm1743_vm5, %v8130_v24  ;;  %v3564_v24 = vrot.slane %v8245_v23, 2 }
 0x1ba   : > { %6907 = vmatprep.mubr.msk.bf16.mxu1 %vm1743_vm5, %v8151_v39  ;;  %v3563_v39 = vsel %vm2270_vm6, %v3560_v0, %v3562_v63 }
 0x1bb   : > { %v3565_v1 = vsel %vm2270_vm6, %v3562_v63, %v3564_v24  ;;  %v3567_v14 = vsel %vm2270_vm6, %v3564_v24, %v3566_v30  ;;  %v2276_v63 = vrot.slane %v8421_v45, 2  ;;  %v7454_v30 = vld [vmem:[#allocation2 + $0x2c] sm:$0xf] }
 0x1bc   : > { %v8506_v23 = vpop.f32.mrf.mxu1 }
 0x1bd   : > { %7068 = vmatmul.mubr.msk.bf16.gmra.mxu0 %vm1743_vm5, %v3559_v33  ;;  %v2274_v33 = vrot.slane %v8398_v21, 2 }
 0x1be   : > { %7071 = vmatprep.mubr.msk.bf16.mxu0 %vm1743_vm5, %v3561_v25  ;;  %v8512_v34 = vpop.f32.mrf.mxu1  ;;  %v7390_v25 = vld [vmem:[#allocation2 + $0xb4] ss:$0 sps:$4 sm:$0x33]  }
 0x1bf   : > { %v3578_v21 = vrot.slane %v7390_v25, 2  ;;  %v2277_v45 = vsel %vm2270_vm6, %v2274_v33, %v2276_v63 }
 0x1c0   : > { %v8521_v58 = vpop.f32.mrf.mxu1 }
 0x1c1   : > { %6908 = vmatmul.mubr.msk.bf16.gmra.mxu1 %vm1743_vm5, %v8175_v12  ;;  %v3579_v22 = vsel %vm2270_vm6, %v3576_v5, %v3578_v21  ;;  %v7457_v5 = vld [vmem:[#allocation2 + $0x40] sm:$0xff]  }
 0x1c2   : > { %6911 = vmatprep.mubr.msk.bf16.mxu1 %vm1743_vm5, %v8204_v48  ;;  %v8528_v19 = vpop.f32.mrf.mxu1  ;;  %v4465_v25 = vrot.slane %v7457_v5, 1 }
 0x1c5   : > { %7072 = vmatmul.mubr.msk.bf16.gmra.mxu0 %vm1743_vm5, %v3563_v39  ;;  %v4314_v39 = vld [vmem:[#allocation2 + $0x28] sm:$0xe] }
 0x1c6   : > { %7075 = vmatprep.mubr.msk.bf16.mxu0 %vm1743_vm5, %v3565_v1  ;;  %v3294_v1 = vsel %vm1804_vm3, %v8387_v60, 0  ;;  %v6283_v11 = vcombine.low %v4314_v39, %v7454_v30  ;;  %v2282_v39 = vrot.slane %v8448_v15, 2  ;;  %v4469_v15 = vrot.slane %v7459_v44, 1 }
 0x1c7   : > { %v4477_v44 = vrot.slane %v8209_v50, 1 }
 0x1c8   : > { %v4460_v60 = vrot.slane %v6283_v11, 1 }
 0x1c9   : > { %6912 = vmatmul.mubr.msk.bf16.gmra.mxu1 %vm1743_vm5, %v8228_v31 }
 0x1ca   : > { %6915 = vmatprep.mubr.msk.bf16.mxu1 %vm1743_vm5, %v8252_v52 }
 0x1cc   : > { %v8535_v0 = vpop.f32.mrf.mxu1 }
 0x1cd   : > { %7076 = vmatmul.mubr.msk.bf16.gmra.mxu0 %vm1743_vm5, %v3567_v14  ;;  %v2275_v14 = vsel %vm2270_vm6, %v2272_v6, %v2274_v33  ;;  %v2280_v6 = vrot.slane %v8444_v54, 2 }
 0x1ce   : > { %7079 = vmatprep.mubr.msk.bf16.mxu0 %vm1743_vm5, %v3569_v62  ;;  %v8543_v24 = vpop.f32.mrf.mxu1  ;;  %v8552_v62 = vld [vmem:[%s9952_s5 + $0xc] sm:$0x3] }
 0x1cf   : > { %v2283_v11 = vsel %vm2270_vm6, %v2280_v6, %v2282_v39 }
 0x1d0   : > { %v8556_v42 = vpop.f32.mrf.mxu1 }
 0x1d1   : > { %6916 = vmatmul.mubr.msk.bf16.gmra.mxu1 %vm1743_vm5, %v8283_v38 }
 0x1d2   : > { %6919 = vmatprep.mubr.msk.bf16.mxu1 %vm1743_vm5, %v8307_v59  ;;  %v8566_v3 = vpop.f32.mrf.mxu1 }
 0x1d5   : > { %7080 = vmatmul.mubr.msk.bf16.gmra.mxu0 %vm1743_vm5, %v3571_v10  ;;  %v2278_v10 = vrot.slane %v8425_v55, 2 }
 0x1d6   : > { %7083 = vmatprep.mubr.msk.bf16.mxu0 %vm1743_vm5, %v3573_v9  ;;  %v4462_v9 = vsel %vm1701_vm4, %v4460_v60, %v4461_v41  ;;  %v2286_v60 = vrot.slane %v8462_v49, 2  ;;  %v4473_v49 = vrot.slane %v8156_v20, 1 }
 0x1d7   : > { %v2281_v55 = vsel %vm2270_vm6, %v2278_v10, %v2280_v6 }
 0x1d9   : > { %6920 = vmatmul.mubr.msk.bf16.gmra.mxu1 %vm1743_vm5, %v8331_v61 }
 0x1da   : > { %6925 = vmatprep.mubr.msk.bf16.mxu1 %vm1743_vm5, %v2273_v40  ;;  %v2279_v40 = vsel %vm2270_vm6, %v2276_v63, %v2278_v10  ;;  %v7460_v10 = vld [vmem:[#allocation2 + $0x48] sm:$0xff]  }
 0x1dc   : > { %v8569_v51 = vpop.f32.mrf.mxu1 }
 0x1dd   : > { %7084 = vmatmul.mubr.msk.bf16.gmra.mxu0 %vm1743_vm5, %v3575_v57  ;;  %v7456_v57 = vld [vmem:[#allocation2 + $0x38] sm:$0xff]  }
 0x1de   : > { %7087 = vmatprep.mubr.msk.bf16.mxu0 %vm1743_vm5, %v3577_v28  ;;  %v4463_v33 = vrot.slane %v7456_v57, 1  ;;  %v8575_v28 = vpop.f32.mrf.mxu1  ;;  %v7461_v57 = vld [vmem:[#allocation2 + $0x58] sm:$0xff]  }
 0x1e0   : > { %v4464_v54 = vsel %vm1701_vm4, %v4461_v41, %v4463_v33  ;;  %v4466_v63 = vsel %vm1701_vm4, %v4463_v33, %v4465_v25  ;;  %v8583_v30 = vpop.f32.mrf.mxu1  ;;  %v4471_v33 = vrot.slane %v7461_v57, 1  ;;  %v4479_v57 = vrot.slane %v8233_v36, 1 }
 0x1e1   : > { %6926 = vmatmul.mubr.msk.bf16.vlgmr.msra.gmra.mxu1 %vm1743_vm5, %v2275_v14  ;;  %v7458_v14 = vld [vmem:[#allocation2 + $0x48] sm:$0xff]   ;;  %v2300_v36 = vrot.slane %v8228_v31, 2 }
 0x1e2   : > { %7008 = vmatpush3.bf16.msra.mxu1 %v3294_v1  ;;  %6929 = vmatprep.mubr.msk.bf16.mxu1 %vm1743_vm5, %v2277_v45  ;;  %v2284_v1 = vrot.slane %v8457_v4, 2  ;;  %v4467_v21 = vrot.slane %v7458_v14, 1  ;;  %v8589_v41 = vpop.f32.mrf.mxu1 }
 0x1e3   : > { %7267 = vmatprep.subr.msk.bf16.mxu1 %vm1804_vm3, %v8552_v62 }
 0x1e4   : > { %v2285_v45 = vsel %vm2270_vm6, %v2282_v39, %v2284_v1  ;;  %v4468_v4 = vsel %vm1701_vm4, %v4465_v25, %v4467_v21  ;;  %v4472_v25 = vsel %vm1701_vm4, %v4469_v15, %v4471_v33 }
 0x1e5   : > { %7088 = vmatmul.mubr.msk.bf16.gmra.mxu0 %vm1743_vm5, %v3579_v22  ;;  %v4470_v22 = vsel %vm1701_vm4, %v4467_v21, %v4469_v15  ;;  %v4475_v21 = vrot.slane %v8185_v32, 1 }
 0x1e6   : > { %7135 = vmatprep.mubr.msk.bf16.mxu0 %vm1743_vm5, %v4462_v9  ;;  %v2288_v9 = vrot.slane %v7460_v10, 2 }
 0x1e7   : > { %v4478_v32 = vsel %vm1701_vm4, %v4475_v21, %v4477_v44 }
 0x1e9   : > { %6930 = vmatmul.mubr.msk.bf16.gmra.mxu1 %vm1743_vm5, %v2279_v40  ;;  %v2287_v40 = vsel %vm2270_vm6, %v2284_v1, %v2286_v60  ;;  %v7463_v1 = vld [vmem:[#allocation2 + $0x58] sm:$0xff]  }
 0x1ea   : > { %6933 = vmatprep.mubr.msk.bf16.mxu1 %vm1743_vm5, %v2281_v55  ;;  %v2289_v55 = vsel %vm2270_vm6, %v2286_v60, %v2288_v9  ;;  %v4476_v60 = vsel %vm1701_vm4, %v4473_v49, %v4475_v21  ;;  %v2302_v21 = vrot.slane %v8252_v52, 2 }
 0x1ec   : > { %v8595_v6 = vpop.f32.mrf.mxu1 }
 0x1ed   : > { %7136 = vmatmul.mubr.msk.bf16.vlgmr.msra.gmra.mxu0 %vm1743_vm5, %v4464_v54  ;;  %v7462_v54 = vld [vmem:[#allocation2 + $0x50] sm:$0xff]  }
 0x1ee   : > { %7139 = vmatprep.mubr.msk.bf16.mxu0 %vm1743_vm5, %v4466_v63  ;;  %v8602_v5 = vpop.f32.mrf.mxu1  ;;  %v2290_v39 = vrot.slane %v7462_v54, 2  ;;  %v4474_v63 = vsel %vm1701_vm4, %v4471_v33, %v4473_v49 }
 0x1f0   : > { %v8608_v14 = vpop.f32.mrf.mxu1  ;;  %v2291_v20 = vsel %vm2270_vm6, %v2288_v9, %v2290_v39  ;;  %v2296_v9 = vrot.slane %v8175_v12, 2  ;;  %v4480_v12 = vsel %vm1701_vm4, %v4477_v44, %v4479_v57 }
 0x1f1   : > { %6934 = vmatmul.mubr.msk.bf16.gmra.mxu1 %vm1743_vm5, %v2283_v11  ;;  %v2292_v11 = vrot.slane %v7463_v1, 2 }
 0x1f2   : > { %6937 = vmatprep.mubr.msk.bf16.mxu1 %vm1743_vm5, %v2285_v45  ;;  %v8616_v15 = vpop.f32.mrf.mxu1 }
 0x1f3   : > { %v2293_v45 = vsel %vm2270_vm6, %v2290_v39, %v2292_v11 }
 0x1f5   : > { %7140 = vmatmul.mubr.msk.bf16.gmra.mxu0 %vm1743_vm5, %v4468_v4 }
 0x1f6   : > { %7143 = vmatprep.mubr.msk.bf16.mxu0 %vm1743_vm5, %v4470_v22  ;;  %v7464_v22 = vld [vmem:[#allocation2 + $0x60] sm:$0xff]  }
 0x1f7   : > { %v2294_v10 = vrot.slane %v7464_v22, 2  ;;  %v4487_v22 = vrot.slane %v8336_v35, 1 }
 0x1f9   : > { %6938 = vmatmul.mubr.msk.bf16.gmra.mxu1 %vm1743_vm5, %v2287_v40  ;;  %v2295_v50 = vsel %vm2270_vm6, %v2292_v11, %v2294_v10  ;;  %v2297_v33 = vsel %vm2270_vm6, %v2294_v10, %v2296_v9  ;;  %v4489_v10 = vrot.slane %v8361_v47, 1 }
 0x1fa   : > { %6941 = vmatprep.mubr.msk.bf16.mxu1 %vm1743_vm5, %v2289_v55  ;;  %v4481_v55 = vrot.slane %v8257_v37, 1 }
 0x1fb   : > { %v4490_v35 = vsel %vm1701_vm4, %v4487_v22, %v4489_v10 }
 0x1fc   : > { %v8619_v4 = vpop.f32.mrf.mxu1  ;;  %v4482_v54 = vsel %vm1701_vm4, %v4479_v57, %v4481_v55  ;;  %v2308_v57 = vrot.slane %v8331_v61, 2  ;;  %v4493_v61 = vrot.slane %v8414_v53, 1 }
 0x1fd   : > { %7144 = vmatmul.mubr.msk.bf16.gmra.mxu0 %vm1743_vm5, %v4472_v25  ;;  %v2298_v25 = vrot.slane %v8204_v48, 2  ;;  %v4485_v48 = vrot.slane %v8312_v29, 1 }
 0x1fe   : > { %7147 = vmatprep.mubr.msk.bf16.mxu0 %vm1743_vm5, %v4474_v63  ;;  %v8626_v40 = vpop.f32.mrf.mxu1  ;;  %v4483_v63 = vrot.slane %v8288_v56, 1 }
 0x1ff   : > { %v2299_v37 = vsel %vm2270_vm6, %v2296_v9, %v2298_v25  ;;  %v2301_v1 = vsel %vm2270_vm6, %v2298_v25, %v2300_v36  ;;  %v4488_v9 = vsel %vm1701_vm4, %v4485_v48, %v4487_v22  ;;  %v4491_v25 = vrot.slane %v8389_v27, 1 }
 0x200   : > { %v8634_v49 = vpop.f32.mrf.mxu1  ;;  %v4484_v31 = vsel %vm1701_vm4, %v4481_v55, %v4483_v63  ;;  %v4486_v56 = vsel %vm1701_vm4, %v4483_v63, %v4485_v48 }
 0x201   : > { %6942 = vmatmul.mubr.msk.bf16.gmra.mxu1 %vm1743_vm5, %v2291_v20  ;;  %v8652_v20 = vpop.f32.mrf.mxu0  ;;  %v4492_v63 = vsel %vm1701_vm4, %v4489_v10, %v4491_v25  ;;  %v4494_v27 = vsel %vm1701_vm4, %v4491_v25, %v4493_v61 }
 0x202   : > { %6945 = vmatprep.mubr.msk.bf16.mxu1 %vm1743_vm5, %v2293_v45  ;;  %v8642_v39 = vpop.f32.mrf.mxu1  ;;  %9996 = vst [vmem:[#allocation35_spill] sm:$0xff] %v8652_v20  ;;  %v2304_v45 = vrot.slane %v8283_v38, 2 }
 0x203   : > { %v8662_v29 = vpop.f32.mrf.mxu0 }
 0x204   : > { %9997 = vst [vmem:[#allocation36_spill] sm:$0xff] %v8662_v29  ;;  %v2305_v52 = vsel %vm2270_vm6, %v2302_v21, %v2304_v45 }
 0x205   : > { %7148 = vmatmul.mubr.msk.bf16.gmra.mxu0 %vm1743_vm5, %v4476_v60  ;;  %v2303_v60 = vsel %vm2270_vm6, %v2300_v36, %v2302_v21  ;;  %v8672_v38 = vpop.f32.mrf.mxu0 }
 0x206   : > { %7151 = vmatprep.mubr.msk.bf16.mxu0 %vm1743_vm5, %v4478_v32  ;;  %9998 = vst [vmem:[#allocation37_spill] sm:$0xff] %v8672_v38 }
 0x207   : > { %v8682_v47 = vpop.f32.mrf.mxu0 }
 0x208   : > { %9999 = vst [vmem:[#allocation38_spill] sm:$0xff] %v8682_v47  ;;  %v10044_v47 = vld [vmem:[#allocation29_spill] sm:$0xff] }
 0x209   : > { %6946 = vmatmul.mubr.msk.bf16.gmra.mxu1 %vm1743_vm5, %v2295_v50  ;;  %v2306_v50 = vrot.slane %v8307_v59, 2  ;;  %v8688_v59 = vpop.f32.mrf.mxu0 }
 0x20a   : > { %6949 = vmatprep.mubr.msk.bf16.mxu1 %vm1743_vm5, %v2297_v33  ;;  %10000 = vst [vmem:[#allocation39_spill] sm:$0xff] %v8688_v59 }
 0x20b   : > { %v2309_v36 = vsel %vm2270_vm6, %v2306_v50, %v2308_v57  ;;  %v8697_v48 = vpop.f32.mrf.mxu0 }
 0x20c   : > { %v8649_v11 = vpop.f32.mrf.mxu1  ;;  %10001 = vst [vmem:[#allocation40_spill] sm:$0xff] %v8697_v48 }
 0x20d   : > { %7152 = vmatmul.mubr.msk.bf16.gmra.mxu0 %vm1743_vm5, %v4480_v12  ;;  %v2307_v12 = vsel %vm2270_vm6, %v2304_v45, %v2306_v50  ;;  %v8705_v53 = vpop.f32.mrf.mxu0 }
 0x20e   : > { %7155 = vmatprep.mubr.msk.bf16.mxu0 %vm1743_vm5, %v4482_v54  ;;  %v8659_v44 = vpop.f32.mrf.mxu1  ;;  %v7409_v54 = vld [vmem:[#allocation2 + $0xa0] ss:$0 sps:$4 sm:$0x33]   ;;  %10003 = vst [vmem:[#allocation42_spill] sm:$0xff] %v8705_v53 }
 0x20f   : > { %v8713_v50 = vpop.f32.mrf.mxu0 }
 0x210   : > { %v8669_v32 = vpop.f32.mrf.mxu1  ;;  %10005 = vst [vmem:[#allocation44_spill] sm:$0xff] %v8713_v50  ;;  %v10040_v50 = vld [vmem:[#allocation25_spill] sm:$0xff] }
 0x211   : > { %6950 = vmatmul.mubr.msk.bf16.gmra.mxu1 %vm1743_vm5, %v2299_v37 }
 0x212   : > { %6953 = vmatprep.mubr.msk.bf16.mxu1 %vm1743_vm5, %v2301_v1  ;;  %v8679_v33 = vpop.f32.mrf.mxu1  ;;  %v2310_v1 = vrot.slane %v7409_v54, 2  ;;  %v8727_v54 = vld [vmem:[%s9952_s5 + $0x10] sm:$0x3] }
 0x214   : > { %v2311_v21 = vsel %vm2270_vm6, %v2308_v57, %v2310_v1 }
 0x215   : > { %7156 = vmatmul.mubr.msk.bf16.gmra.mxu0 %vm1743_vm5, %v4484_v31 }
 0x216   : > { %7159 = vmatprep.mubr.msk.bf16.mxu0 %vm1743_vm5, %v4486_v56  ;;  %v7465_v56 = vld [vmem:[#allocation2 + $0xb8] sm:$0xff]  }
 0x217   : > { %v4495_v45 = vrot.slane %v7465_v56, 1 }
 0x219   : > { %6954 = vmatmul.mubr.msk.bf16.gmra.mxu1 %vm1743_vm5, %v2303_v60  ;;  %v7466_v60 = vld [vmem:[#allocation2 + $0xc0] sm:$0xff]   ;;  %v4496_v10 = vsel %vm1701_vm4, %v4493_v61, %v4495_v45 }
 0x21a   : > { %6957 = vmatprep.mubr.msk.bf16.mxu1 %vm1743_vm5, %v2305_v52  ;;  %v4497_v22 = vrot.slane %v7466_v60, 1 }
 0x21c   : > { %v8684_v55 = vpop.f32.mrf.mxu1 }
 0x21d   : > { %7160 = vmatmul.mubr.msk.bf16.gmra.mxu0 %vm1743_vm5, %v4488_v9  ;;  %v7413_v9 = vld [vmem:[#allocation2 + $0xc8] ss:$0 sps:$4 sm:$0x11]  }
 0x21e   : > { %7163 = vmatprep.mubr.msk.bf16.mxu0 %vm1743_vm5, %v4490_v35  ;;  %v8694_v37 = vpop.f32.mrf.mxu1  ;;  %v4498_v35 = vsel %vm1701_vm4, %v4495_v45, %v4497_v22  ;;  %v4499_v25 = vrot.slane %v7413_v9, 1  ;;  %v10023_v9 = vld [vmem:[#allocation11_spill] sm:$0xff] }
 0x220   : > { %v8702_v31 = vpop.f32.mrf.mxu1 }
 0x221   : > { %6958 = vmatmul.mubr.msk.bf16.gmra.mxu1 %vm1743_vm5, %v2307_v12  ;;  %10002 = vst [vmem:[#allocation41_spill] sm:$0xff] %v8702_v31  ;;  %v8720_v12 = vpop.f32.mrf.mxu0 }
 0x222   : > { %6961 = vmatprep.mubr.msk.bf16.mxu1 %vm1743_vm5, %v2309_v36  ;;  %v8710_v52 = vpop.f32.mrf.mxu1  ;;  %10007 = vst [vmem:[#allocation46_spill] sm:$0xff] %v8720_v12 }
 0x223   : > { %10004 = vst [vmem:[#allocation43_spill] sm:$0xff] %v8710_v52  ;;  %v8735_v61 = vpop.f32.mrf.mxu0 }
 0x224   : > { %10009 = vst [vmem:[#allocation48_spill] sm:$0xff] %v8735_v61 }
 0x225   : > { %7164 = vmatmul.mubr.msk.bf16.gmra.mxu0 %vm1743_vm5, %v4492_v63  ;;  %v8743_v1 = vpop.f32.mrf.mxu0 }
 0x226   : > { %7167 = vmatprep.mubr.msk.bf16.mxu0 %vm1743_vm5, %v4494_v27  ;;  %10011 = vst [vmem:[#allocation50_spill] sm:$0xff] %v8743_v1 }
 0x229   : > { %6962 = vmatmul.mubr.msk.bf16.gmra.mxu1 %vm1743_vm5, %v2311_v21 }
 0x22a   : > { %7009 = vmatprep.mubr.msk.bf16.mxu1 %vm1743_vm5, %v8011_v13  ;;  %v4079_v13 = vsel %vm1804_vm3, %v8552_v62, 0  ;;  %v4500_v62 = vsel %vm1701_vm4, %v4497_v22, %v4499_v25 }
 0x22c   : > { %v8717_v57 = vpop.f32.mrf.mxu1 }
 0x22d   : > { %7168 = vmatmul.mubr.msk.bf16.gmra.mxu0 %vm1743_vm5, %v4496_v10  ;;  %10006 = vst [vmem:[#allocation45_spill] sm:$0xff] %v8717_v57  ;;  %v7419_v57 = vld [vmem:[#allocation2 + $0x48] sm:$0xff]  }
 0x22e   : > { %7171 = vmatprep.mubr.msk.bf16.mxu0 %vm1743_vm5, %v4498_v35  ;;  %v8731_v36 = vpop.f32.mrf.mxu1  ;;  %v10024_v35 = vld [vmem:[#allocation13_spill] sm:$0xff] }
 0x22f   : > { %10008 = vst [vmem:[#allocation47_spill] sm:$0xff] %v8731_v36 }
 0x230   : > { %v8741_v63 = vpop.f32.mrf.mxu1 }
 0x231   : > { %7010 = vmatmul.mubr.msk.bf16.vlgmr.msra.gmra.mxu1 %vm1743_vm5, %v8026_v8  ;;  %10010 = vst [vmem:[#allocation49_spill] sm:$0xff] %v8741_v63 }
 0x232   : > { %7092 = vmatpush3.bf16.msra.mxu1 %v4079_v13  ;;  %7013 = vmatprep.mubr.msk.bf16.mxu1 %vm1743_vm5, %v8039_v16  ;;  %v8747_v8 = vpop.f32.mrf.mxu1  ;;  %v8751_v16 = vpop.f32.mrf.mxu0 }
 0x233   : > { %7269 = vmatprep.subr.msk.bf16.mxu1 %vm1804_vm3, %v8727_v54  ;;  %10012 = vst [vmem:[#allocation51_spill] sm:$0xff] %v8747_v8  ;;  %10013 = vst [vmem:[#allocation52_spill] sm:$0xff] %v8751_v16  ;;  %v10035_v16 = vld [vmem:[#allocation19_spill] sm:$0xff] }
 0x234   : > { %v8755_v21 = vpop.f32.mrf.mxu0 }
 0x235   : > { %7172 = vmatmul.mubr.msk.bf16.gmra.mxu0 %vm1743_vm5, %v4500_v62  ;;  %10015 = vst [vmem:[#allocation54_spill] sm:$0xff] %v8755_v21 }
 0x236   : > { %v8759_v45 = vpop.f32.mrf.mxu0 }
 0x237   : > { %10017 = vst [vmem:[#allocation56_spill] sm:$0xff] %v8759_v45 }
 0x238   : > { %v8767_v60 = vpop.f32.mrf.mxu0 }
 0x239   : > { %7014 = vmatmul.mubr.msk.bf16.gmra.mxu1 %vm1743_vm5, %v8059_v17  ;;  %10019 = vst [vmem:[#allocation58_spill] sm:$0xff] %v8767_v60  ;;  %v10031_v60 = vld [vmem:[#allocation17_spill] sm:$0xff] }
 0x23a   : > { %7017 = vmatprep.mubr.msk.bf16.mxu1 %vm1743_vm5, %v8074_v7  ;;  %v8771_v22 = vpop.f32.mrf.mxu0 }
 0x23b   : > { %10021 = vst [vmem:[#allocation60_spill] sm:$0xff] %v8771_v22  ;;  %v10030_v22 = vld [vmem:[#allocation15_spill] sm:$0xff] }
 0x23c   : > { %v8753_v27 = vpop.f32.mrf.mxu1 }
 0x23d   : > { %10014 = vst [vmem:[#allocation53_spill] sm:$0xff] %v8753_v27 }
 0x23e   : > { %v8757_v56 = vpop.f32.mrf.mxu1 }
 0x23f   : > { %10016 = vst [vmem:[#allocation55_spill] sm:$0xff] %v8757_v56  ;;  %v7415_v56 = vld [vmem:[#allocation2 + $0x28] sm:$0xff]  }
 0x240   : > { %v8765_v17 = vpop.f32.mrf.mxu1 }
 0x241   : > { %7018 = vmatmul.mubr.msk.bf16.gmra.mxu1 %vm1743_vm5, %v8094_v46  ;;  %10018 = vst [vmem:[#allocation57_spill] sm:$0xff] %v8765_v17  ;;  %v8779_v46 = vpop.f32.mrf.mxu0 }
 0x242   : > { %7021 = vmatprep.mubr.msk.bf16.mxu1 %vm1743_vm5, %v8115_v18  ;;  %v8769_v7 = vpop.f32.mrf.mxu1  ;;  %10025 = vst [vmem:[#allocation11_spill] sm:$0xff] %v8779_v46 }
 0x243   : > { %10020 = vst [vmem:[#allocation59_spill] sm:$0xff] %v8769_v7  ;;  %v8785_v25 = vpop.f32.mrf.mxu0  ;;  %v10051_v7 = vrot.slane %v8405_v26, 1  ;;  %v7416_v26 = vld [vmem:[#allocation2 + $0x30] sm:$0xff]  }
 0x244   : > { %10028 = vst [vmem:[#allocation63_spill] sm:$0xff] %v8785_v25 }
 0x249   : > { %v8773_v10 = vpop.f32.mrf.mxu1  ;;  %7022 = vmatmul.mubr.msk.bf16.gmra.mxu1 %vm1743_vm5, %v10023_v9  ;;  %v8795_v9 = vpop.f32.mrf.mxu0 }
 0x24a   : > { %10022 = vst [vmem:[#allocation61_spill] sm:$0xff] %v8773_v10  ;;  %7025 = vmatprep.mubr.msk.bf16.mxu1 %vm1743_vm5, %v10024_v35  ;;  %10032 = vst [vmem:[#allocation15_spill] sm:$0xff] %v8795_v9 }
 0x24b   : > { %v8781_v13 = vpop.f32.mrf.mxu1  ;;  %v8801_v45 = vpop.f32.mrf.mxu0 }
 0x24c   : > { %10026 = vst [vmem:[#allocation13_spill] sm:$0xff] %v8781_v13  ;;  %10033 = vst [vmem:[#allocation17_spill] sm:$0xff] %v8801_v45 }
 0x24d   : > { %v8783_v18 = vpop.f32.mrf.mxu1  ;;  %v8805_v25 = vpop.f32.mrf.mxu0 }
 0x24e   : > { %10027 = vst [vmem:[#allocation62_spill] sm:$0xff] %v8783_v18  ;;  %10034 = vst [vmem:[#allocation65_spill] sm:$0xff] %v8805_v25  ;;  %v10039_v25 = vld [vmem:[#allocation23_spill] sm:$0xff] }
 0x24f   : > { %v8787_v62 = vpop.f32.mrf.mxu1  ;;  %v8815_v9 = vpop.f32.mrf.mxu0 }
 0x250   : > { %10029 = vst [vmem:[#allocation64_spill] sm:$0xff] %v8787_v62  ;;  %10037 = vst [vmem:[#allocation19_spill] sm:$0xff] %v8815_v9  ;;  %v10047_v62 = vld [vmem:[#allocation30_spill] sm:$0xff] }
 0x251   : > { %v8789_v2 = vpop.f32.mrf.mxu1  ;;  %7026 = vmatmul.mubr.msk.bf16.gmra.mxu1 %vm1743_vm5, %v10030_v22  ;;  %v10036_v22 = vld [vmem:[#allocation21_spill] sm:$0xff]  ;;  %v8821_v45 = vpop.f32.mrf.mxu0 }
 0x252   : > { %7029 = vmatprep.mubr.msk.bf16.mxu1 %vm1743_vm5, %v10031_v60  ;;  %10038 = vst [vmem:[#allocation21_spill] sm:$0xff] %v8821_v45  ;;  %v10043_v45 = vld [vmem:[#allocation27_spill] sm:$0xff] }
 0x253   : > { %v8797_v35 = vpop.f32.mrf.mxu1 }
 0x255   : > { %v8799_v46 = vpop.f32.mrf.mxu1 }
 0x257   : > { %v8803_v43 = vpop.f32.mrf.mxu1 }
 0x259   : > { %v8807_v21 = vpop.f32.mrf.mxu1  ;;  %7030 = vmatmul.mubr.msk.bf16.gmra.mxu1 %vm1743_vm5, %v10035_v16 }
 0x25a   : > { %7033 = vmatprep.mubr.msk.bf16.mxu1 %vm1743_vm5, %v10036_v22  ;;  %v8831_v22 = vpop.f32.mrf.mxu0 }
 0x25b   : > { %v8813_v60 = vpop.f32.mrf.mxu1  ;;  %10041 = vst [vmem:[#allocation23_spill] sm:$0xff] %v8831_v22 }
 0x25c   : > { %v8835_v9 = vpop.f32.mrf.mxu0 }
 0x25d   : > { %v8817_v1 = vpop.f32.mrf.mxu1  ;;  %10042 = vst [vmem:[#allocation25_spill] sm:$0xff] %v8835_v9  ;;  %v7414_v9 = vld [vmem:[#allocation2 + $0xb4] ss:$0 sps:$4 sm:$0x11]  }
 0x25e   : > { %v3231_v18 = vrot.slane %v7414_v9, 1 }
 0x25f   : > { %v8819_v61 = vpop.f32.mrf.mxu1 }
 0x260   : > { %v3232_v17 = vsel %vm1701_vm4, %v10051_v7, %v3231_v18  ;;  %v4909_v7 = vsel %vm1804_vm3, %v8727_v54, 0  ;;  %v7417_v18 = vld [vmem:[#allocation2 + $0x38] sm:$0xff]   ;;  %v7418_v54 = vld [vmem:[#allocation2 + $0x40] sm:$0xff]  }
 0x261   : > { %v8823_v12 = vpop.f32.mrf.mxu1  ;;  %7034 = vmatmul.mubr.msk.bf16.gmra.mxu1 %vm1743_vm5, %v10039_v25  ;;  %v8845_v25 = vpop.f32.mrf.mxu0 }
 0x262   : > { %7037 = vmatprep.mubr.msk.bf16.mxu1 %vm1743_vm5, %v10040_v50  ;;  %10045 = vst [vmem:[#allocation27_spill] sm:$0xff] %v8845_v25 }
 0x263   : > { %v8829_v16 = vpop.f32.mrf.mxu1  ;;  %v8851_v22 = vpop.f32.mrf.mxu0 }
 0x264   : > { %10046 = vst [vmem:[#allocation29_spill] sm:$0xff] %v8851_v22 }
 0x265   : > { %v8833_v53 = vpop.f32.mrf.mxu1 }
 0x267   : > { %v8837_v48 = vpop.f32.mrf.mxu1 }
 0x269   : > { %v8839_v59 = vpop.f32.mrf.mxu1  ;;  %7038 = vmatmul.mubr.msk.bf16.gmra.mxu1 %vm1743_vm5, %v10043_v45  ;;  %v10048_v45 = vld [vmem:[#allocation32_spill] sm:$0xff] }
 0x26a   : > { %7041 = vmatprep.mubr.msk.bf16.mxu1 %vm1743_vm5, %v10044_v47  ;;  %v8861_v47 = vpop.f32.mrf.mxu0 }
 0x26b   : > { %v8847_v50 = vpop.f32.mrf.mxu1  ;;  %10049 = vst [vmem:[#allocation30_spill] sm:$0xff] %v8861_v47 }
 0x26c   : > { %v8865_v13 = vpop.f32.mrf.mxu0 }
 0x26d   : > { %v8849_v38 = vpop.f32.mrf.mxu1  ;;  %10050 = vst [vmem:[#allocation32_spill] sm:$0xff] %v8865_v13 }
 0x26f   : > { %v8853_v29 = vpop.f32.mrf.mxu1 }
 0x271   : > { %v8855_v20 = vpop.f32.mrf.mxu1  ;;  %7042 = vmatmul.mubr.msk.bf16.gmra.mxu1 %vm1743_vm5, %v10047_v62  ;;  %v8874_v62 = vpop.f32.mrf.mxu0 }
 0x272   : > { %7045 = vmatprep.mubr.msk.bf16.mxu1 %vm1743_vm5, %v10048_v45  ;;  %10052 = vst [vmem:[#allocation66_spill] sm:$0xff] %v8874_v62 }
 0x273   : > { %v8863_v25 = vpop.f32.mrf.mxu1  ;;  %v8882_v45 = vpop.f32.mrf.mxu0 }
 0x274   : > { %10053 = vst [vmem:[#allocation67_spill] sm:$0xff] %v8882_v45 }
 0x275   : > { %v8867_v10 = vpop.f32.mrf.mxu1  ;;  %v8890_v62 = vpop.f32.mrf.mxu0 }
 0x276   : > { %10054 = vst [vmem:[#allocation68_spill] sm:$0xff] %v8890_v62 }
 0x277   : > { %v8869_v22 = vpop.f32.mrf.mxu1 }
 0x279   : > { %v8876_v27 = vpop.f32.mrf.mxu1  ;;  %7046 = vmatmul.mubr.msk.bf16.gmra.mxu1 %vm1743_vm5, %v3232_v17 }
 0x27a   : > { %7093 = vmatprep.mubr.msk.bf16.mxu1 %vm1743_vm5, %v7415_v56  ;;  %v8896_v56 = vpop.f32.mrf.mxu0 }
 0x27b   : > { %v8880_v9 = vpop.f32.mrf.mxu1  ;;  %10055 = vst [vmem:[#allocation69_spill] sm:$0xff] %v8896_v56 }
 0x27c   : > { %v8902_v63 = vpop.f32.mrf.mxu0 }
 0x27d   : > { %v8884_v13 = vpop.f32.mrf.mxu1  ;;  %10057 = vst [vmem:[#allocation71_spill] sm:$0xff] %v8902_v63  ;;  %v7420_v63 = vld [vmem:[#allocation2 + $0x50] sm:$0xff]  }
 0x27f   : > { %v8886_v47 = vpop.f32.mrf.mxu1 }
 0x281   : > { %v8892_v8 = vpop.f32.mrf.mxu1  ;;  %7094 = vmatmul.mubr.msk.bf16.vlgmr.msra.gmra.mxu1 %vm1743_vm5, %v7416_v26  ;;  %v8910_v26 = vpop.f32.mrf.mxu0 }
 0x282   : > { %7176 = vmatpush3.bf16.msra.mxu1 %v4909_v7  ;;  %7097 = vmatprep.mubr.msk.bf16.mxu1 %vm1743_vm5, %v7417_v18  ;;  %10060 = vst [vmem:[#allocation74_spill] sm:$0xff] %v8910_v26 }
 0x283   : > { %v8898_v17 = vpop.f32.mrf.mxu1  ;;  %v8916_v56 = vpop.f32.mrf.mxu0 }
 0x284   : > { %10063 = vst [vmem:[#allocation77_spill] sm:$0xff] %v8916_v56  ;;  %v7422_v56 = vld [vmem:[#allocation2 + $0x60] sm:$0xff]  }
 0x285   : > { %v8900_v45 = vpop.f32.mrf.mxu1 }
 0x286   : > { %10056 = vst [vmem:[#allocation70_spill] sm:$0xff] %v8900_v45  ;;  %v8920_v45 = vpop.f32.mrf.mxu0 }
 0x287   : > { %v8904_v36 = vpop.f32.mrf.mxu1  ;;  %10065 = vst [vmem:[#allocation79_spill] sm:$0xff] %v8920_v45 }
 0x288   : > { %10058 = vst [vmem:[#allocation72_spill] sm:$0xff] %v8904_v36  ;;  %v7421_v36 = vld [vmem:[#allocation2 + $0x58] sm:$0xff]  }
 0x289   : > { %v8906_v62 = vpop.f32.mrf.mxu1  ;;  %7098 = vmatmul.mubr.msk.bf16.gmra.mxu1 %vm1743_vm5, %v7418_v54  ;;  %v8928_v54 = vpop.f32.mrf.mxu0 }
 0x28a   : > { %10059 = vst [vmem:[#allocation73_spill] sm:$0xff] %v8906_v62  ;;  %7101 = vmatprep.mubr.msk.bf16.mxu1 %vm1743_vm5, %v7419_v57  ;;  %10067 = vst [vmem:[#allocation81_spill] sm:$0xff] %v8928_v54 }
 0x28b   : > { %v8912_v7 = vpop.f32.mrf.mxu1 }
 0x28c   : > { %10061 = vst [vmem:[#allocation75_spill] sm:$0xff] %v8912_v7  ;;  %v8934_v7 = vpop.f32.mrf.mxu0 }
 0x28d   : > { %v8914_v18 = vpop.f32.mrf.mxu1  ;;  %10070 = vst [vmem:[#allocation84_spill] sm:$0xff] %v8934_v7 }
 0x28e   : > { %10062 = vst [vmem:[#allocation76_spill] sm:$0xff] %v8914_v18 }
 0x28f   : > { %v8918_v52 = vpop.f32.mrf.mxu1 }
 0x290   : > { %10064 = vst [vmem:[#allocation78_spill] sm:$0xff] %v8918_v52  ;;  %v7423_v52 = vld [vmem:[#allocation2 + $0x68] sm:$0xff]  }
 0x291   : > { %v8922_v31 = vpop.f32.mrf.mxu1  ;;  %7102 = vmatmul.mubr.msk.bf16.gmra.mxu1 %vm1743_vm5, %v7420_v63 }
 0x292   : > { %7105 = vmatprep.mubr.msk.bf16.mxu1 %vm1743_vm5, %v7421_v36  ;;  %v8942_v36 = vpop.f32.mrf.mxu0 }
 0x293   : > { %v8926_v57 = vpop.f32.mrf.mxu1  ;;  %10073 = vst [vmem:[#allocation87_spill] sm:$0xff] %v8942_v36 }
 0x294   : > { %10066 = vst [vmem:[#allocation80_spill] sm:$0xff] %v8926_v57  ;;  %v7425_v57 = vld [vmem:[#allocation2 + $0x78] sm:$0xff]   ;;  %v8950_v7 = vpop.f32.mrf.mxu0 }
 0x295   : > { %v8930_v26 = vpop.f32.mrf.mxu1  ;;  %10076 = vst [vmem:[#allocation90_spill] sm:$0xff] %v8950_v7  ;;  %v2105_v7 = vadd.f32 %v8803_v43, %v8528_v19  ;;  %v2129_v19 = vadd.f32 %v8817_v1, %v8556_v42  ;;  %v2134_v1 = vadd.f32 %v8829_v16, %v8575_v28  ;;  %v7430_v28 = vld [vmem:[#allocation2 + $0xa0] sm:$0xff]   ;;  %v2158_v16 = vadd.f32 %v8839_v59, %v8595_v6 }
 0x296   : > { %10068 = vst [vmem:[#allocation82_spill] sm:$0xff] %v8930_v26  ;;  %v7424_v26 = vld [vmem:[#allocation2 + $0x70] sm:$0xff]  }
 0x297   : > { %v8932_v18 = vpop.f32.mrf.mxu1 }
 0x298   : > { %10069 = vst [vmem:[#allocation83_spill] sm:$0xff] %v8932_v18  ;;  %v2110_v18 = vadd.f32 %v8789_v2, %v8506_v23  ;;  %v8962_v2 = vpop.f32.mrf.mxu0 }
 0x299   : > { %v8936_v62 = vpop.f32.mrf.mxu1  ;;  %7106 = vmatmul.mubr.msk.bf16.gmra.mxu1 %vm1743_vm5, %v7422_v56 }
 0x29a   : > { %10071 = vst [vmem:[#allocation85_spill] sm:$0xff] %v8936_v62  ;;  %7109 = vmatprep.mubr.msk.bf16.mxu1 %vm1743_vm5, %v7423_v52  ;;  %v2102_v52 = vadd.f32 %v8797_v35, %v8512_v34  ;;  %v7426_v34 = vld [vmem:[#allocation2 + $0x80] sm:$0xff]   ;;  %v2126_v35 = vadd.f32 %v8807_v21, %v8535_v0 }
 0x29b   : > { %v8940_v63 = vpop.f32.mrf.mxu1 }
 0x29c   : > { %10072 = vst [vmem:[#allocation86_spill] sm:$0xff] %v8940_v63 }
 0x29d   : > { %v8944_v45 = vpop.f32.mrf.mxu1 }
 0x29e   : > { %10074 = vst [vmem:[#allocation88_spill] sm:$0xff] %v8944_v45 }
 0x29f   : > { %v8946_v54 = vpop.f32.mrf.mxu1 }
 0x2a0   : > { %10075 = vst [vmem:[#allocation89_spill] sm:$0xff] %v8946_v54  ;;  %v2113_v54 = vadd.f32 %v8799_v46, %v8521_v58  ;;  %v2118_v46 = vadd.f32 %v8813_v60, %v8543_v24  ;;  %v7428_v24 = vld [vmem:[#allocation2 + $0x90] sm:$0xff]   ;;  %v2142_v60 = vadd.f32 %v8823_v12, %v8569_v51 }
 0x2a1   : > { %v6927_v62 = vpop.f32.mrf.mxu1  ;;  %7110 = vmatmul.mubr.msk.bf16.gmra.mxu1 %vm1743_vm5, %v7424_v26 }
 0x2a2   : > { %v8955_v56 = vadd.f32 %v6927_v62, %v2110_v18  ;;  %7113 = vmatprep.mubr.msk.bf16.mxu1 %vm1743_vm5, %v7425_v57  ;;  %v7427_v18 = vld [vmem:[#allocation2 + $0x88] sm:$0xff]   ;;  %v8972_v57 = vpop.f32.mrf.mxu0 }
 0x2a3   : > { %v2409_v36 = vpop.f32.mrf.mxu1 }
 0x2a4   : > { %v8960_v45 = vadd.f32 %v2409_v36, %v2102_v52  ;;  %v8984_v21 = vpop.f32.mrf.mxu0 }
 0x2a5   : > { %v6928_v23 = vpop.f32.mrf.mxu1 }
 0x2a6   : > { %v8966_v26 = vadd.f32 %v6928_v23, %v2113_v54  ;;  %v2121_v54 = vadd.f32 %v8819_v61, %v8566_v3  ;;  %v2145_v61 = vadd.f32 %v8833_v53, %v8583_v30  ;;  %v2150_v53 = vadd.f32 %v8847_v50, %v8602_v5  ;;  %v7432_v5 = vld [vmem:[#allocation2 + $0xb0] sm:$0xff]  }
 0x2a7   : > { %v2412_v63 = vpop.f32.mrf.mxu1  ;;  %v2174_v50 = vadd.f32 %v8855_v20, %v8619_v4 }
 0x2a8   : > { %v8970_v62 = vadd.f32 %v2412_v63, %v2105_v7 }
 0x2a9   : > { %v6931_v58 = vpop.f32.mrf.mxu1  ;;  %7114 = vmatmul.mubr.msk.bf16.gmra.mxu1 %vm1743_vm5, %v7426_v34  ;;  %v7429_v34 = vld [vmem:[#allocation2 + $0x98] sm:$0xff]  }
 0x2aa   : > { %v8977_v36 = vadd.f32 %v6931_v58, %v2126_v35  ;;  %7117 = vmatprep.mubr.msk.bf16.mxu1 %vm1743_vm5, %v7427_v18  ;;  %v8994_v35 = vpop.f32.mrf.mxu0 }
 0x2ab   : > { %v2425_v43 = vpop.f32.mrf.mxu1 }
 0x2ac   : > { %v8982_v0 = vadd.f32 %v2425_v43, %v2118_v46  ;;  %v9006_v12 = vpop.f32.mrf.mxu0  ;;  %v2137_v46 = vadd.f32 %v8837_v48, %v8589_v41  ;;  %v2161_v48 = vadd.f32 %v8849_v38, %v8608_v14  ;;  %v2166_v38 = vadd.f32 %v8863_v25, %v8626_v40  ;;  %v7434_v40 = vld [vmem:[#allocation2 + $0xc0] sm:$0xff]  }
 0x2ad   : > { %v6932_v7 = vpop.f32.mrf.mxu1  ;;  %v2190_v25 = vadd.f32 %v8876_v27, %v8649_v11 }
 0x2ae   : > { %v8988_v63 = vadd.f32 %v6932_v7, %v2129_v19 }
 0x2af   : > { %v2428_v52 = vpop.f32.mrf.mxu1 }
 0x2b0   : > { %v8992_v23 = vadd.f32 %v2428_v52, %v2121_v54  ;;  %v7431_v54 = vld [vmem:[#allocation2 + $0xa8] sm:$0xff]   ;;  %v9016_v52 = vpop.f32.mrf.mxu0 }
 0x2b1   : > { %v6935_v42 = vpop.f32.mrf.mxu1  ;;  %7118 = vmatmul.mubr.msk.bf16.gmra.mxu1 %vm1743_vm5, %v7428_v24 }
 0x2b2   : > { %v8999_v18 = vadd.f32 %v6935_v42, %v2142_v60  ;;  %7121 = vmatprep.mubr.msk.bf16.mxu1 %vm1743_vm5, %v7429_v34  ;;  %v9028_v59 = vpop.f32.mrf.mxu0  ;;  %v2153_v34 = vadd.f32 %v8853_v29, %v8616_v15  ;;  %v2177_v29 = vadd.f32 %v8867_v10, %v8634_v49  ;;  %v2182_v10 = vadd.f32 %v8880_v9, %v8659_v44 }
 0x2b3   : > { %v2441_v3 = vpop.f32.mrf.mxu1  ;;  %v2206_v9 = vadd.f32 %v8892_v8, %v8684_v55  ;;  %v10082_v55 = vld [vmem:[#allocation8_spill] sm:$0xff] }
 0x2b4   : > { %v9004_v51 = vadd.f32 %v2441_v3, %v2134_v1 }
 0x2b5   : > { %v6936_v58 = vpop.f32.mrf.mxu1 }
 0x2b6   : > { %v9010_v43 = vadd.f32 %v6936_v58, %v2145_v61  ;;  %v7433_v61 = vld [vmem:[#allocation2 + $0xb8] sm:$0xff]   ;;  %v9038_v58 = vpop.f32.mrf.mxu0 }
 0x2b7   : > { %v2444_v19 = vpop.f32.mrf.mxu1 }
 0x2b8   : > { %v9014_v7 = vadd.f32 %v2444_v19, %v2137_v46  ;;  %v9050_v20 = vpop.f32.mrf.mxu0 }
 0x2b9   : > { %v6939_v30 = vpop.f32.mrf.mxu1  ;;  %7122 = vmatmul.mubr.msk.bf16.gmra.mxu1 %vm1743_vm5, %v7430_v28  ;;  %v2169_v28 = vadd.f32 %v8869_v22, %v8642_v39  ;;  %v10078_v39 = vld [vmem:[#allocation6_spill] sm:$0xff] }
 0x2ba   : > { %v9021_v24 = vadd.f32 %v6939_v30, %v2158_v16  ;;  %7125 = vmatprep.mubr.msk.bf16.mxu1 %vm1743_vm5, %v7431_v54 }
 0x2bb   : > { %v2457_v41 = vpop.f32.mrf.mxu1 }
 0x2bc   : > { %v9026_v6 = vadd.f32 %v2457_v41, %v2150_v53  ;;  %v9060_v53 = vpop.f32.mrf.mxu0 }
 0x2bd   : > { %v6940_v60 = vpop.f32.mrf.mxu1  ;;  %10077 = vst [vmem:[#allocation91_spill] sm:$0xff] %v9060_v53 }
 0x2be   : > { %v9032_v42 = vadd.f32 %v6940_v60, %v2161_v48  ;;  %v2193_v48 = vadd.f32 %v8884_v13, %v8669_v32  ;;  %v9073_v27 = vpop.f32.mrf.mxu0  ;;  %v5251_v32 = vld [vmem:[%s9954_s7] sm:$0x3] }
 0x2bf   : > { %v2460_v1 = vpop.f32.mrf.mxu1  ;;  %10079 = vst [vmem:[#allocation6_spill] sm:$0xff] %v9073_v27  ;;  %7270 = vmatprep.subr.msk.bf16.mxu0 %vm1804_vm3, %v5251_v32  ;;  %v5320_v8 = vsel %vm1804_vm3, %v5251_v32, 0  ;;  %v10093_v32 = vld [vmem:[#allocation75_spill] sm:$0xff] }
 0x2c0   : > { %v9036_v3 = vadd.f32 %v2460_v1, %v2153_v34  ;;  %v2185_v34 = vadd.f32 %v8886_v47, %v8679_v33  ;;  %v9086_v13 = vpop.f32.mrf.mxu0  ;;  %v2198_v33 = vadd.f32 %v8898_v17, %v8694_v37  ;;  %7218 = vmatpush3.bf16.msra.mxu0 %v5320_v8  ;;  %v10095_v8 = vld [vmem:[#allocation49_spill] sm:$0xff] }
 0x2c1   : > { %v6943_v14 = vpop.f32.mrf.mxu1  ;;  %7126 = vmatmul.mubr.msk.bf16.gmra.mxu1 %vm1743_vm5, %v7432_v5  ;;  %10080 = vst [vmem:[#allocation92_spill] sm:$0xff] %v9086_v13  ;;  %v10122_v13 = vld [vmem:[#allocation89_spill] sm:$0xff] }
 0x2c2   : > { %v9043_v46 = vadd.f32 %v6943_v14, %v2174_v50  ;;  %7129 = vmatprep.mubr.msk.bf16.mxu1 %vm1743_vm5, %v7433_v61  ;;  %v10081_v61 = vld [vmem:[#allocation7_spill] sm:$0xff] }
 0x2c3   : > { %v2473_v15 = vpop.f32.mrf.mxu1 }
 0x2c4   : > { %v9048_v4 = vadd.f32 %v2473_v15, %v2166_v38  ;;  %v10083_v38 = vld [vmem:[#allocation41_spill] sm:$0xff]  ;;  %v10084_v15 = vld [vmem:[#allocation70_spill] sm:$0xff] }
 0x2c5   : > { %v6944_v19 = vpop.f32.mrf.mxu1 }
 0x2c6   : > { %v9054_v16 = vadd.f32 %v6944_v19, %v2177_v29  ;;  %v2209_v29 = vadd.f32 %v10084_v15, %v10083_v38 }
 0x2c7   : > { %v2476_v54 = vpop.f32.mrf.mxu1 }
 0x2c8   : > { %v9058_v30 = vadd.f32 %v2476_v54, %v2169_v28  ;;  %v9102_v28 = vpop.f32.mrf.mxu0 }
 0x2c9   : > { %v6947_v49 = vpop.f32.mrf.mxu1  ;;  %7130 = vmatmul.mubr.msk.bf16.gmra.mxu1 %vm1743_vm5, %v7434_v40  ;;  %10085 = vst [vmem:[#allocation7_spill] sm:$0xff] %v9102_v28  ;;  %v10086_v40 = vld [vmem:[#allocation43_spill] sm:$0xff] }
 0x2ca   : > { %v9065_v41 = vadd.f32 %v6947_v49, %v2190_v25  ;;  %7177 = vmatprep.mubr.msk.bf16.mxu1 %vm1743_vm5, %v10078_v39  ;;  %v10087_v25 = vld [vmem:[#allocation72_spill] sm:$0xff]  ;;  %v10089_v39 = vld [vmem:[#allocation73_spill] sm:$0xff] }
 0x2cb   : > { %v2489_v22 = vpop.f32.mrf.mxu1  ;;  %v2201_v37 = vadd.f32 %v10087_v25, %v10086_v40  ;;  %v10098_v40 = vld [vmem:[#allocation51_spill] sm:$0xff]  ;;  %v10099_v25 = vld [vmem:[#allocation78_spill] sm:$0xff] }
 0x2cc   : > { %v9071_v11 = vadd.f32 %v2489_v22, %v2182_v10  ;;  %v10088_v10 = vld [vmem:[#allocation45_spill] sm:$0xff] }
 0x2cd   : > { %v6948_v60 = vpop.f32.mrf.mxu1  ;;  %v2222_v22 = vadd.f32 %v10089_v39, %v10088_v10  ;;  %v10100_v39 = vld [vmem:[#allocation53_spill] sm:$0xff] }
 0x2ce   : > { %v9077_v1 = vadd.f32 %v6948_v60, %v2193_v48  ;;  %v9112_v60 = vpop.f32.mrf.mxu0 }
 0x2cf   : > { %v2492_v44 = vpop.f32.mrf.mxu1  ;;  %10090 = vst [vmem:[#allocation8_spill] sm:$0xff] %v9112_v60 }
 0x2d0   : > { %v9081_v5 = vadd.f32 %v2492_v44, %v2185_v34  ;;  %v10091_v44 = vld [vmem:[#allocation9_spill] sm:$0xff] }
 0x2d1   : > { %v6951_v50 = vpop.f32.mrf.mxu1  ;;  %7178 = vmatmul.mubr.msk.bf16.vlgmr.msra.gmra.mxu1 %vm1743_vm5, %v10081_v61 }
 0x2d2   : > { %v9093_v47 = vadd.f32 %v6951_v50, %v2206_v9  ;;  %7181 = vmatprep.mubr.msk.bf16.mxu1 %vm1743_vm5, %v10082_v55  ;;  %v10092_v9 = vld [vmem:[#allocation47_spill] sm:$0xff] }
 0x2d3   : > { %v2505_v14 = vpop.f32.mrf.mxu1  ;;  %v2214_v50 = vadd.f32 %v10093_v32, %v10092_v9  ;;  %v10102_v32 = vld [vmem:[#allocation12_spill] sm:$0xff] }
 0x2d4   : > { %v9100_v19 = vadd.f32 %v2505_v14, %v2198_v33  ;;  %v10094_v33 = vld [vmem:[#allocation10_spill] sm:$0xff]  ;;  %v10096_v14 = vld [vmem:[#allocation76_spill] sm:$0xff] }
 0x2d5   : > { %v6952_v54 = vpop.f32.mrf.mxu1  ;;  %v2225_v38 = vadd.f32 %v10096_v14, %v10095_v8  ;;  %v10105_v14 = vld [vmem:[#allocation14_spill] sm:$0xff] }
 0x2d6   : > { %v9106_v17 = vadd.f32 %v6952_v54, %v2209_v29  ;;  %v9126_v29 = vpop.f32.mrf.mxu0 }
 0x2d7   : > { %v2508_v49 = vpop.f32.mrf.mxu1  ;;  %10097 = vst [vmem:[#allocation41_spill] sm:$0xff] %v9126_v29 }
 0x2d8   : > { %v9110_v48 = vadd.f32 %v2508_v49, %v2201_v37  ;;  %v2217_v37 = vadd.f32 %v10099_v25, %v10098_v40  ;;  %v10107_v40 = vld [vmem:[#allocation82_spill] sm:$0xff] }
 0x2d9   : > { %v6955_v34 = vpop.f32.mrf.mxu1  ;;  %7182 = vmatmul.mubr.msk.bf16.gmra.mxu1 %vm1743_vm5, %v10091_v44  ;;  %v9136_v44 = vpop.f32.mrf.mxu0 }
 0x2da   : > { %v9118_v61 = vadd.f32 %v6955_v34, %v2222_v22  ;;  %7185 = vmatprep.mubr.msk.bf16.mxu1 %vm1743_vm5, %v10094_v33  ;;  %v2238_v22 = vadd.f32 %v8922_v31, %v10100_v39  ;;  %10101 = vst [vmem:[#allocation70_spill] sm:$0xff] %v9136_v44  ;;  %v10104_v33 = vld [vmem:[#allocation80_spill] sm:$0xff]  ;;  %v10109_v39 = vld [vmem:[#allocation59_spill] sm:$0xff] }
 0x2db   : > { %v2521_v55 = vpop.f32.mrf.mxu1  ;;  %v10110_v44 = vld [vmem:[#allocation83_spill] sm:$0xff] }
 0x2dc   : > { %v9124_v15 = vadd.f32 %v2521_v55, %v2214_v50  ;;  %v10103_v50 = vld [vmem:[#allocation55_spill] sm:$0xff] }
 0x2dd   : > { %v6956_v54 = vpop.f32.mrf.mxu1  ;;  %v2230_v55 = vadd.f32 %v10104_v33, %v10103_v50 }
 0x2de   : > { %v9130_v49 = vadd.f32 %v6956_v54, %v2225_v38  ;;  %v10106_v54 = vld [vmem:[#allocation57_spill] sm:$0xff] }
 0x2df   : > { %v2524_v10 = vpop.f32.mrf.mxu1  ;;  %v2241_v31 = vadd.f32 %v10107_v40, %v10106_v54  ;;  %v10114_v54 = vld [vmem:[#allocation16_spill] sm:$0xff] }
 0x2e0   : > { %v9134_v34 = vadd.f32 %v2524_v10, %v2217_v37  ;;  %v9150_v37 = vpop.f32.mrf.mxu0 }
 0x2e1   : > { %v6959_v9 = vpop.f32.mrf.mxu1  ;;  %7186 = vmatmul.mubr.msk.bf16.gmra.mxu1 %vm1743_vm5, %v10102_v32  ;;  %10108 = vst [vmem:[#allocation43_spill] sm:$0xff] %v9150_v37  ;;  %v2233_v32 = vadd.f32 %v10110_v44, %v10109_v39  ;;  %v10117_v44 = vld [vmem:[#allocation18_spill] sm:$0xff]  ;;  %v10119_v39 = vld [vmem:[#allocation88_spill] sm:$0xff] }
 0x2e2   : > { %v9142_v8 = vadd.f32 %v6959_v9, %v2238_v22  ;;  %7189 = vmatprep.mubr.msk.bf16.mxu1 %vm1743_vm5, %v10105_v14  ;;  %v10111_v22 = vld [vmem:[#allocation61_spill] sm:$0xff]  ;;  %v9160_v14 = vpop.f32.mrf.mxu0 }
 0x2e3   : > { %v2537_v38 = vpop.f32.mrf.mxu1  ;;  %v10112_v9 = vld [vmem:[#allocation85_spill] sm:$0xff]  ;;  %10113 = vst [vmem:[#allocation72_spill] sm:$0xff] %v9160_v14  ;;  %v10121_v14 = vld [vmem:[#allocation64_spill] sm:$0xff] }
 0x2e4   : > { %v9148_v25 = vadd.f32 %v2537_v38, %v2230_v55  ;;  %v2254_v33 = vadd.f32 %v10112_v9, %v10111_v22  ;;  %v10115_v55 = vld [vmem:[#allocation13_spill] sm:$0xff]  ;;  %v10116_v38 = vld [vmem:[#allocation86_spill] sm:$0xff] }
 0x2e5   : > { %v6960_v10 = vpop.f32.mrf.mxu1  ;;  %v2246_v40 = vadd.f32 %v10116_v38, %v10115_v55 }
 0x2e6   : > { %v9154_v29 = vadd.f32 %v6960_v10, %v2241_v31  ;;  %v10118_v10 = vld [vmem:[#allocation62_spill] sm:$0xff] }
 0x2e7   : > { %v2540_v50 = vpop.f32.mrf.mxu1  ;;  %v2257_v22 = vadd.f32 %v10119_v39, %v10118_v10  ;;  %v10125_v10 = vld [vmem:[#allocation20_spill] sm:$0xff] }
 0x2e8   : > { %v9158_v60 = vadd.f32 %v2540_v50, %v2233_v32  ;;  %v9174_v50 = vpop.f32.mrf.mxu0 }
 0x2e9   : > { %v6963_v28 = vpop.f32.mrf.mxu1  ;;  %7190 = vmatmul.mubr.msk.bf16.gmra.mxu1 %vm1743_vm5, %v10114_v54  ;;  %10120 = vst [vmem:[#allocation45_spill] sm:$0xff] %v9174_v50  ;;  %v2249_v54 = vadd.f32 %v10122_v13, %v10121_v14  ;;  %v10127_v13 = vld [vmem:[#allocation36_spill] sm:$0xff]  ;;  %v10157_v50 = vld [vmem:[#allocation34_spill] sm:$0xff] }
 0x2ea   : > { %v9166_v37 = vadd.f32 %v6963_v28, %v2254_v33  ;;  %7193 = vmatprep.mubr.msk.bf16.mxu1 %vm1743_vm5, %v10117_v44  ;;  %v10123_v33 = vld [vmem:[#allocation35_spill] sm:$0xff]  ;;  %v9184_v44 = vpop.f32.mrf.mxu0  ;;  %v3006_v14 = vadd.f32 %v10127_v13, %v8960_v45 }
 0x2eb   : > { %v2553_v31 = vpop.f32.mrf.mxu1  ;;  %v3008_v38 = vadd.f32 %v10123_v33, %v8955_v56  ;;  %10124 = vst [vmem:[#allocation73_spill] sm:$0xff] %v9184_v44 }
 0x2ec   : > { %v9172_v32 = vadd.f32 %v2553_v31, %v2246_v40  ;;  %v10126_v31 = vld [vmem:[#allocation22_spill] sm:$0xff] }
 0x2ed   : > { %v6964_v9 = vpop.f32.mrf.mxu1 }
 0x2ee   : > { %v9178_v27 = vadd.f32 %v6964_v9, %v2257_v22  ;;  %v10128_v9 = vld [vmem:[#allocation37_spill] sm:$0xff] }
 0x2ef   : > { %v2556_v55 = vpop.f32.mrf.mxu1  ;;  %v3009_v56 = vadd.f32 %v10128_v9, %v8966_v26  ;;  %v10134_v9 = vld [vmem:[#allocation26_spill] sm:$0xff] }
 0x2f0   : > { %v9180_v28 = vadd.f32 %v2556_v55, %v2249_v54  ;;  %v9198_v54 = vpop.f32.mrf.mxu0 }
 0x2f1   : > { %v7011_v53 = vpop.f32.mrf.mxu1  ;;  %7194 = vmatmul.mubr.msk.bf16.gmra.mxu1 %vm1743_vm5, %v10125_v10  ;;  %10129 = vst [vmem:[#allocation9_spill] sm:$0xff] %v9198_v54 }
 0x2f2   : > { %v9188_v40 = vadd.f32 %v7011_v53, %v3008_v38  ;;  %7197 = vmatprep.mubr.msk.bf16.mxu1 %vm1743_vm5, %v10126_v31  ;;  %v10130_v53 = vld [vmem:[#allocation38_spill] sm:$0xff]  ;;  %v10131_v31 = vld [vmem:[#allocation39_spill] sm:$0xff]  ;;  %v9208_v13 = vpop.f32.mrf.mxu0 }
 0x2f3   : > { %v3330_v39 = vpop.f32.mrf.mxu1  ;;  %v3007_v38 = vadd.f32 %v10130_v53, %v8970_v62  ;;  %v3012_v45 = vadd.f32 %v10131_v31, %v8977_v36  ;;  %10132 = vst [vmem:[#allocation47_spill] sm:$0xff] %v9208_v13 }
 0x2f4   : > { %v9194_v22 = vadd.f32 %v3330_v39, %v3006_v14  ;;  %v10133_v39 = vld [vmem:[#allocation24_spill] sm:$0xff] }
 0x2f5   : > { %v7012_v55 = vpop.f32.mrf.mxu1 }
 0x2f6   : > { %v9200_v33 = vadd.f32 %v7012_v55, %v3009_v56  ;;  %v10135_v56 = vld [vmem:[#allocation40_spill] sm:$0xff] }
 0x2f7   : > { %v3333_v10 = vpop.f32.mrf.mxu1  ;;  %v3010_v62 = vadd.f32 %v10135_v56, %v8982_v0 }
 0x2f8   : > { %v9204_v44 = vadd.f32 %v3333_v10, %v3007_v38  ;;  %v10136_v38 = vld [vmem:[#allocation42_spill] sm:$0xff]  ;;  %v9222_v10 = vpop.f32.mrf.mxu0 }
 0x2f9   : > { %v7015_v14 = vpop.f32.mrf.mxu1  ;;  %7198 = vmatmul.mubr.msk.bf16.gmra.mxu1 %vm1743_vm5, %v10133_v39  ;;  %v3013_v36 = vadd.f32 %v10136_v38, %v8988_v63  ;;  %10137 = vst [vmem:[#allocation75_spill] sm:$0xff] %v9222_v10  ;;  %v10142_v38 = vld [vmem:[#allocation3_spill] sm:$0xff] }
 0x2fa   : > { %v9212_v26 = vadd.f32 %v7015_v14, %v3012_v45  ;;  %7201 = vmatprep.mubr.msk.bf16.mxu1 %vm1743_vm5, %v10134_v9  ;;  %v10138_v45 = vld [vmem:[#allocation44_spill] sm:$0xff]  ;;  %v10139_v9 = vld [vmem:[#allocation46_spill] sm:$0xff]  ;;  %v9232_v56 = vpop.f32.mrf.mxu0 }
 0x2fb   : > { %v3346_v55 = vpop.f32.mrf.mxu1  ;;  %v3011_v14 = vadd.f32 %v10138_v45, %v8992_v23  ;;  %v3016_v0 = vadd.f32 %v10139_v9, %v8999_v18  ;;  %10140 = vst [vmem:[#allocation10_spill] sm:$0xff] %v9232_v56 }
 0x2fc   : > { %v9218_v53 = vadd.f32 %v3346_v55, %v3010_v62  ;;  %v10141_v55 = vld [vmem:[#allocation28_spill] sm:$0xff] }
 0x2fd   : > { %v7016_v31 = vpop.f32.mrf.mxu1 }
 0x2fe   : > { %v9224_v13 = vadd.f32 %v7016_v31, %v3013_v36  ;;  %v10143_v36 = vld [vmem:[#allocation48_spill] sm:$0xff] }
 0x2ff   : > { %v3349_v39 = vpop.f32.mrf.mxu1  ;;  %v3014_v23 = vadd.f32 %v10143_v36, %v9004_v51 }
 0x300   : > { %v9228_v54 = vadd.f32 %v3349_v39, %v3011_v14  ;;  %v10144_v14 = vld [vmem:[#allocation50_spill] sm:$0xff]  ;;  %v9246_v39 = vpop.f32.mrf.mxu0 }
 0x301   : > { %v7019_v62 = vpop.f32.mrf.mxu1  ;;  %7202 = vmatmul.mubr.msk.bf16.gmra.mxu1 %vm1743_vm5, %v10141_v55  ;;  %v3017_v18 = vadd.f32 %v10144_v14, %v9010_v43  ;;  %10145 = vst [vmem:[#allocation49_spill] sm:$0xff] %v9246_v39  ;;  %v10150_v14 = vld [vmem:[#allocation33_spill] sm:$0xff] }
 0x302   : > { %v9236_v63 = vadd.f32 %v7019_v62, %v3016_v0  ;;  %7205 = vmatprep.mubr.msk.bf16.mxu1 %vm1743_vm5, %v10142_v38  ;;  %v10146_v0 = vld [vmem:[#allocation52_spill] sm:$0xff]  ;;  %v10147_v38 = vld [vmem:[#allocation54_spill] sm:$0xff]  ;;  %v9256_v36 = vpop.f32.mrf.mxu0 }
 0x303   : > { %v3362_v31 = vpop.f32.mrf.mxu1  ;;  %v3015_v62 = vadd.f32 %v10146_v0, %v9014_v7  ;;  %v3020_v51 = vadd.f32 %v10147_v38, %v9021_v24  ;;  %10148 = vst [vmem:[#allocation76_spill] sm:$0xff] %v9256_v36 }
 0x304   : > { %v9242_v45 = vadd.f32 %v3362_v31, %v3014_v23  ;;  %v10149_v31 = vld [vmem:[#allocation31_spill] sm:$0xff] }
 0x305   : > { %v7020_v9 = vpop.f32.mrf.mxu1 }
 0x306   : > { %v9248_v56 = vadd.f32 %v7020_v9, %v3017_v18  ;;  %v10151_v18 = vld [vmem:[#allocation56_spill] sm:$0xff] }
 0x307   : > { %v3365_v55 = vpop.f32.mrf.mxu1  ;;  %v3018_v7 = vadd.f32 %v10151_v18, %v9026_v6  ;;  %v7436_v18 = vld [vmem:[#allocation2 + $0xc8] ss:$0 sps:$4 sm:$0x33]  }
 0x308   : > { %v9252_v10 = vadd.f32 %v3365_v55, %v3015_v62  ;;  %v10152_v62 = vld [vmem:[#allocation58_spill] sm:$0xff]  ;;  %v9270_v55 = vpop.f32.mrf.mxu0 }
 0x309   : > { %v7023_v23 = vpop.f32.mrf.mxu1  ;;  %7206 = vmatmul.mubr.msk.bf16.gmra.mxu1 %vm1743_vm5, %v10149_v31  ;;  %v3021_v24 = vadd.f32 %v10152_v62, %v9032_v42  ;;  %10153 = vst [vmem:[#allocation51_spill] sm:$0xff] %v9270_v55  ;;  %v10158_v62 = vld [vmem:[#allocation5_spill] sm:$0xff] }
 0x30a   : > { %v9260_v43 = vadd.f32 %v7023_v23, %v3020_v51  ;;  %7209 = vmatprep.mubr.msk.bf16.mxu1 %vm1743_vm5, %v10150_v14  ;;  %v10154_v51 = vld [vmem:[#allocation60_spill] sm:$0xff]  ;;  %v10155_v14 = vld [vmem:[#allocation11_spill] sm:$0xff] }
 0x30b   : > { %v3378_v9 = vpop.f32.mrf.mxu1  ;;  %v3019_v23 = vadd.f32 %v10154_v51, %v9036_v3  ;;  %v3024_v6 = vadd.f32 %v10155_v14, %v9043_v46  ;;  %v10159_v3 = vld [vmem:[#allocation63_spill] sm:$0xff] }
 0x30c   : > { %v9266_v0 = vadd.f32 %v3378_v9, %v3018_v7  ;;  %v9280_v7 = vpop.f32.mrf.mxu0  ;;  %v10161_v46 = vld [vmem:[#allocation15_spill] sm:$0xff] }
 0x30d   : > { %v7024_v38 = vpop.f32.mrf.mxu1  ;;  %10156 = vst [vmem:[#allocation78_spill] sm:$0xff] %v9280_v7 }
 0x30e   : > { %v9272_v36 = vadd.f32 %v7024_v38, %v3021_v24  ;;  %v3022_v24 = vadd.f32 %v10159_v3, %v9048_v4  ;;  %v9294_v14 = vpop.f32.mrf.mxu0  ;;  %v10163_v4 = vld [vmem:[#allocation65_spill] sm:$0xff] }
 0x30f   : > { %v3381_v31 = vpop.f32.mrf.mxu1  ;;  %v3028_v3 = vadd.f32 %v10163_v4, %v9065_v41 }
 0x310   : > { %v9276_v39 = vadd.f32 %v3381_v31, %v3019_v23  ;;  %v3025_v23 = vadd.f32 %v10161_v46, %v9054_v16  ;;  %v4846_v31 = vrot.slane %v7436_v18, 2  ;;  %v9307_v16 = vpop.f32.mrf.mxu0  ;;  %v10166_v46 = vld [vmem:[#allocation19_spill] sm:$0xff] }
 0x311   : > { %v7027_v9 = vpop.f32.mrf.mxu1  ;;  %7210 = vmatmul.mubr.msk.bf16.gmra.mxu1 %vm1743_vm5, %v10157_v50  ;;  %v10162_v50 = vld [vmem:[#allocation17_spill] sm:$0xff] }
 0x312   : > { %v9284_v42 = vadd.f32 %v7027_v9, %v3024_v6  ;;  %7213 = vmatprep.mubr.msk.bf16.mxu1 %vm1743_vm5, %v10158_v62  ;;  %v3023_v6 = vadd.f32 %v10162_v50, %v9058_v30  ;;  %v3026_v30 = vadd.f32 %v10166_v46, %v9071_v11 }
 0x313   : > { %v3394_v38 = vpop.f32.mrf.mxu1 }
 0x314   : > { %v9290_v51 = vadd.f32 %v3394_v38, %v3022_v24  ;;  %v10164_v24 = vld [vmem:[#allocation4_spill] sm:$0xff] }
 0x315   : > { %v7028_v7 = vpop.f32.mrf.mxu1  ;;  %v10165_v38 = vrot.slane %v10164_v24, 2  ;;  %v10169_v24 = vld [vmem:[#allocation23_spill] sm:$0xff] }
 0x316   : > { %10160 = vst [vmem:[#allocation53_spill] sm:$0xff] %v9290_v51  ;;  %v9296_v55 = vadd.f32 %v7028_v7, %v3025_v23 }
 0x317   : > { %v3397_v9 = vpop.f32.mrf.mxu1  ;;  %v4847_v51 = vsel %vm2270_vm6, %v10165_v38, %v4846_v31  ;;  %v3027_v38 = vadd.f32 %v10169_v24, %v9081_v5 }
 0x318   : > { %v9300_v62 = vadd.f32 %v3397_v9, %v3023_v6  ;;  %v10167_v6 = vld [vmem:[#allocation21_spill] sm:$0xff]  ;;  %v9318_v9 = vpop.f32.mrf.mxu0 }
 0x319   : > { %v7031_v18 = vpop.f32.mrf.mxu1  ;;  %7214 = vmatmul.mubr.msk.bf16.gmra.mxu1 %vm1743_vm5, %v4847_v51  ;;  %v3029_v41 = vadd.f32 %v10167_v6, %v9077_v1  ;;  %10168 = vst [vmem:[#allocation12_spill] sm:$0xff] %v9318_v9  ;;  %v10172_v1 = vld [vmem:[#allocation27_spill] sm:$0xff] }
 0x31a   : > { %v9310_v7 = vadd.f32 %v7031_v18, %v3028_v3  ;;  %v10170_v18 = vld [vmem:[#allocation25_spill] sm:$0xff]  ;;  %v9328_v46 = vpop.f32.mrf.mxu0  ;;  %v3030_v6 = vadd.f32 %v10172_v1, %v9100_v19 }
 0x31b   : > { %v3410_v23 = vpop.f32.mrf.mxu1  ;;  %v3032_v11 = vadd.f32 %v10170_v18, %v9093_v47  ;;  %10171 = vst [vmem:[#allocation55_spill] sm:$0xff] %v9328_v46  ;;  %v10175_v47 = vld [vmem:[#allocation30_spill] sm:$0xff] }
 0x31c   : > { %v9314_v50 = vadd.f32 %v3410_v23, %v3026_v30  ;;  %v9338_v24 = vpop.f32.mrf.mxu0  ;;  %v3031_v18 = vadd.f32 %v10175_v47, %v9110_v48 }
 0x31d   : > { %v7032_v4 = vpop.f32.mrf.mxu1  ;;  %10174 = vst [vmem:[#allocation80_spill] sm:$0xff] %v9338_v24 }
 0x31e   : > { %v9320_v31 = vadd.f32 %v7032_v4, %v3029_v41  ;;  %v10173_v4 = vld [vmem:[#allocation29_spill] sm:$0xff]  ;;  %v9348_v1 = vpop.f32.mrf.mxu0 }
 0x31f   : > { %v3413_v51 = vpop.f32.mrf.mxu1  ;;  %v3033_v5 = vadd.f32 %v10173_v4, %v9106_v17  ;;  %10177 = vst [vmem:[#allocation14_spill] sm:$0xff] %v9348_v1  ;;  %v10178_v17 = vld [vmem:[#allocation66_spill] sm:$0xff] }
 0x320   : > { %v9324_v3 = vadd.f32 %v3413_v51, %v3027_v38  ;;  %v3034_v4 = vadd.f32 %v10178_v17, %v9124_v15  ;;  %v9358_v47 = vpop.f32.mrf.mxu0 }
 0x321   : > { %v7035_v30 = vpop.f32.mrf.mxu1  ;;  %10180 = vst [vmem:[#allocation57_spill] sm:$0xff] %v9358_v47 }
 0x322   : > { %v9330_v23 = vadd.f32 %v7035_v30, %v3032_v11  ;;  %v10176_v30 = vld [vmem:[#allocation32_spill] sm:$0xff]  ;;  %v9368_v17 = vpop.f32.mrf.mxu0 }
 0x323   : > { %v3426_v9 = vpop.f32.mrf.mxu1  ;;  %v3036_v19 = vadd.f32 %v10176_v30, %v9118_v61  ;;  %v10181_v61 = vld [vmem:[#allocation68_spill] sm:$0xff]  ;;  %10183 = vst [vmem:[#allocation82_spill] sm:$0xff] %v9368_v17 }
 0x324   : > { %v9334_v41 = vadd.f32 %v3426_v9, %v3030_v6  ;;  %v3035_v30 = vadd.f32 %v10181_v61, %v9134_v34  ;;  %v9378_v61 = vpop.f32.mrf.mxu0 }
 0x325   : > { %v7036_v38 = vpop.f32.mrf.mxu1  ;;  %10186 = vst [vmem:[#allocation59_spill] sm:$0xff] %v9378_v61 }
 0x326   : > { %v9340_v51 = vadd.f32 %v7036_v38, %v3033_v5  ;;  %v10179_v38 = vld [vmem:[#allocation67_spill] sm:$0xff] }
 0x327   : > { %v3429_v46 = vpop.f32.mrf.mxu1  ;;  %v3037_v48 = vadd.f32 %v10179_v38, %v9130_v49  ;;  %v10184_v49 = vld [vmem:[#allocation71_spill] sm:$0xff] }
 0x328   : > { %v9344_v11 = vadd.f32 %v3429_v46, %v3031_v18  ;;  %v3038_v38 = vadd.f32 %v10184_v49, %v9148_v25  ;;  %v9388_v49 = vpop.f32.mrf.mxu0 }
 0x329   : > { %v7039_v9 = vpop.f32.mrf.mxu1  ;;  %10189 = vst [vmem:[#allocation83_spill] sm:$0xff] %v9388_v49 }
 0x32a   : > { %v9350_v6 = vadd.f32 %v7039_v9, %v3036_v19  ;;  %v10182_v9 = vld [vmem:[#allocation69_spill] sm:$0xff] }
 0x32b   : > { %v3442_v24 = vpop.f32.mrf.mxu1  ;;  %v3040_v15 = vadd.f32 %v10182_v9, %v9142_v8  ;;  %v10187_v8 = vld [vmem:[#allocation77_spill] sm:$0xff] }
 0x32c   : > { %v9354_v5 = vadd.f32 %v3442_v24, %v3034_v4  ;;  %v3039_v9 = vadd.f32 %v10187_v8, %v9158_v60  ;;  %v9398_v8 = vpop.f32.mrf.mxu0 }
 0x32d   : > { %v7040_v46 = vpop.f32.mrf.mxu1 }
 0x32e   : > { %v9360_v18 = vadd.f32 %v7040_v46, %v3037_v48  ;;  %v10185_v46 = vld [vmem:[#allocation74_spill] sm:$0xff] }
 0x32f   : > { %v3445_v1 = vpop.f32.mrf.mxu1  ;;  %v3041_v34 = vadd.f32 %v10185_v46, %v9154_v29  ;;  %v10190_v29 = vld [vmem:[#allocation81_spill] sm:$0xff] }
 0x330   : > { %v9364_v19 = vadd.f32 %v3445_v1, %v3035_v30  ;;  %v3042_v46 = vadd.f32 %v10190_v29, %v9172_v32  ;;  %v9408_v29 = vpop.f32.mrf.mxu0 }
 0x331   : > { %v7043_v24 = vpop.f32.mrf.mxu1 }
 0x332   : > { %v9370_v4 = vadd.f32 %v7043_v24, %v3040_v15  ;;  %v10188_v24 = vld [vmem:[#allocation79_spill] sm:$0xff] }
 0x333   : > { %v3458_v47 = vpop.f32.mrf.mxu1  ;;  %v3044_v25 = vadd.f32 %v10188_v24, %v9166_v37  ;;  %v10192_v37 = vld [vmem:[#allocation87_spill] sm:$0xff] }
 0x334   : > { %v9374_v48 = vadd.f32 %v3458_v47, %v3038_v38  ;;  %v3043_v24 = vadd.f32 %v10192_v37, %v9180_v28  ;;  %v3839_v28 = vadd.f32 %v8972_v57, %v9200_v33  ;;  %v3840_v57 = vadd.f32 %v9006_v12, %v9218_v53 }
 0x335   : > { %v7044_v1 = vpop.f32.mrf.mxu1  ;;  %v3846_v12 = vadd.f32 %v9038_v58, %v9236_v63  ;;  %v10195_v58 = vld [vmem:[#allocation6_spill] sm:$0xff] }
 0x336   : > { %v9380_v30 = vadd.f32 %v7044_v1, %v3041_v34  ;;  %v10191_v1 = vld [vmem:[#allocation84_spill] sm:$0xff]  ;;  %v3845_v63 = vadd.f32 %v10195_v58, %v9252_v10 }
 0x337   : > { %v3461_v17 = vpop.f32.mrf.mxu1  ;;  %v3045_v60 = vadd.f32 %v10191_v1, %v9178_v27  ;;  %v3836_v27 = vadd.f32 %v8962_v2, %v9194_v22  ;;  %v3842_v2 = vadd.f32 %v8994_v35, %v9212_v26  ;;  %v3841_v35 = vadd.f32 %v9028_v59, %v9228_v54 }
 0x338   : > { %v9384_v15 = vadd.f32 %v3461_v17, %v3039_v9 }
 0x339   : > { %v7047_v47 = vpop.f32.mrf.mxu1 }
 0x33a   : > { %v9390_v38 = vadd.f32 %v7047_v47, %v3044_v25  ;;  %v10193_v47 = vld [vmem:[#allocation90_spill] sm:$0xff] }
 0x33b   : > { %v3474_v61 = vpop.f32.mrf.mxu1  ;;  %v3838_v32 = vadd.f32 %v10193_v47, %v9188_v40  ;;  %v3837_v40 = vadd.f32 %v8984_v21, %v9204_v44  ;;  %v3843_v21 = vadd.f32 %v9016_v52, %v9224_v13  ;;  %v3844_v52 = vadd.f32 %v9050_v20, %v9242_v45 }
 0x33c   : > { %v9394_v34 = vadd.f32 %v3474_v61, %v3042_v46 }
 0x33d   : > { %v7048_v17 = vpop.f32.mrf.mxu1 }
 0x33e   : > { %v9400_v9 = vadd.f32 %v7048_v17, %v3045_v60  ;;  %v9418_v17 = vpop.f32.mrf.mxu0 }
 0x33f   : > { %v3477_v49 = vpop.f32.mrf.mxu1 }
 0x340   : > { %v9404_v25 = vadd.f32 %v3477_v49, %v3043_v24  ;;  %v9428_v22 = vpop.f32.mrf.mxu0 }
 0x341   : > { %v7095_v61 = vpop.f32.mrf.mxu1 }
 0x342   : > { %v9410_v46 = vadd.f32 %v7095_v61, %v3838_v32  ;;  %v9438_v44 = vpop.f32.mrf.mxu0 }
 0x343   : > { %v4115_v1 = vpop.f32.mrf.mxu1 }
 0x344   : > { %v9414_v60 = vadd.f32 %v4115_v1, %v3836_v27  ;;  %v9448_v53 = vpop.f32.mrf.mxu0 }
 0x345   : > { %v7096_v49 = vpop.f32.mrf.mxu1 }
 0x346   : > { %v9420_v37 = vadd.f32 %v7096_v49, %v3839_v28  ;;  %v9458_v54 = vpop.f32.mrf.mxu0 }
 0x347   : > { %v4118_v24 = vpop.f32.mrf.mxu1 }
 0x348   : > { %v9424_v47 = vadd.f32 %v4118_v24, %v3837_v40  ;;  %v9468_v45 = vpop.f32.mrf.mxu0 }
 0x349   : > { %v7099_v32 = vpop.f32.mrf.mxu1 }
 0x34a   : > { %v9430_v61 = vadd.f32 %v7099_v32, %v3842_v2  ;;  %v10194_v32 = vld [vmem:[#allocation91_spill] sm:$0xff] }
 0x34b   : > { %v4131_v33 = vpop.f32.mrf.mxu1  ;;  %v3847_v59 = vadd.f32 %v10194_v32, %v9248_v56  ;;  %v10197_v56 = vld [vmem:[#allocation7_spill] sm:$0xff]  ;;  %v10199_v32 = vld [vmem:[#allocation8_spill] sm:$0xff] }
 0x34c   : > { %v9434_v27 = vadd.f32 %v4131_v33, %v3840_v57  ;;  %v3851_v10 = vadd.f32 %v10199_v32, %v9272_v36  ;;  %v10203_v36 = vld [vmem:[#allocation53_spill] sm:$0xff] }
 0x34d   : > { %v7100_v1 = vpop.f32.mrf.mxu1 }
 0x34e   : > { %v9440_v28 = vadd.f32 %v7100_v1, %v3843_v21 }
 0x34f   : > { %v4134_v26 = vpop.f32.mrf.mxu1 }
 0x350   : > { %v9444_v49 = vadd.f32 %v4134_v26, %v3841_v35  ;;  %v10196_v35 = vld [vmem:[#allocation92_spill] sm:$0xff] }
 0x351   : > { %v7103_v40 = vpop.f32.mrf.mxu1  ;;  %v3850_v20 = vadd.f32 %v10196_v35, %v9260_v43  ;;  %v10200_v43 = vld [vmem:[#allocation41_spill] sm:$0xff] }
 0x352   : > { %v9450_v24 = vadd.f32 %v7103_v40, %v3846_v12  ;;  %v3848_v40 = vadd.f32 %v10197_v56, %v9266_v0 }
 0x353   : > { %v4147_v13 = vpop.f32.mrf.mxu1 }
 0x354   : > { %v9454_v2 = vadd.f32 %v4147_v13, %v3844_v52 }
 0x355   : > { %v7104_v57 = vpop.f32.mrf.mxu1 }
 0x356   : > { %v9460_v33 = vadd.f32 %v7104_v57, %v3847_v59  ;;  %v9478_v59 = vpop.f32.mrf.mxu0 }
 0x357   : > { %v4150_v21 = vpop.f32.mrf.mxu1 }
 0x358   : > { %v9464_v1 = vadd.f32 %v4150_v21, %v3845_v63  ;;  %v3849_v63 = vadd.f32 %v10200_v43, %v9276_v39 }
 0x359   : > { %v7107_v26 = vpop.f32.mrf.mxu1 }
 0x35a   : > { %v9470_v12 = vadd.f32 %v7107_v26, %v3850_v20  ;;  %v10202_v20 = vld [vmem:[#allocation70_spill] sm:$0xff]  ;;  %v9488_v26 = vpop.f32.mrf.mxu0 }
 0x35b   : > { %v4163_v52 = vpop.f32.mrf.mxu1  ;;  %v3854_v0 = vadd.f32 %v10202_v20, %v9284_v42  ;;  %v10207_v42 = vld [vmem:[#allocation45_spill] sm:$0xff] }
 0x35c   : > { %v9474_v13 = vadd.f32 %v4163_v52, %v3848_v40  ;;  %v10204_v52 = vld [vmem:[#allocation43_spill] sm:$0xff]  ;;  %v9498_v43 = vpop.f32.mrf.mxu0  ;;  %v3853_v20 = vadd.f32 %v10207_v42, %v9300_v62 }
 0x35d   : > { %v7108_v57 = vpop.f32.mrf.mxu1  ;;  %v3852_v32 = vadd.f32 %v10204_v52, %v10203_v36 }
 0x35e   : > { %10198 = vst [vmem:[#allocation61_spill] sm:$0xff] %v9474_v13  ;;  %v9480_v58 = vadd.f32 %v7108_v57, %v3851_v10  ;;  %v10206_v57 = vld [vmem:[#allocation72_spill] sm:$0xff]  ;;  %v9508_v52 = vpop.f32.mrf.mxu0 }
 0x35f   : > { %v4166_v21 = vpop.f32.mrf.mxu1  ;;  %v3855_v39 = vadd.f32 %v10206_v57, %v9296_v55  ;;  %v10210_v55 = vld [vmem:[#allocation9_spill] sm:$0xff] }
 0x360   : > { %v9484_v35 = vadd.f32 %v4166_v21, %v3849_v63  ;;  %v3856_v57 = vadd.f32 %v10210_v55, %v9314_v50  ;;  %v9518_v42 = vpop.f32.mrf.mxu0 }
 0x361   : > { %v7111_v56 = vpop.f32.mrf.mxu1 }
 0x362   : > { %10201 = vst [vmem:[#allocation85_spill] sm:$0xff] %v9484_v35  ;;  %v9490_v40 = vadd.f32 %v7111_v56, %v3854_v0  ;;  %v10209_v56 = vld [vmem:[#allocation73_spill] sm:$0xff]  ;;  %v9528_v55 = vpop.f32.mrf.mxu0 }
 0x363   : > { %v4179_v13 = vpop.f32.mrf.mxu1  ;;  %v3858_v36 = vadd.f32 %v10209_v56, %v9310_v7  ;;  %v10213_v7 = vld [vmem:[#allocation75_spill] sm:$0xff] }
 0x364   : > { %v9494_v10 = vadd.f32 %v4179_v13, %v3852_v32  ;;  %v3857_v56 = vadd.f32 %v10213_v7, %v9324_v3  ;;  %v9538_v7 = vpop.f32.mrf.mxu0 }
 0x365   : > { %v7112_v63 = vpop.f32.mrf.mxu1 }
 0x366   : > { %10205 = vst [vmem:[#allocation16_spill] sm:$0xff] %v9494_v10  ;;  %v9500_v21 = vadd.f32 %v7112_v63, %v3855_v39  ;;  %v10212_v63 = vld [vmem:[#allocation47_spill] sm:$0xff] }
 0x367   : > { %v4182_v35 = vpop.f32.mrf.mxu1  ;;  %v3859_v62 = vadd.f32 %v10212_v63, %v9320_v31  ;;  %v10216_v31 = vld [vmem:[#allocation49_spill] sm:$0xff] }
 0x368   : > { %v9504_v0 = vadd.f32 %v4182_v35, %v3853_v20  ;;  %v3860_v63 = vadd.f32 %v10216_v31, %v9334_v41  ;;  %v9548_v31 = vpop.f32.mrf.mxu0 }
 0x369   : > { %v7115_v13 = vpop.f32.mrf.mxu1 }
 0x36a   : > { %10208 = vst [vmem:[#allocation13_spill] sm:$0xff] %v9504_v0  ;;  %v9510_v32 = vadd.f32 %v7115_v13, %v3858_v36  ;;  %v10215_v13 = vld [vmem:[#allocation10_spill] sm:$0xff] }
 0x36b   : > { %v4195_v10 = vpop.f32.mrf.mxu1  ;;  %v3862_v50 = vadd.f32 %v10215_v13, %v9330_v23  ;;  %v10218_v23 = vld [vmem:[#allocation51_spill] sm:$0xff] }
 0x36c   : > { %v9514_v39 = vadd.f32 %v4195_v10, %v3856_v57  ;;  %v3861_v13 = vadd.f32 %v10218_v23, %v9344_v11  ;;  %v3867_v11 = vadd.f32 %v9307_v16, %v9360_v18  ;;  %v10224_v16 = vld [vmem:[#allocation80_spill] sm:$0xff] }
 0x36d   : > { %v7116_v35 = vpop.f32.mrf.mxu1  ;;  %v3868_v18 = vadd.f32 %v10224_v16, %v9374_v48 }
 0x36e   : > { %10211 = vst [vmem:[#allocation86_spill] sm:$0xff] %v9514_v39  ;;  %v9520_v20 = vadd.f32 %v7116_v35, %v3859_v62  ;;  %v10217_v35 = vld [vmem:[#allocation76_spill] sm:$0xff] }
 0x36f   : > { %v4198_v0 = vpop.f32.mrf.mxu1  ;;  %v3863_v3 = vadd.f32 %v10217_v35, %v9340_v51  ;;  %v3864_v51 = vadd.f32 %v9294_v14, %v9354_v5 }
 0x370   : > { %v9524_v36 = vadd.f32 %v4198_v0, %v3857_v56 }
 0x371   : > { %v7119_v10 = vpop.f32.mrf.mxu1 }
 0x372   : > { %10214 = vst [vmem:[#allocation18_spill] sm:$0xff] %v9524_v36  ;;  %v9530_v57 = vadd.f32 %v7119_v10, %v3862_v50  ;;  %v10219_v10 = vld [vmem:[#allocation78_spill] sm:$0xff] }
 0x373   : > { %v4211_v39 = vpop.f32.mrf.mxu1  ;;  %v3866_v41 = vadd.f32 %v10219_v10, %v9350_v6  ;;  %v10221_v6 = vld [vmem:[#allocation12_spill] sm:$0xff] }
 0x374   : > { %v9534_v62 = vadd.f32 %v4211_v39, %v3860_v63 }
 0x375   : > { %v7120_v0 = vpop.f32.mrf.mxu1 }
 0x376   : > { %v9540_v56 = vadd.f32 %v7120_v0, %v3863_v3  ;;  %v9558_v0 = vpop.f32.mrf.mxu0 }
 0x377   : > { %v4214_v36 = vpop.f32.mrf.mxu1 }
 0x378   : > { %v9544_v50 = vadd.f32 %v4214_v36, %v3861_v13  ;;  %v3865_v13 = vadd.f32 %v10221_v6, %v9364_v19  ;;  %v9568_v5 = vpop.f32.mrf.mxu0 }
 0x379   : > { %v7123_v39 = vpop.f32.mrf.mxu1 }
 0x37a   : > { %v9550_v63 = vadd.f32 %v7123_v39, %v3866_v41  ;;  %v10223_v39 = vld [vmem:[#allocation55_spill] sm:$0xff]  ;;  %v9578_v6 = vpop.f32.mrf.mxu0 }
 0x37b   : > { %v4227_v35 = vpop.f32.mrf.mxu1  ;;  %v3870_v14 = vadd.f32 %v10223_v39, %v9370_v4  ;;  %v10227_v4 = vld [vmem:[#allocation57_spill] sm:$0xff] }
 0x37c   : > { %v9554_v3 = vadd.f32 %v4227_v35, %v3864_v51  ;;  %v3869_v39 = vadd.f32 %v10227_v4, %v9384_v15  ;;  %v9588_v16 = vpop.f32.mrf.mxu0 }
 0x37d   : > { %v7124_v36 = vpop.f32.mrf.mxu1 }
 0x37e   : > { %10220 = vst [vmem:[#allocation62_spill] sm:$0xff] %v9554_v3  ;;  %v9560_v23 = vadd.f32 %v7124_v36, %v3867_v11  ;;  %v10226_v36 = vld [vmem:[#allocation14_spill] sm:$0xff]  ;;  %v9598_v4 = vpop.f32.mrf.mxu0 }
 0x37f   : > { %v4230_v10 = vpop.f32.mrf.mxu1  ;;  %v3871_v19 = vadd.f32 %v10226_v36, %v9380_v30  ;;  %v10229_v30 = vld [vmem:[#allocation59_spill] sm:$0xff] }
 0x380   : > { %v9564_v41 = vadd.f32 %v4230_v10, %v3865_v13  ;;  %v3872_v36 = vadd.f32 %v10229_v30, %v9394_v34  ;;  %v4759_v34 = vadd.f32 %v9408_v29, %v9410_v46 }
 0x381   : > { %v7127_v51 = vpop.f32.mrf.mxu1 }
 0x382   : > { %10222 = vst [vmem:[#allocation88_spill] sm:$0xff] %v9564_v41  ;;  %v9570_v35 = vadd.f32 %v7127_v51, %v3870_v14  ;;  %v10228_v51 = vld [vmem:[#allocation82_spill] sm:$0xff] }
 0x383   : > { %v4243_v3 = vpop.f32.mrf.mxu1  ;;  %v3874_v48 = vadd.f32 %v10228_v51, %v9390_v38  ;;  %v3873_v38 = vadd.f32 %v9398_v8, %v9404_v25  ;;  %v4760_v25 = vadd.f32 %v9428_v22, %v9420_v37  ;;  %v4761_v22 = vadd.f32 %v9458_v54, %v9434_v27 }
 0x384   : > { %v9574_v11 = vadd.f32 %v4243_v3, %v3868_v18  ;;  %v4762_v54 = vadd.f32 %v9478_v59, %v9444_v49 }
 0x385   : > { %v7128_v13 = vpop.f32.mrf.mxu1 }
 0x386   : > { %10225 = vst [vmem:[#allocation64_spill] sm:$0xff] %v9574_v11  ;;  %v9580_v10 = vadd.f32 %v7128_v13, %v3871_v19  ;;  %v10230_v13 = vld [vmem:[#allocation83_spill] sm:$0xff] }
 0x387   : > { %v4246_v41 = vpop.f32.mrf.mxu1  ;;  %v3875_v15 = vadd.f32 %v10230_v13, %v9400_v9  ;;  %v4757_v9 = vadd.f32 %v9418_v17, %v9414_v60 }
 0x388   : > { %v9584_v14 = vadd.f32 %v4246_v41, %v3869_v39 }
 0x389   : > { %v7131_v3 = vpop.f32.mrf.mxu1 }
 0x38a   : > { %v9590_v18 = vadd.f32 %v7131_v3, %v3874_v48  ;;  %v9608_v3 = vpop.f32.mrf.mxu0 }
 0x38b   : > { %v4259_v11 = vpop.f32.mrf.mxu1 }
 0x38c   : > { %v9594_v19 = vadd.f32 %v4259_v11, %v3872_v36  ;;  %v9615_v36 = vld [vmem:[%s9953_s6] ss:$0 sm:$0xff] }
 0x38d   : > { %v7132_v41 = vpop.f32.mrf.mxu1 }
 0x38e   : > { %v9600_v39 = vadd.f32 %v7132_v41, %v3875_v15  ;;  %v9619_v15 = vpop.f32.mrf.mxu0 }
 0x38f   : > { %v4262_v51 = vpop.f32.mrf.mxu1 }
 0x390   : > { %10231 = vst [vmem:[#allocation89_spill] sm:$0xff] %v9600_v39  ;;  %v9604_v48 = vadd.f32 %v4262_v51, %v3873_v38  ;;  %v4758_v38 = vadd.f32 %v9438_v44, %v9424_v47 }
 0x391   : > { %v7179_v11 = vpop.f32.mrf.mxu1 }
 0x392   : > { %10232 = vst [vmem:[#allocation35_spill] sm:$0xff] %v9604_v48  ;;  %v5106_v30 = vadd.f32 %v7179_v11, %v4759_v34  ;;  %v4763_v11 = vadd.f32 %v9448_v53, %v9430_v61 }
 0x393   : > { %v4945_v13 = vpop.f32.mrf.mxu1 }
 0x394   : > { %v5104_v8 = vadd.f32 %v4945_v13, %v4757_v9  ;;  %v5153_v46 = vadd.f32 %v9615_v36, %v5106_v30  ;;  %v9628_v9 = vpop.f32.mrf.mxu0 }
 0x395   : > { %v7180_v29 = vpop.f32.mrf.mxu1 }
 0x396   : > { %v5107_v41 = vadd.f32 %v7180_v29, %v4760_v25  ;;  %v5151_v17 = vadd.f32 %v9615_v36, %v5104_v8  ;;  %v5193_v30 = vmax.f32 %v5153_v46, 0.0  ;;  %v4764_v8 = vadd.f32 %v9468_v45, %v9440_v28  ;;  %v9635_v61 = vpop.f32.mrf.mxu0 }
 0x397   : > { %v4948_v60 = vpop.f32.mrf.mxu1  ;;  %v4767_v45 = vadd.f32 %v9488_v26, %v9450_v24 }
 0x398   : > { %v5154_v51 = vadd.f32 %v9615_v36, %v5107_v41  ;;  %v5105_v34 = vadd.f32 %v4948_v60, %v4758_v38  ;;  %v5191_v29 = vmax.f32 %v5151_v17, 0.0  ;;  %v9645_v17 = vpop.f32.mrf.mxu0 }
 0x399   : > { %v7183_v37 = vpop.f32.mrf.mxu1 }
 0x39a   : > { %v5194_v13 = vmax.f32 %v5154_v51, 0.0  ;;  %v5152_v25 = vadd.f32 %v9615_v36, %v5105_v34  ;;  %v5110_v47 = vadd.f32 %v7183_v37, %v4763_v11  ;;  %v4765_v37 = vadd.f32 %v9498_v43, %v9454_v2 }
 0x39b   : > { %v4961_v44 = vpop.f32.mrf.mxu1  ;;  %v4766_v43 = vadd.f32 %v9518_v42, %v9464_v1 }
 0x39c   : > { %v5232_v41 = vpack.c.bf16 %v5194_v13, %v5193_v30  ;;  %v5192_v38 = vmax.f32 %v5152_v25, 0.0  ;;  %v5108_v60 = vadd.f32 %v4961_v44, %v4761_v22  ;;  %v5157_v39 = vadd.f32 %v9615_v36, %v5110_v47  ;;  %v9653_v44 = vpop.f32.mrf.mxu0 }
 0x39d   : > { %v7184_v53 = vpop.f32.mrf.mxu1 }
 0x39e   : > { %v5231_v48 = vpack.c.bf16 %v5192_v38, %v5191_v29  ;;  %v5111_v27 = vadd.f32 %v7184_v53, %v4764_v8  ;;  %v5155_v51 = vadd.f32 %v9615_v36, %v5108_v60  ;;  %v5197_v49 = vmax.f32 %v5157_v39, 0.0  ;;  %v9663_v53 = vpop.f32.mrf.mxu0 }
 0x39f   : > { %v4964_v46 = vpop.f32.mrf.mxu1 }
 0x3a0   : > { %v5158_v34 = vadd.f32 %v9615_v36, %v5111_v27  ;;  %v5109_v28 = vadd.f32 %v4964_v46, %v4762_v54  ;;  %7219 = vmatprep.mubr.msk.bf16.mxu0 %vm1743_vm5, %v5231_v48  ;;  %v4768_v48 = vadd.f32 %v9508_v52, %v9460_v33  ;;  %v5195_v25 = vmax.f32 %v5155_v51, 0.0  ;;  %v10233_v54 = vld [vmem:[#allocation61_spill] sm:$0xff] }
 0x3a1   : > { %v7187_v11 = vpop.f32.mrf.mxu1  ;;  %7220 = vmatmul.mubr.msk.bf16.vlgmr.msra.gmra.mxu0 %vm1743_vm5, %v5232_v41  ;;  %v4771_v52 = vadd.f32 %v9528_v55, %v9470_v12  ;;  %v4769_v46 = vadd.f32 %v9538_v7, %v10233_v54 }
 0x3a2   : > { %v5198_v59 = vmax.f32 %v5158_v34, 0.0  ;;  %v5156_v22 = vadd.f32 %v9615_v36, %v5109_v28  ;;  %v5114_v30 = vadd.f32 %v7187_v11, %v4767_v45  ;;  %v4772_v45 = vadd.f32 %v9548_v31, %v9480_v58 }
 0x3a3   : > { %v4977_v13 = vpop.f32.mrf.mxu1  ;;  %v4775_v31 = vadd.f32 %v9568_v5, %v9490_v40 }
 0x3a4   : > { %v5234_v47 = vpack.c.bf16 %v5198_v59, %v5197_v49  ;;  %v5196_v24 = vmax.f32 %v5156_v22, 0.0  ;;  %v5112_v26 = vadd.f32 %v4977_v13, %v4765_v37  ;;  %v5161_v41 = vadd.f32 %v9615_v36, %v5114_v30  ;;  %v9671_v49 = vpop.f32.mrf.mxu0  ;;  %v10234_v13 = vld [vmem:[#allocation85_spill] sm:$0xff] }
 0x3a5   : > { %v7188_v8 = vpop.f32.mrf.mxu1 }
 0x3a6   : > { %v5233_v29 = vpack.c.bf16 %v5196_v24, %v5195_v25  ;;  %v5115_v2 = vadd.f32 %v7188_v8, %v4768_v48  ;;  %v5159_v38 = vadd.f32 %v9615_v36, %v5112_v26  ;;  %v5201_v1 = vmax.f32 %v5161_v41, 0.0  ;;  %v9681_v26 = vpop.f32.mrf.mxu0 }
 0x3a7   : > { %v4980_v39 = vpop.f32.mrf.mxu1  ;;  %v4770_v48 = vadd.f32 %v9558_v0, %v10234_v13  ;;  %v4780_v13 = vadd.f32 %v9628_v9, %v9520_v20  ;;  %v4783_v20 = vadd.f32 %v9645_v17, %v9530_v57 }
 0x3a8   : > { %v5162_v60 = vadd.f32 %v9615_v36, %v5115_v2  ;;  %v5113_v33 = vadd.f32 %v4980_v39, %v4766_v43  ;;  %7223 = vmatprep.mubr.msk.bf16.mxu0 %vm1743_vm5, %v5233_v29  ;;  %v5199_v11 = vmax.f32 %v5159_v38, 0.0  ;;  %v10235_v29 = vld [vmem:[#allocation16_spill] sm:$0xff] }
 0x3a9   : > { %v7191_v27 = vpop.f32.mrf.mxu1  ;;  %7224 = vmatmul.mubr.msk.bf16.gmra.mxu0 %vm1743_vm5, %v5234_v47  ;;  %v4773_v41 = vadd.f32 %v9578_v6, %v10235_v29 }
 0x3aa   : > { %v5202_v42 = vmax.f32 %v5162_v60, 0.0  ;;  %v5160_v51 = vadd.f32 %v9615_v36, %v5113_v33  ;;  %v5118_v34 = vadd.f32 %v7191_v27, %v4771_v52  ;;  %v4776_v60 = vadd.f32 %v9588_v16, %v9500_v21  ;;  %v9689_v27 = vpop.f32.mrf.mxu0 }
 0x3ab   : > { %v4993_v28 = vpop.f32.mrf.mxu1  ;;  %v4779_v16 = vadd.f32 %v9608_v3, %v9510_v32 }
 0x3ac   : > { %v5236_v37 = vpack.c.bf16 %v5202_v42, %v5201_v1  ;;  %v5200_v12 = vmax.f32 %v5160_v51, 0.0  ;;  %v5116_v55 = vadd.f32 %v4993_v28, %v4769_v46  ;;  %v5165_v30 = vadd.f32 %v9615_v36, %v5118_v34  ;;  %v10236_v42 = vld [vmem:[#allocation13_spill] sm:$0xff] }
 0x3ad   : > { %v7192_v59 = vpop.f32.mrf.mxu1  ;;  %v4774_v51 = vadd.f32 %v9598_v4, %v10236_v42 }
 0x3ae   : > { %v5235_v22 = vpack.c.bf16 %v5200_v12, %v5199_v11  ;;  %v5119_v7 = vadd.f32 %v7192_v59, %v4772_v45  ;;  %v5163_v47 = vadd.f32 %v9615_v36, %v5116_v55  ;;  %v5205_v0 = vmax.f32 %v5165_v30, 0.0  ;;  %v7166_v11 = vpop.f32.mrf.mxu0  ;;  %v10237_v12 = vld [vmem:[#allocation86_spill] sm:$0xff] }
 0x3af   : > { %v4996_v25 = vpop.f32.mrf.mxu1  ;;  %v4777_v55 = vadd.f32 %v9619_v15, %v10237_v12  ;;  %v10238_v15 = vld [vmem:[#allocation18_spill] sm:$0xff] }
 0x3b0   : > { %v5166_v24 = vadd.f32 %v9615_v36, %v5119_v7  ;;  %v5117_v58 = vadd.f32 %v4996_v25, %v4770_v48  ;;  %7227 = vmatprep.mubr.msk.bf16.mxu0 %vm1743_vm5, %v5235_v22  ;;  %v5203_v33 = vmax.f32 %v5163_v47, 0.0  ;;  %v4713_v3 = vpop.f32.mrf.mxu0  ;;  %v4778_v29 = vadd.f32 %v9635_v61, %v10238_v15 }
 0x3b1   : > { %v7195_v8 = vpop.f32.mrf.mxu1  ;;  %7228 = vmatmul.mubr.msk.bf16.gmra.mxu0 %vm1743_vm5, %v5236_v37 }
 0x3b2   : > { %v5206_v2 = vmax.f32 %v5166_v24, 0.0  ;;  %v5164_v43 = vadd.f32 %v9615_v36, %v5117_v58  ;;  %v5122_v39 = vadd.f32 %v7195_v8, %v4775_v31  ;;  %v7169_v9 = vpop.f32.mrf.mxu0 }
 0x3b3   : > { %v5009_v38 = vpop.f32.mrf.mxu1 }
 0x3b4   : > { %v5238_v52 = vpack.c.bf16 %v5206_v2, %v5205_v0  ;;  %v5204_v40 = vmax.f32 %v5164_v43, 0.0  ;;  %v5120_v5 = vadd.f32 %v5009_v38, %v4773_v41  ;;  %v5169_v1 = vadd.f32 %v9615_v36, %v5122_v39  ;;  %v4726_v17 = vpop.f32.mrf.mxu0 }
 0x3b5   : > { %v7196_v54 = vpop.f32.mrf.mxu1  ;;  %v4781_v38 = vadd.f32 %v9653_v44, %v9534_v62  ;;  %v4782_v62 = vadd.f32 %v9671_v49, %v9544_v50 }
 0x3b6   : > { %v5237_v46 = vpack.c.bf16 %v5204_v40, %v5203_v33  ;;  %v5123_v6 = vadd.f32 %v7196_v54, %v4776_v60  ;;  %v5167_v28 = vadd.f32 %v9615_v36, %v5120_v5  ;;  %v5209_v59 = vmax.f32 %v5169_v1, 0.0 }
 0x3b7   : > { %v5012_v34 = vpop.f32.mrf.mxu1  ;;  %v4784_v5 = vadd.f32 %v9663_v53, %v9540_v56  ;;  %v4787_v56 = vadd.f32 %v9681_v26, %v9550_v63  ;;  %v7170_v53 = vpop.f32.mrf.mxu0 }
 0x3b8   : > { %v5170_v45 = vadd.f32 %v9615_v36, %v5123_v6  ;;  %v5121_v21 = vadd.f32 %v5012_v34, %v4774_v51  ;;  %7231 = vmatprep.mubr.msk.bf16.mxu0 %vm1743_vm5, %v5237_v46  ;;  %v5207_v48 = vmax.f32 %v5167_v28, 0.0 }
 0x3b9   : > { %v7199_v37 = vpop.f32.mrf.mxu1  ;;  %7232 = vmatmul.mubr.msk.bf16.gmra.mxu0 %vm1743_vm5, %v5238_v52  ;;  %v4729_v63 = vpop.f32.mrf.mxu0 }
 0x3ba   : > { %v5210_v4 = vmax.f32 %v5170_v45, 0.0  ;;  %v5168_v22 = vadd.f32 %v9615_v36, %v5121_v21  ;;  %v5126_v30 = vadd.f32 %v7199_v37, %v4779_v16  ;;  %v10239_v37 = vld [vmem:[#allocation62_spill] sm:$0xff] }
 0x3bb   : > { %v5025_v7 = vpop.f32.mrf.mxu1  ;;  %v4785_v12 = vadd.f32 %v9689_v27, %v10239_v37 }
 0x3bc   : > { %v5240_v25 = vpack.c.bf16 %v5210_v4, %v5209_v59  ;;  %v5208_v47 = vmax.f32 %v5168_v22, 0.0  ;;  %v5124_v32 = vadd.f32 %v5025_v7, %v4777_v55  ;;  %v5173_v31 = vadd.f32 %v9615_v36, %v5126_v30 }
 0x3bd   : > { %v7200_v24 = vpop.f32.mrf.mxu1  ;;  %v4788_v22 = vadd.f32 %v7166_v11, %v9560_v23  ;;  %v4791_v23 = vadd.f32 %v7169_v9, %v9570_v35  ;;  %v7173_v11 = vpop.f32.mrf.mxu0 }
 0x3be   : > { %v5239_v58 = vpack.c.bf16 %v5208_v47, %v5207_v48  ;;  %v5127_v8 = vadd.f32 %v7200_v24, %v4780_v13  ;;  %v5171_v0 = vadd.f32 %v9615_v36, %v5124_v32  ;;  %v5213_v60 = vmax.f32 %v5173_v31, 0.0  ;;  %v10240_v24 = vld [vmem:[#allocation88_spill] sm:$0xff] }
 0x3bf   : > { %v5028_v41 = vpop.f32.mrf.mxu1  ;;  %v4786_v27 = vadd.f32 %v4713_v3, %v10240_v24 }
 0x3c0   : > { %v5174_v2 = vadd.f32 %v9615_v36, %v5127_v8  ;;  %v5125_v43 = vadd.f32 %v5028_v41, %v4778_v29  ;;  %7235 = vmatprep.mubr.msk.bf16.mxu0 %vm1743_vm5, %v5239_v58  ;;  %v5211_v54 = vmax.f32 %v5171_v0, 0.0  ;;  %v10241_v41 = vld [vmem:[#allocation64_spill] sm:$0xff] }
 0x3c1   : > { %v7203_v39 = vpop.f32.mrf.mxu1  ;;  %7236 = vmatmul.mubr.msk.bf16.gmra.mxu0 %vm1743_vm5, %v5240_v25  ;;  %v4789_v0 = vadd.f32 %v4726_v17, %v10241_v41  ;;  %v5518_v41 = vld [vmem:[%s9765_s19 + $0x18] sm:$0xff] }
 0x3c2   : > { %v5214_v61 = vmax.f32 %v5174_v2, 0.0  ;;  %v5172_v33 = vadd.f32 %v9615_v36, %v5125_v43  ;;  %v5130_v52 = vadd.f32 %v7203_v39, %v4783_v20 }
 0x3c3   : > { %v5041_v40 = vpop.f32.mrf.mxu1 }
 0x3c4   : > { %v5242_v46 = vpack.c.bf16 %v5214_v61, %v5213_v60  ;;  %v5212_v1 = vmax.f32 %v5172_v33, 0.0  ;;  %v5128_v57 = vadd.f32 %v5041_v40, %v4781_v38  ;;  %v5177_v51 = vadd.f32 %v9615_v36, %v5130_v52  ;;  %v4742_v40 = vpop.f32.mrf.mxu0 }
 0x3c5   : > { %v7204_v6 = vpop.f32.mrf.mxu1  ;;  %v4792_v38 = vadd.f32 %v7170_v53, %v9580_v10  ;;  %v4795_v10 = vadd.f32 %v7173_v11, %v9590_v18 }
 0x3c6   : > { %v5241_v42 = vpack.c.bf16 %v5212_v1, %v5211_v54  ;;  %v5131_v34 = vadd.f32 %v7204_v6, %v4784_v5  ;;  %v5175_v28 = vadd.f32 %v9615_v36, %v5128_v57  ;;  %v5217_v55 = vmax.f32 %v5177_v51, 0.0 }
 0x3c7   : > { %v5044_v44 = vpop.f32.mrf.mxu1 }
 0x3c8   : > { %v5178_v45 = vadd.f32 %v9615_v36, %v5131_v34  ;;  %v5129_v21 = vadd.f32 %v5044_v44, %v4782_v62  ;;  %7239 = vmatprep.mubr.msk.bf16.mxu0 %vm1743_vm5, %v5241_v42  ;;  %v5215_v30 = vmax.f32 %v5175_v28, 0.0  ;;  %v7174_v42 = vpop.f32.mrf.mxu0  ;;  %v4793_v34 = vadd.f32 %v4742_v40, %v9594_v19 }
 0x3c9   : > { %v7207_v16 = vpop.f32.mrf.mxu1  ;;  %7240 = vmatmul.mubr.msk.bf16.gmra.mxu0 %vm1743_vm5, %v5242_v46  ;;  %v4790_v46 = vadd.f32 %v4729_v63, %v9584_v14 }
 0x3ca   : > { %v5218_v50 = vmax.f32 %v5178_v45, 0.0  ;;  %v5176_v49 = vadd.f32 %v9615_v36, %v5129_v21  ;;  %v5134_v59 = vadd.f32 %v7207_v16, %v4787_v56  ;;  %v10242_v21 = vld [vmem:[#allocation89_spill] sm:$0xff] }
 0x3cb   : > { %v5057_v4 = vpop.f32.mrf.mxu1  ;;  %v4796_v56 = vadd.f32 %v7174_v42, %v10242_v21  ;;  %v5522_v42 = vld [vmem:[%s9765_s19 + $0x38] sm:$0xff] }
 0x3cc   : > { %v5244_v7 = vpack.c.bf16 %v5218_v50, %v5217_v55  ;;  %v5216_v13 = vmax.f32 %v5176_v49, 0.0  ;;  %v5132_v48 = vadd.f32 %v5057_v4, %v4785_v12  ;;  %v5181_v47 = vadd.f32 %v9615_v36, %v5134_v59  ;;  %v4745_v55 = vpop.f32.mrf.mxu0  ;;  %v10243_v4 = vld [vmem:[#allocation35_spill] sm:$0xff] }
 0x3cd   : > { %v7208_v26 = vpop.f32.mrf.mxu1  ;;  %v4794_v19 = vadd.f32 %v4745_v55, %v10243_v4 }
 0x3ce   : > { %v5243_v25 = vpack.c.bf16 %v5216_v13, %v5215_v30  ;;  %v5135_v32 = vadd.f32 %v7208_v26, %v4788_v22  ;;  %v5179_v31 = vadd.f32 %v9615_v36, %v5132_v48  ;;  %v5221_v2 = vmax.f32 %v5181_v47, 0.0 }
 0x3cf   : > { %v5060_v58 = vpop.f32.mrf.mxu1 }
 0x3d0   : > { %v5182_v8 = vadd.f32 %v9615_v36, %v5135_v32  ;;  %v5133_v15 = vadd.f32 %v5060_v58, %v4786_v27  ;;  %7243 = vmatprep.mubr.msk.bf16.mxu0 %vm1743_vm5, %v5243_v25  ;;  %v5219_v60 = vmax.f32 %v5179_v31, 0.0  ;;  %v5517_v58 = vld [vmem:[%s9765_s19 + $0x10] sm:$0xff] }
 0x3d1   : > { %v7211_v29 = vpop.f32.mrf.mxu1  ;;  %7244 = vmatmul.mubr.msk.bf16.gmra.mxu0 %vm1743_vm5, %v5244_v7 }
 0x3d2   : > { %v5222_v43 = vmax.f32 %v5182_v8, 0.0  ;;  %v5180_v3 = vadd.f32 %v9615_v36, %v5133_v15  ;;  %v5138_v20 = vadd.f32 %v7211_v29, %v4791_v23  ;;  %v5515_v15 = vld [vmem:[%s9765_s19] sm:$0xff] }
 0x3d3   : > { %v5073_v39 = vpop.f32.mrf.mxu1 }
 0x3d4   : > { %v5246_v61 = vpack.c.bf16 %v5222_v43, %v5221_v2  ;;  %v5220_v33 = vmax.f32 %v5180_v3, 0.0  ;;  %v5136_v52 = vadd.f32 %v5073_v39, %v4789_v0  ;;  %v5185_v5 = vadd.f32 %v9615_v36, %v5138_v20  ;;  %v5516_v20 = vld [vmem:[%s9765_s19 + $0x8] sm:$0xff] }
 0x3d5   : > { %v7212_v35 = vpop.f32.mrf.mxu1 }
 0x3d6   : > { %v5245_v9 = vpack.c.bf16 %v5220_v33, %v5219_v60  ;;  %v5139_v54 = vadd.f32 %v7212_v35, %v4792_v38  ;;  %v5183_v57 = vadd.f32 %v9615_v36, %v5136_v52  ;;  %v5225_v62 = vmax.f32 %v5185_v5, 0.0  ;;  %v5521_v52 = vld [vmem:[%s9765_s19 + $0x30] sm:$0xff] }
 0x3d7   : > { %v5076_v1 = vpop.f32.mrf.mxu1 }
 0x3d8   : > { %v5186_v17 = vadd.f32 %v9615_v36, %v5139_v54  ;;  %v5137_v6 = vadd.f32 %v5076_v1, %v4790_v46  ;;  %7247 = vmatprep.mubr.msk.bf16.mxu0 %vm1743_vm5, %v5245_v9  ;;  %v5223_v53 = vmax.f32 %v5183_v57, 0.0  ;;  %v5519_v46 = vld [vmem:[%s9765_s19 + $0x20] sm:$0xff] }
 0x3d9   : > { %v7215_v51 = vpop.f32.mrf.mxu1  ;;  %7248 = vmatmul.mubr.msk.bf16.gmra.mxu0 %vm1743_vm5, %v5246_v61 }
 0x3da   : > { %v5226_v44 = vmax.f32 %v5186_v17, 0.0  ;;  %v5184_v14 = vadd.f32 %v9615_v36, %v5137_v6  ;;  %v5142_v28 = vadd.f32 %v7215_v51, %v4795_v10 }
 0x3db   : > { %v5089_v45 = vpop.f32.mrf.mxu1 }
 0x3dc   : > { %v5248_v16 = vpack.c.bf16 %v5226_v44, %v5225_v62  ;;  %v5224_v37 = vmax.f32 %v5184_v14, 0.0  ;;  %v5140_v12 = vadd.f32 %v5089_v45, %v4793_v34  ;;  %v5189_v49 = vadd.f32 %v9615_v36, %v5142_v28  ;;  %v5520_v28 = vld [vmem:[%s9765_s19 + $0x28] sm:$0xff] }
 0x3dd   : > { %v7216_v18 = vpop.f32.mrf.mxu1 }
 0x3de   : > { %v5247_v50 = vpack.c.bf16 %v5224_v37, %v5223_v53  ;;  %v5143_v59 = vadd.f32 %v7216_v18, %v4796_v56  ;;  %v5187_v30 = vadd.f32 %v9615_v36, %v5140_v12  ;;  %v5229_v48 = vmax.f32 %v5189_v49, 0.0  ;;  %v5525_v37 = vld [vmem:[%s9765_s19 + $0x50] sm:$0xff] }
 0x3df   : > { %v5092_v22 = vpop.f32.mrf.mxu1 }
 0x3e0   : > { %v5190_v7 = vadd.f32 %v9615_v36, %v5143_v59  ;;  %v5141_v13 = vadd.f32 %v5092_v22, %v4794_v19  ;;  %7251 = vmatprep.mubr.msk.bf16.mxu0 %vm1743_vm5, %v5247_v50  ;;  %v5227_v25 = vmax.f32 %v5187_v30, 0.0  ;;  %v5523_v59 = vld [vmem:[%s9765_s19 + $0x40] sm:$0xff] }
 0x3e1   : > { %7252 = vmatmul.mubr.msk.bf16.gmra.mxu0 %vm1743_vm5, %v5248_v16 }
 0x3e2   : > { %v5230_v63 = vmax.f32 %v5190_v7, 0.0  ;;  %v5188_v26 = vadd.f32 %v9615_v36, %v5141_v13  ;;  %v9770_v36 = vld [vmem:[%s9955_s8] ss:$0 sm:$0xff]  ;;  %v5526_v13 = vld [vmem:[%s9765_s19 + $0x58] sm:$0xff] }
 0x3e4   : > { %v5250_v47 = vpack.c.bf16 %v5230_v63, %v5229_v48  ;;  %v5228_v32 = vmax.f32 %v5188_v26, 0.0 }
 0x3e6   : > { %v5249_v24 = vpack.c.bf16 %v5228_v32, %v5227_v25  ;;  %v5524_v32 = vld [vmem:[%s9765_s19 + $0x48] sm:$0xff] }
 0x3e8   : > { %7255 = vmatprep.mubr.msk.bf16.mxu0 %vm1743_vm5, %v5249_v24 }
 0x3e9   : > { %7256 = vmatmul.mubr.msk.bf16.gmra.mxu0 %vm1743_vm5, %v5250_v47 }
 0x461   : > { %v7221_v27 = vpop.f32.mrf.mxu0 }
 0x462   : > { %v5365_v31 = vadd.f32 %v7221_v27, %v9770_v36 }
 0x463   : > { %v5356_v8 = vpop.f32.mrf.mxu0 }
 0x464   : > { %v5557_v23 = vadd.f32 %v5517_v58, %v5365_v31  ;;  %v5357_v11 = vadd.f32 %v9770_v36, %v5356_v8 }
 0x465   : > { %v7222_v29 = vpop.f32.mrf.mxu0 }
 0x466   : > { %v5597_v0 = vmax.f32 %v5557_v23, 0.0  ;;  %v5555_v2 = vadd.f32 %v5515_v15, %v5357_v11  ;;  %v5368_v43 = vadd.f32 %v7222_v29, %v9770_v36  ;;  %v5529_v15 = vld [vmem:[%s9765_s19 + $0x70] sm:$0xff] }
 0x467   : > { %v5359_v3 = vpop.f32.mrf.mxu0 }
 0x468   : > { %v6463_v39 = vpack.c.bf16 %v5597_v0, %v5597_v0  ;;  %v5595_v38 = vmax.f32 %v5555_v2, 0.0  ;;  %v5558_v60 = vadd.f32 %v5518_v41, %v5368_v43  ;;  %v5360_v61 = vadd.f32 %v9770_v36, %v5359_v3  ;;  %v5527_v2 = vld [vmem:[%s9765_s19 + $0x60] sm:$0xff] }
 0x469   : > { %v7225_v33 = vpop.f32.mrf.mxu0 }
 0x46a   : > { %5798 = vst.msk [vmem:[%s9782_s25 + $0x8] sm:$0xf] %vm5795_vm7, %v6463_v39  ;;  %v6461_v40 = vpack.c.bf16 %v5595_v38, %v5595_v38  ;;  %v5598_v35 = vmax.f32 %v5558_v60, 0.0  ;;  %v5556_v9 = vadd.f32 %v5516_v20, %v5360_v61  ;;  %v5381_v5 = vadd.f32 %v7225_v33, %v9770_v36  ;;  %v5530_v60 = vld [vmem:[%s9765_s19 + $0x78] sm:$0xff] }
 0x46b   : > { %v5372_v54 = vpop.f32.mrf.mxu0 }
 0x46c   : > { %5796 = vst.msk [vmem:[%s9782_s25] sm:$0xf] %vm5795_vm7, %v6461_v40  ;;  %v6464_v1 = vpack.c.bf16 %v5598_v35, %v5598_v35  ;;  %v5596_v57 = vmax.f32 %v5556_v9, 0.0  ;;  %v5561_v17 = vadd.f32 %v5521_v52, %v5381_v5  ;;  %v5373_v6 = vadd.f32 %v9770_v36, %v5372_v54  ;;  %v5528_v9 = vld [vmem:[%s9765_s19 + $0x68] sm:$0xff] }
 0x46d   : > { %v7226_v10 = vpop.f32.mrf.mxu0 }
 0x46e   : > { %5799 = vst.msk [vmem:[%s9782_s25 + $0xc] sm:$0xf] %vm5795_vm7, %v6464_v1  ;;  %v6462_v51 = vpack.c.bf16 %v5596_v57, %v5596_v57  ;;  %v5601_v34 = vmax.f32 %v5561_v17, 0.0  ;;  %v5559_v62 = vadd.f32 %v5519_v46, %v5373_v6  ;;  %v5384_v44 = vadd.f32 %v7226_v10, %v9770_v36  ;;  %v5533_v17 = vld [vmem:[%s9765_s19 + $0x90] sm:$0xff] }
 0x46f   : > { %v5375_v14 = vpop.f32.mrf.mxu0 }
 0x470   : > { %5797 = vst.msk [vmem:[%s9782_s25 + $0x4] sm:$0xf] %vm5795_vm7, %v6462_v51  ;;  %v6467_v45 = vpack.c.bf16 %v5601_v34, %v5601_v34  ;;  %v5599_v21 = vmax.f32 %v5559_v62, 0.0  ;;  %v5562_v56 = vadd.f32 %v5522_v42, %v5384_v44  ;;  %v5376_v53 = vadd.f32 %v9770_v36, %v5375_v14  ;;  %v5531_v62 = vld [vmem:[%s9765_s19 + $0x80] sm:$0xff] }
 0x471   : > { %v7229_v16 = vpop.f32.mrf.mxu0 }
 0x472   : > { %5802 = vst.msk [vmem:[%s9782_s25 + $0x18] sm:$0xf] %vm5795_vm7, %v6467_v45  ;;  %v6465_v12 = vpack.c.bf16 %v5599_v21, %v5599_v21  ;;  %v5602_v55 = vmax.f32 %v5562_v56, 0.0  ;;  %v5560_v18 = vadd.f32 %v5520_v28, %v5376_v53  ;;  %v5397_v50 = vadd.f32 %v7229_v16, %v9770_v36  ;;  %v5534_v56 = vld [vmem:[%s9765_s19 + $0x98] sm:$0xff] }
 0x473   : > { %v5388_v49 = vpop.f32.mrf.mxu0 }
 0x474   : > { %5800 = vst.msk [vmem:[%s9782_s25 + $0x10] sm:$0xf] %vm5795_vm7, %v6465_v12  ;;  %v6468_v4 = vpack.c.bf16 %v5602_v55, %v5602_v55  ;;  %v5600_v19 = vmax.f32 %v5560_v18, 0.0  ;;  %v5565_v22 = vadd.f32 %v5525_v37, %v5397_v50  ;;  %v5389_v30 = vadd.f32 %v9770_v36, %v5388_v49  ;;  %v5532_v18 = vld [vmem:[%s9765_s19 + $0x88] sm:$0xff] }
 0x475   : > { %v7230_v7 = vpop.f32.mrf.mxu0 }
 0x476   : > { %5803 = vst.msk [vmem:[%s9782_s25 + $0x1c] sm:$0xf] %vm5795_vm7, %v6468_v4  ;;  %v6466_v48 = vpack.c.bf16 %v5600_v19, %v5600_v19  ;;  %v5605_v63 = vmax.f32 %v5565_v22, 0.0  ;;  %v5563_v26 = vadd.f32 %v5523_v59, %v5389_v30  ;;  %v5400_v25 = vadd.f32 %v7230_v7, %v9770_v36  ;;  %v5537_v22 = vld [vmem:[%s9765_s19 + $0xb0] sm:$0xff] }
 0x477   : > { %v5391_v47 = vpop.f32.mrf.mxu0 }
 0x478   : > { %5801 = vst.msk [vmem:[%s9782_s25 + $0x14] sm:$0xf] %vm5795_vm7, %v6466_v48  ;;  %v6471_v24 = vpack.c.bf16 %v5605_v63, %v5605_v63  ;;  %v5603_v27 = vmax.f32 %v5563_v26, 0.0  ;;  %v5566_v58 = vadd.f32 %v5526_v13, %v5400_v25  ;;  %v5392_v31 = vadd.f32 %v9770_v36, %v5391_v47  ;;  %v5535_v26 = vld [vmem:[%s9765_s19 + $0xa0] sm:$0xff] }
 0x479   : > { %v7233_v8 = vpop.f32.mrf.mxu0 }
 0x47a   : > { %5806 = vst.msk [vmem:[%s9782_s25 + $0x28] sm:$0xf] %vm5795_vm7, %v6471_v24  ;;  %v6469_v23 = vpack.c.bf16 %v5603_v27, %v5603_v27  ;;  %v5606_v11 = vmax.f32 %v5566_v58, 0.0  ;;  %v5564_v29 = vadd.f32 %v5524_v32, %v5392_v31  ;;  %v5413_v41 = vadd.f32 %v7233_v8, %v9770_v36  ;;  %v5538_v58 = vld [vmem:[%s9765_s19 + $0xb8] sm:$0xff] }
 0x47b   : > { %v5404_v0 = vpop.f32.mrf.mxu0 }
 0x47c   : > { %5804 = vst.msk [vmem:[%s9782_s25 + $0x20] sm:$0xf] %vm5795_vm7, %v6469_v23  ;;  %v6472_v43 = vpack.c.bf16 %v5606_v11, %v5606_v11  ;;  %v5604_v3 = vmax.f32 %v5564_v29, 0.0  ;;  %v5569_v20 = vadd.f32 %v5529_v15, %v5413_v41  ;;  %v5405_v39 = vadd.f32 %v9770_v36, %v5404_v0  ;;  %v5536_v29 = vld [vmem:[%s9765_s19 + $0xa8] sm:$0xff] }
 0x47d   : > { %v7234_v38 = vpop.f32.mrf.mxu0 }
 0x47e   : > { %5807 = vst.msk [vmem:[%s9782_s25 + $0x2c] sm:$0xf] %vm5795_vm7, %v6472_v43  ;;  %v6470_v61 = vpack.c.bf16 %v5604_v3, %v5604_v3  ;;  %v5609_v33 = vmax.f32 %v5569_v20, 0.0  ;;  %v5567_v52 = vadd.f32 %v5527_v2, %v5405_v39  ;;  %v5416_v40 = vadd.f32 %v7234_v38, %v9770_v36  ;;  %v5541_v20 = vld [vmem:[%s9765_s19 + $0xd0] sm:$0xff] }
 0x47f   : > { %v5407_v35 = vpop.f32.mrf.mxu0 }
 0x480   : > { %5805 = vst.msk [vmem:[%s9782_s25 + $0x24] sm:$0xf] %vm5795_vm7, %v6470_v61  ;;  %v6475_v5 = vpack.c.bf16 %v5609_v33, %v5609_v33  ;;  %v5607_v54 = vmax.f32 %v5567_v52, 0.0  ;;  %v5570_v46 = vadd.f32 %v5530_v60, %v5416_v40  ;;  %v5408_v1 = vadd.f32 %v9770_v36, %v5407_v35  ;;  %v5539_v52 = vld [vmem:[%s9765_s19 + $0xc0] sm:$0xff] }
 0x481   : > { %v7237_v57 = vpop.f32.mrf.mxu0 }
 0x482   : > { %5810 = vst.msk [vmem:[%s9782_s25 + $0x38] sm:$0xf] %vm5795_vm7, %v6475_v5  ;;  %v6473_v6 = vpack.c.bf16 %v5607_v54, %v5607_v54  ;;  %v5610_v10 = vmax.f32 %v5570_v46, 0.0  ;;  %v5568_v42 = vadd.f32 %v5528_v9, %v5408_v1  ;;  %v5429_v51 = vadd.f32 %v7237_v57, %v9770_v36  ;;  %v5542_v46 = vld [vmem:[%s9765_s19 + $0xd8] sm:$0xff] }
 0x483   : > { %v5420_v34 = vpop.f32.mrf.mxu0 }
 0x484   : > { %5808 = vst.msk [vmem:[%s9782_s25 + $0x30] sm:$0xf] %vm5795_vm7, %v6473_v6  ;;  %v6476_v44 = vpack.c.bf16 %v5610_v10, %v5610_v10  ;;  %v5608_v14 = vmax.f32 %v5568_v42, 0.0  ;;  %v5573_v28 = vadd.f32 %v5533_v17, %v5429_v51  ;;  %v5421_v45 = vadd.f32 %v9770_v36, %v5420_v34  ;;  %v5540_v42 = vld [vmem:[%s9765_s19 + $0xc8] sm:$0xff] }
 0x485   : > { %v7238_v21 = vpop.f32.mrf.mxu0 }
 0x486   : > { %5811 = vst.msk [vmem:[%s9782_s25 + $0x3c] sm:$0xf] %vm5795_vm7, %v6476_v44  ;;  %v6474_v53 = vpack.c.bf16 %v5608_v14, %v5608_v14  ;;  %v5613_v16 = vmax.f32 %v5573_v28, 0.0  ;;  %v5571_v37 = vadd.f32 %v5531_v62, %v5421_v45  ;;  %v5432_v12 = vadd.f32 %v7238_v21, %v9770_v36  ;;  %v5545_v28 = vld [vmem:[%s9765_s19 + $0xf0] sm:$0xff] }
 0x487   : > { %v5423_v55 = vpop.f32.mrf.mxu0 }
 0x488   : > { %5809 = vst.msk [vmem:[%s9782_s25 + $0x34] sm:$0xf] %vm5795_vm7, %v6474_v53  ;;  %v6479_v50 = vpack.c.bf16 %v5613_v16, %v5613_v16  ;;  %v5611_v49 = vmax.f32 %v5571_v37, 0.0  ;;  %v5574_v59 = vadd.f32 %v5534_v56, %v5432_v12  ;;  %v5424_v4 = vadd.f32 %v9770_v36, %v5423_v55  ;;  %v5543_v37 = vld [vmem:[%s9765_s19 + $0xe0] sm:$0xff] }
 0x489   : > { %v7241_v19 = vpop.f32.mrf.mxu0 }
 0x48a   : > { %5814 = vst.msk [vmem:[%s9782_s25 + $0x48] sm:$0xf] %vm5795_vm7, %v6479_v50  ;;  %v6477_v30 = vpack.c.bf16 %v5611_v49, %v5611_v49  ;;  %v5614_v7 = vmax.f32 %v5574_v59, 0.0  ;;  %v5572_v13 = vadd.f32 %v5532_v18, %v5424_v4  ;;  %v5445_v48 = vadd.f32 %v7241_v19, %v9770_v36  ;;  %v5546_v59 = vld [vmem:[%s9765_s19 + $0xf8] sm:$0xff] }
 0x48b   : > { %v5436_v63 = vpop.f32.mrf.mxu0 }
 0x48c   : > { %5812 = vst.msk [vmem:[%s9782_s25 + $0x40] sm:$0xf] %vm5795_vm7, %v6477_v30  ;;  %v6480_v25 = vpack.c.bf16 %v5614_v7, %v5614_v7  ;;  %v5612_v47 = vmax.f32 %v5572_v13, 0.0  ;;  %v5577_v32 = vadd.f32 %v5537_v22, %v5445_v48  ;;  %v5437_v24 = vadd.f32 %v9770_v36, %v5436_v63  ;;  %v5544_v13 = vld [vmem:[%s9765_s19 + $0xe8] sm:$0xff] }
 0x48d   : > { %v7242_v27 = vpop.f32.mrf.mxu0 }
 0x48e   : > { %5815 = vst.msk [vmem:[%s9782_s25 + $0x4c] sm:$0xf] %vm5795_vm7, %v6480_v25  ;;  %v6478_v31 = vpack.c.bf16 %v5612_v47, %v5612_v47  ;;  %v5617_v8 = vmax.f32 %v5577_v32, 0.0  ;;  %v5575_v15 = vadd.f32 %v5535_v26, %v5437_v24  ;;  %v5448_v23 = vadd.f32 %v7242_v27, %v9770_v36  ;;  %v5549_v32 = vld [vmem:[%s9765_s19 + $0x110] sm:$0xff] }
 0x48f   : > { %v5439_v11 = vpop.f32.mrf.mxu0 }
 0x490   : > { %5813 = vst.msk [vmem:[%s9782_s25 + $0x44] sm:$0xf] %vm5795_vm7, %v6478_v31  ;;  %v6483_v41 = vpack.c.bf16 %v5617_v8, %v5617_v8  ;;  %v5615_v0 = vmax.f32 %v5575_v15, 0.0  ;;  %v5578_v2 = vadd.f32 %v5538_v58, %v5448_v23  ;;  %v5440_v43 = vadd.f32 %v9770_v36, %v5439_v11  ;;  %v5547_v15 = vld [vmem:[%s9765_s19 + $0x100] sm:$0xff] }
 0x491   : > { %v7245_v3 = vpop.f32.mrf.mxu0 }
 0x492   : > { %5818 = vst.msk [vmem:[%s9782_s25 + $0x58] sm:$0xf] %vm5795_vm7, %v6483_v41  ;;  %v6481_v39 = vpack.c.bf16 %v5615_v0, %v5615_v0  ;;  %v5618_v38 = vmax.f32 %v5578_v2, 0.0  ;;  %v5576_v60 = vadd.f32 %v5536_v29, %v5440_v43  ;;  %v5461_v61 = vadd.f32 %v7245_v3, %v9770_v36  ;;  %v5550_v2 = vld [vmem:[%s9765_s19 + $0x118] sm:$0xff] }
 0x493   : > { %v5452_v33 = vpop.f32.mrf.mxu0 }
 0x494   : > { %5816 = vst.msk [vmem:[%s9782_s25 + $0x50] sm:$0xf] %vm5795_vm7, %v6481_v39  ;;  %v6484_v40 = vpack.c.bf16 %v5618_v38, %v5618_v38  ;;  %v5616_v35 = vmax.f32 %v5576_v60, 0.0  ;;  %v5581_v9 = vadd.f32 %v5541_v20, %v5461_v61  ;;  %v5453_v5 = vadd.f32 %v9770_v36, %v5452_v33  ;;  %v5548_v60 = vld [vmem:[%s9765_s19 + $0x108] sm:$0xff] }
 0x495   : > { %v7246_v54 = vpop.f32.mrf.mxu0 }
 0x496   : > { %5819 = vst.msk [vmem:[%s9782_s25 + $0x5c] sm:$0xf] %vm5795_vm7, %v6484_v40  ;;  %v6482_v1 = vpack.c.bf16 %v5616_v35, %v5616_v35  ;;  %v5621_v57 = vmax.f32 %v5581_v9, 0.0  ;;  %v5579_v17 = vadd.f32 %v5539_v52, %v5453_v5  ;;  %v5464_v6 = vadd.f32 %v7246_v54, %v9770_v36  ;;  %v5553_v9 = vld [vmem:[%s9765_s19 + $0x130] sm:$0xff] }
 0x497   : > { %v5455_v10 = vpop.f32.mrf.mxu0 }
 0x498   : > { %5817 = vst.msk [vmem:[%s9782_s25 + $0x54] sm:$0xf] %vm5795_vm7, %v6482_v1  ;;  %v6487_v51 = vpack.c.bf16 %v5621_v57, %v5621_v57  ;;  %v5619_v34 = vmax.f32 %v5579_v17, 0.0  ;;  %v5582_v62 = vadd.f32 %v5542_v46, %v5464_v6  ;;  %v5456_v44 = vadd.f32 %v9770_v36, %v5455_v10  ;;  %v5551_v17 = vld [vmem:[%s9765_s19 + $0x120] sm:$0xff] }
 0x499   : > { %v7249_v14 = vpop.f32.mrf.mxu0 }
 0x49a   : > { %5822 = vst.msk [vmem:[%s9782_s25 + $0x68] sm:$0xf] %vm5795_vm7, %v6487_v51  ;;  %v6485_v45 = vpack.c.bf16 %v5619_v34, %v5619_v34  ;;  %v5622_v21 = vmax.f32 %v5582_v62, 0.0  ;;  %v5580_v56 = vadd.f32 %v5540_v42, %v5456_v44  ;;  %v5477_v53 = vadd.f32 %v7249_v14, %v9770_v36  ;;  %v5554_v62 = vld [vmem:[%s9765_s19 + $0x138] sm:$0xff] }
 0x49b   : > { %v5468_v16 = vpop.f32.mrf.mxu0 }
 0x49c   : > { %5820 = vst.msk [vmem:[%s9782_s25 + $0x60] sm:$0xf] %vm5795_vm7, %v6485_v45  ;;  %v6488_v12 = vpack.c.bf16 %v5622_v21, %v5622_v21  ;;  %v5620_v55 = vmax.f32 %v5580_v56, 0.0  ;;  %v5585_v18 = vadd.f32 %v5545_v28, %v5477_v53  ;;  %v5469_v50 = vadd.f32 %v9770_v36, %v5468_v16  ;;  %v5552_v56 = vld [vmem:[%s9765_s19 + $0x128] sm:$0xff] }
 0x49d   : > { %v7250_v49 = vpop.f32.mrf.mxu0 }
 0x49e   : > { %5823 = vst.msk [vmem:[%s9782_s25 + $0x6c] sm:$0xf] %vm5795_vm7, %v6488_v12  ;;  %v6486_v4 = vpack.c.bf16 %v5620_v55, %v5620_v55  ;;  %v5625_v19 = vmax.f32 %v5585_v18, 0.0  ;;  %v5583_v22 = vadd.f32 %v5543_v37, %v5469_v50  ;;  %v5480_v30 = vadd.f32 %v7250_v49, %v9770_v36 }
 0x49f   : > { %v5471_v7 = vpop.f32.mrf.mxu0 }
 0x4a0   : > { %5821 = vst.msk [vmem:[%s9782_s25 + $0x64] sm:$0xf] %vm5795_vm7, %v6486_v4  ;;  %v6491_v48 = vpack.c.bf16 %v5625_v19, %v5625_v19  ;;  %v5623_v63 = vmax.f32 %v5583_v22, 0.0  ;;  %v5586_v26 = vadd.f32 %v5546_v59, %v5480_v30  ;;  %v5472_v25 = vadd.f32 %v9770_v36, %v5471_v7 }
 0x4a1   : > { %v7253_v47 = vpop.f32.mrf.mxu0 }
 0x4a2   : > { %5826 = vst.msk [vmem:[%s9782_s25 + $0x78] sm:$0xf] %vm5795_vm7, %v6491_v48  ;;  %v6489_v24 = vpack.c.bf16 %v5623_v63, %v5623_v63  ;;  %v5626_v27 = vmax.f32 %v5586_v26, 0.0  ;;  %v5584_v58 = vadd.f32 %v5544_v13, %v5472_v25  ;;  %v5493_v31 = vadd.f32 %v7253_v47, %v9770_v36 }
 0x4a3   : > { %v5484_v8 = vpop.f32.mrf.mxu0 }
 0x4a4   : > { %5824 = vst.msk [vmem:[%s9782_s25 + $0x70] sm:$0xf] %vm5795_vm7, %v6489_v24  ;;  %v6492_v23 = vpack.c.bf16 %v5626_v27, %v5626_v27  ;;  %v5624_v11 = vmax.f32 %v5584_v58, 0.0  ;;  %v5589_v29 = vadd.f32 %v5549_v32, %v5493_v31  ;;  %v5485_v41 = vadd.f32 %v9770_v36, %v5484_v8 }
 0x4a5   : > { %v7254_v0 = vpop.f32.mrf.mxu0 }
 0x4a6   : > { %5827 = vst.msk [vmem:[%s9782_s25 + $0x7c] sm:$0xf] %vm5795_vm7, %v6492_v23  ;;  %v6490_v43 = vpack.c.bf16 %v5624_v11, %v5624_v11  ;;  %v5629_v3 = vmax.f32 %v5589_v29, 0.0  ;;  %v5587_v20 = vadd.f32 %v5547_v15, %v5485_v41  ;;  %v5496_v39 = vadd.f32 %v7254_v0, %v9770_v36 }
 0x4a7   : > { %v5487_v38 = vpop.f32.mrf.mxu0 }
 0x4a8   : > { %5825 = vst.msk [vmem:[%s9782_s25 + $0x74] sm:$0xf] %vm5795_vm7, %v6490_v43  ;;  %v6495_v61 = vpack.c.bf16 %v5629_v3, %v5629_v3  ;;  %v5627_v33 = vmax.f32 %v5587_v20, 0.0  ;;  %v5590_v52 = vadd.f32 %v5550_v2, %v5496_v39  ;;  %v5488_v40 = vadd.f32 %v9770_v36, %v5487_v38 }
 0x4a9   : > { %v7257_v35 = vpop.f32.mrf.mxu0 }
 0x4aa   : > { %5830 = vst.msk [vmem:[%s9782_s25 + $0x88] sm:$0xf] %vm5795_vm7, %v6495_v61  ;;  %v6493_v5 = vpack.c.bf16 %v5627_v33, %v5627_v33  ;;  %v5630_v54 = vmax.f32 %v5590_v52, 0.0  ;;  %v5588_v46 = vadd.f32 %v5548_v60, %v5488_v40  ;;  %v5509_v1 = vadd.f32 %v7257_v35, %v9770_v36 }
 0x4ab   : > { %v5500_v57 = vpop.f32.mrf.mxu0 }
 0x4ac   : > { %5828 = vst.msk [vmem:[%s9782_s25 + $0x80] sm:$0xf] %vm5795_vm7, %v6493_v5  ;;  %v6496_v6 = vpack.c.bf16 %v5630_v54, %v5630_v54  ;;  %v5628_v10 = vmax.f32 %v5588_v46, 0.0  ;;  %v5593_v42 = vadd.f32 %v5553_v9, %v5509_v1  ;;  %v5501_v51 = vadd.f32 %v9770_v36, %v5500_v57 }
 0x4ad   : > { %v7258_v34 = vpop.f32.mrf.mxu0 }
 0x4ae   : > { %5831 = vst.msk [vmem:[%s9782_s25 + $0x8c] sm:$0xf] %vm5795_vm7, %v6496_v6  ;;  %v6494_v44 = vpack.c.bf16 %v5628_v10, %v5628_v10  ;;  %v5633_v14 = vmax.f32 %v5593_v42, 0.0  ;;  %v5591_v28 = vadd.f32 %v5551_v17, %v5501_v51  ;;  %v5512_v45 = vadd.f32 %v7258_v34, %v9770_v36 }
 0x4af   : > { %v5503_v21 = vpop.f32.mrf.mxu0 }
 0x4b0   : > { %5829 = vst.msk [vmem:[%s9782_s25 + $0x84] sm:$0xf] %vm5795_vm7, %v6494_v44  ;;  %v6499_v53 = vpack.c.bf16 %v5633_v14, %v5633_v14  ;;  %v5631_v16 = vmax.f32 %v5591_v28, 0.0  ;;  %v5594_v37 = vadd.f32 %v5554_v62, %v5512_v45  ;;  %v5504_v12 = vadd.f32 %v9770_v36, %v5503_v21 }
 0x4b2   : > { %5834 = vst.msk [vmem:[%s9782_s25 + $0x98] sm:$0xf] %vm5795_vm7, %v6499_v53  ;;  %v6497_v55 = vpack.c.bf16 %v5631_v16, %v5631_v16  ;;  %v5634_v18 = vmax.f32 %v5594_v37, 0.0  ;;  %v5592_v50 = vadd.f32 %v5552_v56, %v5504_v12 }
 0x4b4   : > { %5832 = vst.msk [vmem:[%s9782_s25 + $0x90] sm:$0xf] %vm5795_vm7, %v6497_v55  ;;  %v6500_v49 = vpack.c.bf16 %v5634_v18, %v5634_v18  ;;  %v5632_v59 = vmax.f32 %v5592_v50, 0.0 }
 0x4b6   : > { %5835 = vst.msk [vmem:[%s9782_s25 + $0x9c] sm:$0xf] %vm5795_vm7, %v6500_v49  ;;  %v6498_v4 = vpack.c.bf16 %v5632_v59, %v5632_v59 }
 0x4b8   : > { %5833 = vst.msk [vmem:[%s9782_s25 + $0x94] sm:$0xf] %vm5795_vm7, %v6498_v4 }
 0x4b9 PF: > { %s19_s11 = sadd.s32 1, %s7489_s11   ;;  %s10244_s30 = smov %s7485_s10 }
 0x4ba   : > { %p16_p5 = scmp.ge.s32.totalorder %s19_s11, 4   ;;  %s10245_s10 = smov %s10247_s12 }
 0x4bc   :  { %18 = sbr.rel (!%p16_p5) target bundleno = 2 (0x2), region = 99 }

</bundles_post_ra>
